<compile_context>
chip_gen: v5e
topology: v5e:2x2
jax: 0.10.0
libtpu: 0.0.40
codegen_flags: <defaults>
</compile_context>

<pallas_src>
import functools

import jax
import jax.numpy as jnp
from jax import lax
from jax.experimental import pallas as pl
from jax.experimental.pallas import tpu as pltpu


def _round_up(x, m):
    return (x + m - 1) // m * m


def _vmem_limit_bytes():
    """VMEM budget with headroom: v7x (64 MiB) -> 56 MiB, v5e/v6e (128 MiB) -> 112 MiB."""
    cap = 128 * 1024 * 1024
    try:
        cap = int(getattr(pltpu.get_tpu_info(), "vmem_capacity_bytes", cap))
    except Exception:
        pass
    return int(max(32 * 1024 * 1024, min(cap - 8 * 1024 * 1024, 112 * 1024 * 1024)))


# ----------------------------------------------------------------------------------
# Probe: is pipeline_mode=pl.Buffered(1) (single-buffered resident inputs) supported?
# ----------------------------------------------------------------------------------
_BUFFERED_ONE_OK = None


def _probe_kernel(x_ref, w_ref, o_ref):
    o_ref[...] = x_ref[...] + w_ref[...]


def _single_buffer_supported():
    global _BUFFERED_ONE_OK
    if _BUFFERED_ONE_OK is None:
        try:
            x = jnp.zeros((16, 128), jnp.float32)
            w = jnp.ones((8, 128), jnp.float32)
            out = pl.pallas_call(
                _probe_kernel,
                out_shape=jax.ShapeDtypeStruct((16, 128), jnp.float32),
                grid=(2,),
                in_specs=[
                    pl.BlockSpec((8, 128), lambda i: (i, 0)),
                    pl.BlockSpec((8, 128), lambda i: (0, 0),
                                 pipeline_mode=pl.Buffered(1)),
                ],
                out_specs=pl.BlockSpec((8, 128), lambda i: (i, 0)),
            )(x, w)
            jax.block_until_ready(out)
            _BUFFERED_ONE_OK = True
        except Exception:
            _BUFFERED_ONE_OK = False
    return _BUFFERED_ONE_OK


# ----------------------------------------------------------------------------------
# Kernel 1: LSTM recurrence over one sequence chunk (sequential grid over chunks)
# ----------------------------------------------------------------------------------
def lstm_chunk_kernel(x_ref, wih_t_ref, whh_t_ref, b_ref, h0_ref, c0_ref,
                      hs_ref, hn_ref, cn_ref,
                      h_scr, c_scr, xg_scr, *, seq_len):
    s_idx = pl.program_id(0)
    T, Bp, Ep = x_ref.shape
    Hp = h0_ref.shape[-1]

    # Initialise the recurrent carry once, at the first chunk.
    @pl.when(s_idx == 0)
    def _init():
        h_scr[...] = h0_ref[...]
        c_scr[...] = c0_ref[...]

    # Input projection for the whole chunk: one large MXU matmul (bf16 x bf16 -> f32).
    x2d = x_ref[...].reshape(T * Bp, Ep)
    xg_scr[...] = (jnp.dot(x2d, wih_t_ref[...], preferred_element_type=jnp.float32)
                   + b_ref[...])

    whh_t = whh_t_ref[...]                               # (Hp, 4Hp) bf16, resident

    def step(t, carry):
        h, c = carry                                     # (Bp, Hp) f32
        row = pl.multiple_of(t * Bp, Bp)
        g = xg_scr[pl.ds(row, Bp), :] + jnp.dot(
            h.astype(jnp.bfloat16), whh_t, preferred_element_type=jnp.float32)
        # Gates repacked host-side to (i, f, o, g): one contiguous sigmoid slice,
        # one contiguous tanh slice; all elementwise math stays f32 (v5e-safe).
        sig = jax.nn.sigmoid(g[:, :3 * Hp])
        i_gate = sig[:, 0:Hp]
        f_gate = sig[:, Hp:2 * Hp]
        o_gate = sig[:, 2 * Hp:3 * Hp]
        g_gate = jnp.tanh(g[:, 3 * Hp:])
        c_new = f_gate * c + i_gate * g_gate
        h_new = o_gate * jnp.tanh(c_new)

        # Dense (Bp, Hp) store into the time-major output block, cast to bf16 once.
        hs_ref[t] = h_new.astype(hs_ref.dtype)

        # Capture hn/cn exactly at the last *real* timestep (sequence padded to Sp).
        @pl.when(s_idx * T + t == seq_len - 1)
        def _capture():
            hn_ref[...] = h_new
            cn_ref[...] = c_new

        return h_new, c_new

    h, c = lax.fori_loop(0, T, step, (h_scr[...], c_scr[...]), unroll=min(T, 8))
    h_scr[...] = h
    c_scr[...] = c


# ----------------------------------------------------------------------------------
# Kernel 2: output Linear, tiled over (sequence chunks, vocab tiles), fully parallel
# ----------------------------------------------------------------------------------
def proj_kernel(hs_ref, wlin_t_ref, blin_ref, scores_ref):
    Bb, T, Hp = hs_ref.shape
    TV = blin_ref.shape[-1]
    hs = hs_ref[...].reshape(Bb * T, Hp)                                  # free reshape
    scores = jnp.dot(hs, wlin_t_ref[...],
                     preferred_element_type=jnp.float32) + blin_ref[...]  # (Bb*T, TV)
    scores_ref[...] = scores.reshape(Bb, T, TV)


# ----------------------------------------------------------------------------------
# Wrapper
# ----------------------------------------------------------------------------------
def decoder_forward(input_ids, params, h0, c0, *, chunk=None):
    """input_ids: (B, S) int32; h0/c0: (1, B, H).
    Returns (raw_scores (B, S, V), hn (1, B, H), cn (1, B, H))."""
    B, S = input_ids.shape
    emb = params["emb"]          # (Voc, E)
    w_ih = params["w_ih"]        # (4H, E)   PyTorch gate order (i, f, g, o)
    w_hh = params["w_hh"]        # (4H, H)
    b_ih = params["b_ih"]        # (4H,)
    b_hh = params["b_hh"]        # (4H,)
    w_lin = params["w_lin"]      # (V, H)
    b_lin = params["b_lin"]      # (V,)
    E = emb.shape[1]
    H = w_hh.shape[1]
    V = w_lin.shape[0]

    # ---- hardware-tile padding (sublane=8, lane=128) ----
    Bp = _round_up(B, 8)
    Ep = _round_up(E, 128)
    Hp = _round_up(H, 128)

    vocab128 = _round_up(V, 128)
    if vocab128 <= 512:
        TV, Vp = vocab128, vocab128
    else:
        TV, Vp = 512, _round_up(V, 512)        # 512-wide lane-dense vocab tiles
    num_vt = Vp // TV

    vmem_limit = _vmem_limit_bytes()

    # ---- sequence chunk size: big enough to amortize W_lin streaming, VMEM-bounded ----
    if chunk is None:
        chunk = 64 if vmem_limit < 100 * 1024 * 1024 else 128
    T = max(8, min(_round_up(chunk, 8), _round_up(S, 8)))
    # keep the per-chunk f32 gate slab (T*Bp, 4Hp) within ~1/4 of the VMEM budget
    max_T = max(8, ((vmem_limit // 4) // (Bp * 4 * Hp * 4)) // 8 * 8)
    T = min(T, max_T)
    Sp = _round_up(S, T)
    num_chunks = Sp // T

    # ---- embedding lookup as a real gather (time-major, bf16, padded) ----
    ids_tm = jnp.transpose(input_ids).astype(jnp.int32)          # (S, B)
    ids_tm = jnp.pad(ids_tm, ((0, Sp - S), (0, Bp - B)))         # pad time + batch -> token 0
    x = emb.astype(jnp.bfloat16)[ids_tm]                         # (Sp, Bp, E)
    x = jnp.pad(x, ((0, 0), (0, 0), (0, Ep - E)))                # (Sp, Bp, Ep)

    # ---- repack LSTM gates (i,f,g,o) -> (i,f,o,g), pad per-gate blocks ----
    def repack(w, in_pad):
        i, f, g, o = jnp.split(w, 4, axis=0)
        blocks = [jnp.pad(blk, ((0, Hp - H), (0, in_pad - blk.shape[1])))
                  for blk in (i, f, o, g)]
        return jnp.concatenate(blocks, axis=0)

    wih_t = jnp.transpose(repack(w_ih, Ep)).astype(jnp.bfloat16)   # (Ep, 4Hp)
    whh_t = jnp.transpose(repack(w_hh, Hp)).astype(jnp.bfloat16)   # (Hp, 4Hp)

    b = b_ih + b_hh
    bi, bf_, bg, bo = jnp.split(b, 4)
    b_p = jnp.concatenate([jnp.pad(v, (0, Hp - H)) for v in (bi, bf_, bo, bg)])
    b_p = b_p.reshape(1, 4 * Hp).astype(jnp.float32)

    wlin_t = jnp.transpose(jnp.pad(w_lin, ((0, Vp - V), (0, Hp - H)))).astype(jnp.bfloat16)
    blin_p = jnp.pad(b_lin, (0, Vp - V)).reshape(1, Vp).astype(jnp.float32)

    h0_p = jnp.pad(h0[0], ((0, Bp - B), (0, Hp - H))).astype(jnp.float32)      # (Bp, Hp)
    c0_p = jnp.pad(c0[0], ((0, Bp - B), (0, Hp - H))).astype(jnp.float32)

    # ---- call 1: LSTM recurrence (sequential over chunks) ----
    single = _single_buffer_supported()

    def resident(shape, imap):
        if single:
            return pl.BlockSpec(shape, imap, pipeline_mode=pl.Buffered(1))
        return pl.BlockSpec(shape, imap)

    hs_tm, hn_p, cn_p = pl.pallas_call(
        functools.partial(lstm_chunk_kernel, seq_len=S),
        out_shape=(
            jax.ShapeDtypeStruct((Sp, Bp, Hp), jnp.bfloat16),   # time-major hidden states
            jax.ShapeDtypeStruct((Bp, Hp), jnp.float32),        # hn
            jax.ShapeDtypeStruct((Bp, Hp), jnp.float32),        # cn
        ),
        grid=(num_chunks,),
        in_specs=[
            pl.BlockSpec((T, Bp, Ep), lambda s: (s, 0, 0)),     # embedded input chunk
            resident((Ep, 4 * Hp), lambda s: (0, 0)),           # W_ih^T  (resident)
            resident((Hp, 4 * Hp), lambda s: (0, 0)),           # W_hh^T  (resident)
            resident((1, 4 * Hp), lambda s: (0, 0)),            # b_ih + b_hh
            resident((Bp, Hp), lambda s: (0, 0)),               # h0
            resident((Bp, Hp), lambda s: (0, 0)),               # c0
        ],
        out_specs=(
            pl.BlockSpec((T, Bp, Hp), lambda s: (s, 0, 0)),     # hs chunk (time-major)
            pl.BlockSpec((Bp, Hp), lambda s: (0, 0)),           # hn (resident)
            pl.BlockSpec((Bp, Hp), lambda s: (0, 0)),           # cn (resident)
        ),
        scratch_shapes=[
            pltpu.VMEM((Bp, Hp), jnp.float32),                  # persistent h carry
            pltpu.VMEM((Bp, Hp), jnp.float32),                  # persistent c carry
            pltpu.VMEM((T * Bp, 4 * Hp), jnp.float32),          # chunk gate pre-activations
        ],
        compiler_params=pltpu.CompilerParams(
            dimension_semantics=("arbitrary",),
            vmem_limit_bytes=vmem_limit,
        ),
    )(x, wih_t, whh_t, b_p, h0_p, c0_p)

    # Tiny bf16 transpose in XLA: (Sp, Bp, Hp) -> (B, Sp, Hp); drop padded batch rows.
    hs_bm = jnp.transpose(hs_tm, (1, 0, 2))[:B]

    # ---- call 2: output Linear, fully parallel grid (final dropout p=0.5 = identity in eval) ----
    scores_p = pl.pallas_call(
        proj_kernel,
        out_shape=jax.ShapeDtypeStruct((B, Sp, Vp), jnp.float32),   # batch-first, unpadded B
        grid=(num_chunks, num_vt),
        in_specs=[
            pl.BlockSpec((B, T, Hp), lambda s, v: (0, s, 0)),       # hidden-state chunk
            pl.BlockSpec((Hp, TV), lambda s, v: (0, v)),            # W_lin^T vocab tile
            pl.BlockSpec((1, TV), lambda s, v: (0, v)),             # b_lin vocab tile
        ],
        out_specs=pl.BlockSpec((B, T, TV), lambda s, v: (0, s, v)),
        compiler_params=pltpu.CompilerParams(
            dimension_semantics=("parallel", "parallel"),           # megacore on v7x
            vmem_limit_bytes=vmem_limit,
        ),
    )(hs_bm, wlin_t, blin_p)

    raw_scores = scores_p[:, :S, :V]
    hn = hn_p[:B, :H][None]
    cn = cn_p[:B, :H][None]
    return raw_scores, hn, cn


# ----------------------------------------------------------------------------------
# Pure-JAX f32 reference matching the PyTorch forward (eval mode)
# ----------------------------------------------------------------------------------
def decoder_reference(input_ids, params, h0, c0):
    emb = params["emb"][input_ids]                             # (B, S, E)
    H = params["w_hh"].shape[1]

    def step(carry, x_t):
        h, c = carry
        g = (x_t @ params["w_ih"].T + params["b_ih"]
             + h @ params["w_hh"].T + params["b_hh"])
        i = jax.nn.sigmoid(g[:, 0:H])
        f = jax.nn.sigmoid(g[:, H:2 * H])
        gg = jnp.tanh(g[:, 2 * H:3 * H])
        o = jax.nn.sigmoid(g[:, 3 * H:4 * H])
        c_new = f * c + i * gg
        h_new = o * jnp.tanh(c_new)
        return (h_new, c_new), h_new

    (hn, cn), hs = lax.scan(step, (h0[0], c0[0]), jnp.transpose(emb, (1, 0, 2)))
    outputs = jnp.transpose(hs, (1, 0, 2))                     # (B, S, H)
    raw_scores = outputs @ params["w_lin"].T + params["b_lin"]
    return raw_scores, hn[None], cn[None]


if __name__ == "__main__":
    # small, module-consistent shapes: multiple seq chunks (incl. padded last chunk)
    # and multiple vocab tiles.
    B, S = 2, 20         # batch, sequence length (S % chunk != 0 -> exercises padding)
    E = 32               # embedding_dim
    H = 32               # lstm hidden_dim
    VOCAB = 1000         # vocab_size (shared by embedding table and final linear)

    key = jax.random.PRNGKey(0)
    ks = jax.random.split(key, 10)
    scale = 0.1
    params = {
        "emb":   (scale * jax.random.normal(ks[0], (VOCAB, E))).astype(jnp.float32),
        "w_ih":  (scale * jax.random.normal(ks[1], (4 * H, E))).astype(jnp.float32),
        "w_hh":  (scale * jax.random.normal(ks[2], (4 * H, H))).astype(jnp.float32),
        "b_ih":  (scale * jax.random.normal(ks[3], (4 * H,))).astype(jnp.float32),
        "b_hh":  (scale * jax.random.normal(ks[4], (4 * H,))).astype(jnp.float32),
        "w_lin": (scale * jax.random.normal(ks[5], (VOCAB, H))).astype(jnp.float32),
        "b_lin": (scale * jax.random.normal(ks[6], (VOCAB,))).astype(jnp.float32),
    }
    input_ids = jax.random.randint(ks[7], (B, S), 0, VOCAB, dtype=jnp.int32)
    h0 = (scale * jax.random.normal(ks[8], (1, B, H))).astype(jnp.float32)
    c0 = (scale * jax.random.normal(ks[9], (1, B, H))).astype(jnp.float32)

    raw_scores, hn, cn = jax.block_until_ready(
        decoder_forward(input_ids, params, h0, c0, chunk=8))

    ref_scores, ref_hn, ref_cn = decoder_reference(input_ids, params, h0, c0)
    assert raw_scores.shape == (B, S, VOCAB)
    assert hn.shape == (1, B, H) and cn.shape == (1, B, H)
    # bf16 MXU weights / bf16 hidden states with f32 accumulation -> relaxed tolerance
    assert jnp.allclose(raw_scores, ref_scores, atol=5e-2, rtol=5e-2)
    assert jnp.allclose(hn, ref_hn, atol=5e-2, rtol=5e-2)
    assert jnp.allclose(cn, ref_cn, atol=5e-2, rtol=5e-2)

    print("KERNEL_OK")
</pallas_src>

<mosaic_0001>
module attributes {stable_mosaic.version = 11 : i64} {
  func.func @_probe_kernel(%arg0: i32, %arg1: memref<8x128xf32, #tpu.memory_space<vmem>>, %arg2: memref<8x128xf32, #tpu.memory_space<vmem>>, %arg3: memref<8x128xf32, #tpu.memory_space<vmem>>) attributes {dimension_semantics = [#tpu.dimension_semantics<arbitrary>], iteration_bounds = array<i64: 2>, scalar_prefetch = 0 : i64, scratch_operands = 0 : i64, tpu.core_type = #tpu.core_type<tc>, window_params = [{transform_indices = @transform_0, window_bounds = array<i64: 8, 128>}, {pipeline_mode = #tpu.pipeline_mode<synchronous>, transform_indices = @transform_1, window_bounds = array<i64: 8, 128>}, {transform_indices = @transform_2, window_bounds = array<i64: 8, 128>}]} {
    %c0 = arith.constant 0 : index
    %c0_0 = arith.constant 0 : index
    %0 = vector.load %arg1[%c0, %c0_0] : memref<8x128xf32, #tpu.memory_space<vmem>>, vector<8x128xf32>
    %c0_1 = arith.constant 0 : index
    %c0_2 = arith.constant 0 : index
    %1 = vector.load %arg2[%c0_1, %c0_2] : memref<8x128xf32, #tpu.memory_space<vmem>>, vector<8x128xf32>
    %2 = arith.addf %0, %1 : vector<8x128xf32>
    %c0_3 = arith.constant 0 : index
    %c0_4 = arith.constant 0 : index
    %3 = vector.load %arg3[%c0_3, %c0_4] : memref<8x128xf32, #tpu.memory_space<vmem>>, vector<8x128xf32>
    tpu.vector_store %arg3[%c0_3, %c0_4], %2 {strides = array<i32>} : memref<8x128xf32, #tpu.memory_space<vmem>>, vector<8x128xf32>,
    return
  }
  func.func @transform_0(%arg0: i32) -> (i32, i32) {
    %c0_i32 = arith.constant 0 : i32
    %c0_i32_0 = arith.constant 0 : i32
    return %arg0, %c0_i32 : i32, i32
  }
  func.func @transform_1(%arg0: i32) -> (i32, i32) {
    %c0_i32 = arith.constant 0 : i32
    %c0_i32_0 = arith.constant 0 : i32
    %c0_i32_1 = arith.constant 0 : i32
    return %c0_i32, %c0_i32_0 : i32, i32
  }
  func.func @transform_2(%arg0: i32) -> (i32, i32) {
    %c0_i32 = arith.constant 0 : i32
    %c0_i32_0 = arith.constant 0 : i32
    return %arg0, %c0_i32 : i32, i32
  }
}

module attributes {stable_mosaic.version = 11 : i64} {
  func.func @lstm_chunk_kernel(%arg0: i32, %arg1: memref<8x8x128xbf16, #tpu.memory_space<vmem>>, %arg2: memref<128x512xbf16, #tpu.memory_space<vmem>>, %arg3: memref<128x512xbf16, #tpu.memory_space<vmem>>, %arg4: memref<1x512xf32, #tpu.memory_space<vmem>>, %arg5: memref<8x128xf32, #tpu.memory_space<vmem>>, %arg6: memref<8x128xf32, #tpu.memory_space<vmem>>, %arg7: memref<8x8x128xbf16, #tpu.memory_space<vmem>>, %arg8: memref<8x128xf32, #tpu.memory_space<vmem>>, %arg9: memref<8x128xf32, #tpu.memory_space<vmem>>, %arg10: memref<8x128xf32, #tpu.memory_space<vmem>>, %arg11: memref<8x128xf32, #tpu.memory_space<vmem>>, %arg12: memref<64x512xf32, #tpu.memory_space<vmem>>) attributes {dimension_semantics = [#tpu.dimension_semantics<arbitrary>], iteration_bounds = array<i64: 3>, scalar_prefetch = 0 : i64, scratch_operands = 3 : i64, tpu.core_type = #tpu.core_type<tc>, window_params = [{transform_indices = @transform_0, window_bounds = array<i64: 8, 8, 128>}, {pipeline_mode = #tpu.pipeline_mode<synchronous>, transform_indices = @transform_1, window_bounds = array<i64: 128, 512>}, {pipeline_mode = #tpu.pipeline_mode<synchronous>, transform_indices = @transform_2, window_bounds = array<i64: 128, 512>}, {pipeline_mode = #tpu.pipeline_mode<synchronous>, transform_indices = @transform_3, window_bounds = array<i64: 1, 512>}, {pipeline_mode = #tpu.pipeline_mode<synchronous>, transform_indices = @transform_4, window_bounds = array<i64: 8, 128>}, {pipeline_mode = #tpu.pipeline_mode<synchronous>, transform_indices = @transform_5, window_bounds = array<i64: 8, 128>}, {transform_indices = @transform_6, window_bounds = array<i64: 8, 8, 128>}, {pipeline_mode = #tpu.pipeline_mode<synchronous>, transform_indices = @transform_7, window_bounds = array<i64: 8, 128>}, {pipeline_mode = #tpu.pipeline_mode<synchronous>, transform_indices = @transform_8, window_bounds = array<i64: 8, 128>}]} {
    %c0_i32 = arith.constant 0 : i32
    %0 = arith.cmpi eq, %arg0, %c0_i32 : i32
    %1 = arith.extui %0 : i1 to i32
    %c0_i32_0 = arith.constant 0 : i32
    %2 = arith.cmpi ne, %1, %c0_i32_0 : i32
    scf.if %2 {
      %c0_91 = arith.constant 0 : index
      %c0_92 = arith.constant 0 : index
      %280 = vector.load %arg5[%c0_91, %c0_92] : memref<8x128xf32, #tpu.memory_space<vmem>>, vector<8x128xf32>
      %c0_93 = arith.constant 0 : index
      %c0_94 = arith.constant 0 : index
      %281 = vector.load %arg10[%c0_93, %c0_94] : memref<8x128xf32, #tpu.memory_space<vmem>>, vector<8x128xf32>
      tpu.vector_store %arg10[%c0_93, %c0_94], %280 {strides = array<i32>} : memref<8x128xf32, #tpu.memory_space<vmem>>, vector<8x128xf32>,
      %c0_95 = arith.constant 0 : index
      %c0_96 = arith.constant 0 : index
      %282 = vector.load %arg6[%c0_95, %c0_96] : memref<8x128xf32, #tpu.memory_space<vmem>>, vector<8x128xf32>
      %c0_97 = arith.constant 0 : index
      %c0_98 = arith.constant 0 : index
      %283 = vector.load %arg11[%c0_97, %c0_98] : memref<8x128xf32, #tpu.memory_space<vmem>>, vector<8x128xf32>
      tpu.vector_store %arg11[%c0_97, %c0_98], %282 {strides = array<i32>} : memref<8x128xf32, #tpu.memory_space<vmem>>, vector<8x128xf32>,
    } else {
    }
    %c0 = arith.constant 0 : index
    %c0_1 = arith.constant 0 : index
    %c0_2 = arith.constant 0 : index
    %3 = vector.load %arg1[%c0, %c0_1, %c0_2] : memref<8x8x128xbf16, #tpu.memory_space<vmem>>, vector<8x8x128xbf16>
    %4 = vector.shape_cast %3 : vector<8x8x128xbf16> to vector<64x128xbf16>
    %c0_3 = arith.constant 0 : index
    %c0_4 = arith.constant 0 : index
    %5 = vector.load %arg2[%c0_3, %c0_4] : memref<128x512xbf16, #tpu.memory_space<vmem>>, vector<128x512xbf16>
    %cst = arith.constant dense<0.000000e+00> : vector<64x512xf32>
    %6 = tpu.matmul %4, %5, %cst {dimension_numbers = #tpu.dot_dimension_numbers<[1], [0], [0], [1], [0, 0, 1, 1], [], []>} : vector<64x128xbf16>, vector<128x512xbf16>, vector<64x512xf32> -> vector<64x512xf32>
    %c0_5 = arith.constant 0 : index
    %c0_6 = arith.constant 0 : index
    %7 = vector.load %arg4[%c0_5, %c0_6] : memref<1x512xf32, #tpu.memory_space<vmem>>, vector<1x512xf32>
    %8 = vector.broadcast %7 : vector<1x512xf32> to vector<64x512xf32>
    %9 = arith.addf %6, %8 : vector<64x512xf32>
    %c0_7 = arith.constant 0 : index
    %c0_8 = arith.constant 0 : index
    %10 = vector.load %arg12[%c0_7, %c0_8] : memref<64x512xf32, #tpu.memory_space<vmem>>, vector<64x512xf32>
    tpu.vector_store %arg12[%c0_7, %c0_8], %9 {strides = array<i32>} : memref<64x512xf32, #tpu.memory_space<vmem>>, vector<64x512xf32>,
    %c0_9 = arith.constant 0 : index
    %c0_10 = arith.constant 0 : index
    %11 = vector.load %arg3[%c0_9, %c0_10] : memref<128x512xbf16, #tpu.memory_space<vmem>>, vector<128x512xbf16>
    %c0_11 = arith.constant 0 : index
    %c0_12 = arith.constant 0 : index
    %12 = vector.load %arg10[%c0_11, %c0_12] : memref<8x128xf32, #tpu.memory_space<vmem>>, vector<8x128xf32>
    %c0_13 = arith.constant 0 : index
    %c0_14 = arith.constant 0 : index
    %13 = vector.load %arg11[%c0_13, %c0_14] : memref<8x128xf32, #tpu.memory_space<vmem>>, vector<8x128xf32>
    %c0_i32_15 = arith.constant 0 : i32
    %c8_i32 = arith.constant 8 : i32
    %14 = arith.muli %c0_i32_15, %c8_i32 : i32
    %15 = tpu.assume_multiple %14, 8 : i32
    %16 = arith.index_cast %15 : i32 to index
    %c0_16 = arith.constant 0 : index
    %17 = vector.load %arg12[%16, %c0_16] : memref<64x512xf32, #tpu.memory_space<vmem>>, vector<8x512xf32>
    %18 = arith.truncf %12 : vector<8x128xf32> to vector<8x128xbf16>
    %cst_17 = arith.constant dense<0.000000e+00> : vector<8x512xf32>
    %19 = tpu.matmul %18, %11, %cst_17 {dimension_numbers = #tpu.dot_dimension_numbers<[1], [0], [0], [1], [0, 0, 1, 1], [], []>} : vector<8x128xbf16>, vector<128x512xbf16>, vector<8x512xf32> -> vector<8x512xf32>
    %20 = arith.addf %17, %19 : vector<8x512xf32>
    %21 = vector.extract_strided_slice %20 {offsets = [0, 0], sizes = [8, 384], strides = [1, 1]} : vector<8x512xf32> to vector<8x384xf32>
    %22 = arith.negf %21 : vector<8x384xf32>
    %23 = math.exp %22 : vector<8x384xf32>
    %cst_18 = arith.constant 1.000000e+00 : f32
    %24 = vector.broadcast %cst_18 : f32 to vector<8x384xf32>
    %25 = arith.addf %24, %23 : vector<8x384xf32>
    %26 = arith.divf %24, %25 : vector<8x384xf32>
    %27 = vector.extract_strided_slice %26 {offsets = [0, 0], sizes = [8, 128], strides = [1, 1]} : vector<8x384xf32> to vector<8x128xf32>
    %28 = vector.extract_strided_slice %26 {offsets = [0, 128], sizes = [8, 128], strides = [1, 1]} : vector<8x384xf32> to vector<8x128xf32>
    %29 = vector.extract_strided_slice %26 {offsets = [0, 256], sizes = [8, 128], strides = [1, 1]} : vector<8x384xf32> to vector<8x128xf32>
    %30 = vector.extract_strided_slice %20 {offsets = [0, 384], sizes = [8, 128], strides = [1, 1]} : vector<8x512xf32> to vector<8x128xf32>
    %31 = math.tanh %30 : vector<8x128xf32>
    %32 = arith.mulf %28, %13 : vector<8x128xf32>
    %33 = arith.mulf %27, %31 : vector<8x128xf32>
    %34 = arith.addf %32, %33 : vector<8x128xf32>
    %35 = math.tanh %34 : vector<8x128xf32>
    %36 = arith.mulf %29, %35 : vector<8x128xf32>
    %37 = arith.truncf %36 : vector<8x128xf32> to vector<8x128xbf16>
    %38 = arith.index_cast %c0_i32_15 : i32 to index
    %c0_19 = arith.constant 0 : index
    %c0_20 = arith.constant 0 : index
    %39 = vector.load %arg7[%38, %c0_19, %c0_20] : memref<8x8x128xbf16, #tpu.memory_space<vmem>>, vector<1x8x128xbf16>
    %40 = vector.shape_cast %39 : vector<1x8x128xbf16> to vector<8x128xbf16>
    %41 = vector.shape_cast %37 : vector<8x128xbf16> to vector<1x8x128xbf16>
    tpu.vector_store %arg7[%38, %c0_19, %c0_20], %41 {strides = array<i32>} : memref<8x8x128xbf16, #tpu.memory_space<vmem>>, vector<1x8x128xbf16>,
    %c8_i32_21 = arith.constant 8 : i32
    %42 = arith.muli %arg0, %c8_i32_21 : i32
    %43 = arith.addi %42, %c0_i32_15 : i32
    %c19_i32 = arith.constant 19 : i32
    %44 = arith.cmpi eq, %43, %c19_i32 : i32
    %45 = arith.extui %44 : i1 to i32
    %c0_i32_22 = arith.constant 0 : i32
    %46 = arith.cmpi ne, %45, %c0_i32_22 : i32
    scf.if %46 {
      %c0_91 = arith.constant 0 : index
      %c0_92 = arith.constant 0 : index
      %280 = vector.load %arg8[%c0_91, %c0_92] : memref<8x128xf32, #tpu.memory_space<vmem>>, vector<8x128xf32>
      tpu.vector_store %arg8[%c0_91, %c0_92], %36 {strides = array<i32>} : memref<8x128xf32, #tpu.memory_space<vmem>>, vector<8x128xf32>,
      %c0_93 = arith.constant 0 : index
      %c0_94 = arith.constant 0 : index
      %281 = vector.load %arg9[%c0_93, %c0_94] : memref<8x128xf32, #tpu.memory_space<vmem>>, vector<8x128xf32>
      tpu.vector_store %arg9[%c0_93, %c0_94], %34 {strides = array<i32>} : memref<8x128xf32, #tpu.memory_space<vmem>>, vector<8x128xf32>,
    } else {
    }
    %c1_i32 = arith.constant 1 : i32
    %c8_i32_23 = arith.constant 8 : i32
    %47 = arith.muli %c1_i32, %c8_i32_23 : i32
    %48 = tpu.assume_multiple %47, 8 : i32
    %49 = arith.index_cast %48 : i32 to index
    %c0_24 = arith.constant 0 : index
    %50 = vector.load %arg12[%49, %c0_24] : memref<64x512xf32, #tpu.memory_space<vmem>>, vector<8x512xf32>
    %51 = arith.truncf %36 : vector<8x128xf32> to vector<8x128xbf16>
    %cst_25 = arith.constant dense<0.000000e+00> : vector<8x512xf32>
    %52 = tpu.matmul %51, %11, %cst_25 {dimension_numbers = #tpu.dot_dimension_numbers<[1], [0], [0], [1], [0, 0, 1, 1], [], []>} : vector<8x128xbf16>, vector<128x512xbf16>, vector<8x512xf32> -> vector<8x512xf32>
    %53 = arith.addf %50, %52 : vector<8x512xf32>
    %54 = vector.extract_strided_slice %53 {offsets = [0, 0], sizes = [8, 384], strides = [1, 1]} : vector<8x512xf32> to vector<8x384xf32>
    %55 = arith.negf %54 : vector<8x384xf32>
    %56 = math.exp %55 : vector<8x384xf32>
    %cst_26 = arith.constant 1.000000e+00 : f32
    %57 = vector.broadcast %cst_26 : f32 to vector<8x384xf32>
    %58 = arith.addf %57, %56 : vector<8x384xf32>
    %59 = arith.divf %57, %58 : vector<8x384xf32>
    %60 = vector.extract_strided_slice %59 {offsets = [0, 0], sizes = [8, 128], strides = [1, 1]} : vector<8x384xf32> to vector<8x128xf32>
    %61 = vector.extract_strided_slice %59 {offsets = [0, 128], sizes = [8, 128], strides = [1, 1]} : vector<8x384xf32> to vector<8x128xf32>
    %62 = vector.extract_strided_slice %59 {offsets = [0, 256], sizes = [8, 128], strides = [1, 1]} : vector<8x384xf32> to vector<8x128xf32>
    %63 = vector.extract_strided_slice %53 {offsets = [0, 384], sizes = [8, 128], strides = [1, 1]} : vector<8x512xf32> to vector<8x128xf32>
    %64 = math.tanh %63 : vector<8x128xf32>
    %65 = arith.mulf %61, %34 : vector<8x128xf32>
    %66 = arith.mulf %60, %64 : vector<8x128xf32>
    %67 = arith.addf %65, %66 : vector<8x128xf32>
    %68 = math.tanh %67 : vector<8x128xf32>
    %69 = arith.mulf %62, %68 : vector<8x128xf32>
    %70 = arith.truncf %69 : vector<8x128xf32> to vector<8x128xbf16>
    %71 = arith.index_cast %c1_i32 : i32 to index
    %c0_27 = arith.constant 0 : index
    %c0_28 = arith.constant 0 : index
    %72 = vector.load %arg7[%71, %c0_27, %c0_28] : memref<8x8x128xbf16, #tpu.memory_space<vmem>>, vector<1x8x128xbf16>
    %73 = vector.shape_cast %72 : vector<1x8x128xbf16> to vector<8x128xbf16>
    %74 = vector.shape_cast %70 : vector<8x128xbf16> to vector<1x8x128xbf16>
    tpu.vector_store %arg7[%71, %c0_27, %c0_28], %74 {strides = array<i32>} : memref<8x8x128xbf16, #tpu.memory_space<vmem>>, vector<1x8x128xbf16>,
    %c8_i32_29 = arith.constant 8 : i32
    %75 = arith.muli %arg0, %c8_i32_29 : i32
    %76 = arith.addi %75, %c1_i32 : i32
    %c19_i32_30 = arith.constant 19 : i32
    %77 = arith.cmpi eq, %76, %c19_i32_30 : i32
    %78 = arith.extui %77 : i1 to i32
    %c0_i32_31 = arith.constant 0 : i32
    %79 = arith.cmpi ne, %78, %c0_i32_31 : i32
    scf.if %79 {
      %c0_91 = arith.constant 0 : index
      %c0_92 = arith.constant 0 : index
      %280 = vector.load %arg8[%c0_91, %c0_92] : memref<8x128xf32, #tpu.memory_space<vmem>>, vector<8x128xf32>
      tpu.vector_store %arg8[%c0_91, %c0_92], %69 {strides = array<i32>} : memref<8x128xf32, #tpu.memory_space<vmem>>, vector<8x128xf32>,
      %c0_93 = arith.constant 0 : index
      %c0_94 = arith.constant 0 : index
      %281 = vector.load %arg9[%c0_93, %c0_94] : memref<8x128xf32, #tpu.memory_space<vmem>>, vector<8x128xf32>
      tpu.vector_store %arg9[%c0_93, %c0_94], %67 {strides = array<i32>} : memref<8x128xf32, #tpu.memory_space<vmem>>, vector<8x128xf32>,
    } else {
    }
    %c2_i32 = arith.constant 2 : i32
    %c8_i32_32 = arith.constant 8 : i32
    %80 = arith.muli %c2_i32, %c8_i32_32 : i32
    %81 = tpu.assume_multiple %80, 8 : i32
    %82 = arith.index_cast %81 : i32 to index
    %c0_33 = arith.constant 0 : index
    %83 = vector.load %arg12[%82, %c0_33] : memref<64x512xf32, #tpu.memory_space<vmem>>, vector<8x512xf32>
    %84 = arith.truncf %69 : vector<8x128xf32> to vector<8x128xbf16>
    %cst_34 = arith.constant dense<0.000000e+00> : vector<8x512xf32>
    %85 = tpu.matmul %84, %11, %cst_34 {dimension_numbers = #tpu.dot_dimension_numbers<[1], [0], [0], [1], [0, 0, 1, 1], [], []>} : vector<8x128xbf16>, vector<128x512xbf16>, vector<8x512xf32> -> vector<8x512xf32>
    %86 = arith.addf %83, %85 : vector<8x512xf32>
    %87 = vector.extract_strided_slice %86 {offsets = [0, 0], sizes = [8, 384], strides = [1, 1]} : vector<8x512xf32> to vector<8x384xf32>
    %88 = arith.negf %87 : vector<8x384xf32>
    %89 = math.exp %88 : vector<8x384xf32>
    %cst_35 = arith.constant 1.000000e+00 : f32
    %90 = vector.broadcast %cst_35 : f32 to vector<8x384xf32>
    %91 = arith.addf %90, %89 : vector<8x384xf32>
    %92 = arith.divf %90, %91 : vector<8x384xf32>
    %93 = vector.extract_strided_slice %92 {offsets = [0, 0], sizes = [8, 128], strides = [1, 1]} : vector<8x384xf32> to vector<8x128xf32>
    %94 = vector.extract_strided_slice %92 {offsets = [0, 128], sizes = [8, 128], strides = [1, 1]} : vector<8x384xf32> to vector<8x128xf32>
    %95 = vector.extract_strided_slice %92 {offsets = [0, 256], sizes = [8, 128], strides = [1, 1]} : vector<8x384xf32> to vector<8x128xf32>
    %96 = vector.extract_strided_slice %86 {offsets = [0, 384], sizes = [8, 128], strides = [1, 1]} : vector<8x512xf32> to vector<8x128xf32>
    %97 = math.tanh %96 : vector<8x128xf32>
    %98 = arith.mulf %94, %67 : vector<8x128xf32>
    %99 = arith.mulf %93, %97 : vector<8x128xf32>
    %100 = arith.addf %98, %99 : vector<8x128xf32>
    %101 = math.tanh %100 : vector<8x128xf32>
    %102 = arith.mulf %95, %101 : vector<8x128xf32>
    %103 = arith.truncf %102 : vector<8x128xf32> to vector<8x128xbf16>
    %104 = arith.index_cast %c2_i32 : i32 to index
    %c0_36 = arith.constant 0 : index
    %c0_37 = arith.constant 0 : index
    %105 = vector.load %arg7[%104, %c0_36, %c0_37] : memref<8x8x128xbf16, #tpu.memory_space<vmem>>, vector<1x8x128xbf16>
    %106 = vector.shape_cast %105 : vector<1x8x128xbf16> to vector<8x128xbf16>
    %107 = vector.shape_cast %103 : vector<8x128xbf16> to vector<1x8x128xbf16>
    tpu.vector_store %arg7[%104, %c0_36, %c0_37], %107 {strides = array<i32>} : memref<8x8x128xbf16, #tpu.memory_space<vmem>>, vector<1x8x128xbf16>,
    %c8_i32_38 = arith.constant 8 : i32
    %108 = arith.muli %arg0, %c8_i32_38 : i32
    %109 = arith.addi %108, %c2_i32 : i32
    %c19_i32_39 = arith.constant 19 : i32
    %110 = arith.cmpi eq, %109, %c19_i32_39 : i32
    %111 = arith.extui %110 : i1 to i32
    %c0_i32_40 = arith.constant 0 : i32
    %112 = arith.cmpi ne, %111, %c0_i32_40 : i32
    scf.if %112 {
      %c0_91 = arith.constant 0 : index
      %c0_92 = arith.constant 0 : index
      %280 = vector.load %arg8[%c0_91, %c0_92] : memref<8x128xf32, #tpu.memory_space<vmem>>, vector<8x128xf32>
      tpu.vector_store %arg8[%c0_91, %c0_92], %102 {strides = array<i32>} : memref<8x128xf32, #tpu.memory_space<vmem>>, vector<8x128xf32>,
      %c0_93 = arith.constant 0 : index
      %c0_94 = arith.constant 0 : index
      %281 = vector.load %arg9[%c0_93, %c0_94] : memref<8x128xf32, #tpu.memory_space<vmem>>, vector<8x128xf32>
      tpu.vector_store %arg9[%c0_93, %c0_94], %100 {strides = array<i32>} : memref<8x128xf32, #tpu.memory_space<vmem>>, vector<8x128xf32>,
    } else {
    }
    %c3_i32 = arith.constant 3 : i32
    %c8_i32_41 = arith.constant 8 : i32
    %113 = arith.muli %c3_i32, %c8_i32_41 : i32
    %114 = tpu.assume_multiple %113, 8 : i32
    %115 = arith.index_cast %114 : i32 to index
    %c0_42 = arith.constant 0 : index
    %116 = vector.load %arg12[%115, %c0_42] : memref<64x512xf32, #tpu.memory_space<vmem>>, vector<8x512xf32>
    %117 = arith.truncf %102 : vector<8x128xf32> to vector<8x128xbf16>
    %cst_43 = arith.constant dense<0.000000e+00> : vector<8x512xf32>
    %118 = tpu.matmul %117, %11, %cst_43 {dimension_numbers = #tpu.dot_dimension_numbers<[1], [0], [0], [1], [0, 0, 1, 1], [], []>} : vector<8x128xbf16>, vector<128x512xbf16>, vector<8x512xf32> -> vector<8x512xf32>
    %119 = arith.addf %116, %118 : vector<8x512xf32>
    %120 = vector.extract_strided_slice %119 {offsets = [0, 0], sizes = [8, 384], strides = [1, 1]} : vector<8x512xf32> to vector<8x384xf32>
    %121 = arith.negf %120 : vector<8x384xf32>
    %122 = math.exp %121 : vector<8x384xf32>
    %cst_44 = arith.constant 1.000000e+00 : f32
    %123 = vector.broadcast %cst_44 : f32 to vector<8x384xf32>
    %124 = arith.addf %123, %122 : vector<8x384xf32>
    %125 = arith.divf %123, %124 : vector<8x384xf32>
    %126 = vector.extract_strided_slice %125 {offsets = [0, 0], sizes = [8, 128], strides = [1, 1]} : vector<8x384xf32> to vector<8x128xf32>
    %127 = vector.extract_strided_slice %125 {offsets = [0, 128], sizes = [8, 128], strides = [1, 1]} : vector<8x384xf32> to vector<8x128xf32>
    %128 = vector.extract_strided_slice %125 {offsets = [0, 256], sizes = [8, 128], strides = [1, 1]} : vector<8x384xf32> to vector<8x128xf32>
    %129 = vector.extract_strided_slice %119 {offsets = [0, 384], sizes = [8, 128], strides = [1, 1]} : vector<8x512xf32> to vector<8x128xf32>
    %130 = math.tanh %129 : vector<8x128xf32>
    %131 = arith.mulf %127, %100 : vector<8x128xf32>
    %132 = arith.mulf %126, %130 : vector<8x128xf32>
    %133 = arith.addf %131, %132 : vector<8x128xf32>
    %134 = math.tanh %133 : vector<8x128xf32>
    %135 = arith.mulf %128, %134 : vector<8x128xf32>
    %136 = arith.truncf %135 : vector<8x128xf32> to vector<8x128xbf16>
    %137 = arith.index_cast %c3_i32 : i32 to index
    %c0_45 = arith.constant 0 : index
    %c0_46 = arith.constant 0 : index
    %138 = vector.load %arg7[%137, %c0_45, %c0_46] : memref<8x8x128xbf16, #tpu.memory_space<vmem>>, vector<1x8x128xbf16>
    %139 = vector.shape_cast %138 : vector<1x8x128xbf16> to vector<8x128xbf16>
    %140 = vector.shape_cast %136 : vector<8x128xbf16> to vector<1x8x128xbf16>
    tpu.vector_store %arg7[%137, %c0_45, %c0_46], %140 {strides = array<i32>} : memref<8x8x128xbf16, #tpu.memory_space<vmem>>, vector<1x8x128xbf16>,
    %c8_i32_47 = arith.constant 8 : i32
    %141 = arith.muli %arg0, %c8_i32_47 : i32
    %142 = arith.addi %141, %c3_i32 : i32
    %c19_i32_48 = arith.constant 19 : i32
    %143 = arith.cmpi eq, %142, %c19_i32_48 : i32
    %144 = arith.extui %143 : i1 to i32
    %c0_i32_49 = arith.constant 0 : i32
    %145 = arith.cmpi ne, %144, %c0_i32_49 : i32
    scf.if %145 {
      %c0_91 = arith.constant 0 : index
      %c0_92 = arith.constant 0 : index
      %280 = vector.load %arg8[%c0_91, %c0_92] : memref<8x128xf32, #tpu.memory_space<vmem>>, vector<8x128xf32>
      tpu.vector_store %arg8[%c0_91, %c0_92], %135 {strides = array<i32>} : memref<8x128xf32, #tpu.memory_space<vmem>>, vector<8x128xf32>,
      %c0_93 = arith.constant 0 : index
      %c0_94 = arith.constant 0 : index
      %281 = vector.load %arg9[%c0_93, %c0_94] : memref<8x128xf32, #tpu.memory_space<vmem>>, vector<8x128xf32>
      tpu.vector_store %arg9[%c0_93, %c0_94], %133 {strides = array<i32>} : memref<8x128xf32, #tpu.memory_space<vmem>>, vector<8x128xf32>,
    } else {
    }
    %c4_i32 = arith.constant 4 : i32
    %c8_i32_50 = arith.constant 8 : i32
    %146 = arith.muli %c4_i32, %c8_i32_50 : i32
    %147 = tpu.assume_multiple %146, 8 : i32
    %148 = arith.index_cast %147 : i32 to index
    %c0_51 = arith.constant 0 : index
    %149 = vector.load %arg12[%148, %c0_51] : memref<64x512xf32, #tpu.memory_space<vmem>>, vector<8x512xf32>
    %150 = arith.truncf %135 : vector<8x128xf32> to vector<8x128xbf16>
    %cst_52 = arith.constant dense<0.000000e+00> : vector<8x512xf32>
    %151 = tpu.matmul %150, %11, %cst_52 {dimension_numbers = #tpu.dot_dimension_numbers<[1], [0], [0], [1], [0, 0, 1, 1], [], []>} : vector<8x128xbf16>, vector<128x512xbf16>, vector<8x512xf32> -> vector<8x512xf32>
    %152 = arith.addf %149, %151 : vector<8x512xf32>
    %153 = vector.extract_strided_slice %152 {offsets = [0, 0], sizes = [8, 384], strides = [1, 1]} : vector<8x512xf32> to vector<8x384xf32>
    %154 = arith.negf %153 : vector<8x384xf32>
    %155 = math.exp %154 : vector<8x384xf32>
    %cst_53 = arith.constant 1.000000e+00 : f32
    %156 = vector.broadcast %cst_53 : f32 to vector<8x384xf32>
    %157 = arith.addf %156, %155 : vector<8x384xf32>
    %158 = arith.divf %156, %157 : vector<8x384xf32>
    %159 = vector.extract_strided_slice %158 {offsets = [0, 0], sizes = [8, 128], strides = [1, 1]} : vector<8x384xf32> to vector<8x128xf32>
    %160 = vector.extract_strided_slice %158 {offsets = [0, 128], sizes = [8, 128], strides = [1, 1]} : vector<8x384xf32> to vector<8x128xf32>
    %161 = vector.extract_strided_slice %158 {offsets = [0, 256], sizes = [8, 128], strides = [1, 1]} : vector<8x384xf32> to vector<8x128xf32>
    %162 = vector.extract_strided_slice %152 {offsets = [0, 384], sizes = [8, 128], strides = [1, 1]} : vector<8x512xf32> to vector<8x128xf32>
    %163 = math.tanh %162 : vector<8x128xf32>
    %164 = arith.mulf %160, %133 : vector<8x128xf32>
    %165 = arith.mulf %159, %163 : vector<8x128xf32>
    %166 = arith.addf %164, %165 : vector<8x128xf32>
    %167 = math.tanh %166 : vector<8x128xf32>
    %168 = arith.mulf %161, %167 : vector<8x128xf32>
    %169 = arith.truncf %168 : vector<8x128xf32> to vector<8x128xbf16>
    %170 = arith.index_cast %c4_i32 : i32 to index
    %c0_54 = arith.constant 0 : index
    %c0_55 = arith.constant 0 : index
    %171 = vector.load %arg7[%170, %c0_54, %c0_55] : memref<8x8x128xbf16, #tpu.memory_space<vmem>>, vector<1x8x128xbf16>
    %172 = vector.shape_cast %171 : vector<1x8x128xbf16> to vector<8x128xbf16>
    %173 = vector.shape_cast %169 : vector<8x128xbf16> to vector<1x8x128xbf16>
    tpu.vector_store %arg7[%170, %c0_54, %c0_55], %173 {strides = array<i32>} : memref<8x8x128xbf16, #tpu.memory_space<vmem>>, vector<1x8x128xbf16>,
    %c8_i32_56 = arith.constant 8 : i32
    %174 = arith.muli %arg0, %c8_i32_56 : i32
    %175 = arith.addi %174, %c4_i32 : i32
    %c19_i32_57 = arith.constant 19 : i32
    %176 = arith.cmpi eq, %175, %c19_i32_57 : i32
    %177 = arith.extui %176 : i1 to i32
    %c0_i32_58 = arith.constant 0 : i32
    %178 = arith.cmpi ne, %177, %c0_i32_58 : i32
    scf.if %178 {
      %c0_91 = arith.constant 0 : index
      %c0_92 = arith.constant 0 : index
      %280 = vector.load %arg8[%c0_91, %c0_92] : memref<8x128xf32, #tpu.memory_space<vmem>>, vector<8x128xf32>
      tpu.vector_store %arg8[%c0_91, %c0_92], %168 {strides = array<i32>} : memref<8x128xf32, #tpu.memory_space<vmem>>, vector<8x128xf32>,
      %c0_93 = arith.constant 0 : index
      %c0_94 = arith.constant 0 : index
      %281 = vector.load %arg9[%c0_93, %c0_94] : memref<8x128xf32, #tpu.memory_space<vmem>>, vector<8x128xf32>
      tpu.vector_store %arg9[%c0_93, %c0_94], %166 {strides = array<i32>} : memref<8x128xf32, #tpu.memory_space<vmem>>, vector<8x128xf32>,
    } else {
    }
    %c5_i32 = arith.constant 5 : i32
    %c8_i32_59 = arith.constant 8 : i32
    %179 = arith.muli %c5_i32, %c8_i32_59 : i32
    %180 = tpu.assume_multiple %179, 8 : i32
    %181 = arith.index_cast %180 : i32 to index
    %c0_60 = arith.constant 0 : index
    %182 = vector.load %arg12[%181, %c0_60] : memref<64x512xf32, #tpu.memory_space<vmem>>, vector<8x512xf32>
    %183 = arith.truncf %168 : vector<8x128xf32> to vector<8x128xbf16>
    %cst_61 = arith.constant dense<0.000000e+00> : vector<8x512xf32>
    %184 = tpu.matmul %183, %11, %cst_61 {dimension_numbers = #tpu.dot_dimension_numbers<[1], [0], [0], [1], [0, 0, 1, 1], [], []>} : vector<8x128xbf16>, vector<128x512xbf16>, vector<8x512xf32> -> vector<8x512xf32>
    %185 = arith.addf %182, %184 : vector<8x512xf32>
    %186 = vector.extract_strided_slice %185 {offsets = [0, 0], sizes = [8, 384], strides = [1, 1]} : vector<8x512xf32> to vector<8x384xf32>
    %187 = arith.negf %186 : vector<8x384xf32>
    %188 = math.exp %187 : vector<8x384xf32>
    %cst_62 = arith.constant 1.000000e+00 : f32
    %189 = vector.broadcast %cst_62 : f32 to vector<8x384xf32>
    %190 = arith.addf %189, %188 : vector<8x384xf32>
    %191 = arith.divf %189, %190 : vector<8x384xf32>
    %192 = vector.extract_strided_slice %191 {offsets = [0, 0], sizes = [8, 128], strides = [1, 1]} : vector<8x384xf32> to vector<8x128xf32>
    %193 = vector.extract_strided_slice %191 {offsets = [0, 128], sizes = [8, 128], strides = [1, 1]} : vector<8x384xf32> to vector<8x128xf32>
    %194 = vector.extract_strided_slice %191 {offsets = [0, 256], sizes = [8, 128], strides = [1, 1]} : vector<8x384xf32> to vector<8x128xf32>
    %195 = vector.extract_strided_slice %185 {offsets = [0, 384], sizes = [8, 128], strides = [1, 1]} : vector<8x512xf32> to vector<8x128xf32>
    %196 = math.tanh %195 : vector<8x128xf32>
    %197 = arith.mulf %193, %166 : vector<8x128xf32>
    %198 = arith.mulf %192, %196 : vector<8x128xf32>
    %199 = arith.addf %197, %198 : vector<8x128xf32>
    %200 = math.tanh %199 : vector<8x128xf32>
    %201 = arith.mulf %194, %200 : vector<8x128xf32>
    %202 = arith.truncf %201 : vector<8x128xf32> to vector<8x128xbf16>
    %203 = arith.index_cast %c5_i32 : i32 to index
    %c0_63 = arith.constant 0 : index
    %c0_64 = arith.constant 0 : index
    %204 = vector.load %arg7[%203, %c0_63, %c0_64] : memref<8x8x128xbf16, #tpu.memory_space<vmem>>, vector<1x8x128xbf16>
    %205 = vector.shape_cast %204 : vector<1x8x128xbf16> to vector<8x128xbf16>
    %206 = vector.shape_cast %202 : vector<8x128xbf16> to vector<1x8x128xbf16>
    tpu.vector_store %arg7[%203, %c0_63, %c0_64], %206 {strides = array<i32>} : memref<8x8x128xbf16, #tpu.memory_space<vmem>>, vector<1x8x128xbf16>,
    %c8_i32_65 = arith.constant 8 : i32
    %207 = arith.muli %arg0, %c8_i32_65 : i32
    %208 = arith.addi %207, %c5_i32 : i32
    %c19_i32_66 = arith.constant 19 : i32
    %209 = arith.cmpi eq, %208, %c19_i32_66 : i32
    %210 = arith.extui %209 : i1 to i32
    %c0_i32_67 = arith.constant 0 : i32
    %211 = arith.cmpi ne, %210, %c0_i32_67 : i32
    scf.if %211 {
      %c0_91 = arith.constant 0 : index
      %c0_92 = arith.constant 0 : index
      %280 = vector.load %arg8[%c0_91, %c0_92] : memref<8x128xf32, #tpu.memory_space<vmem>>, vector<8x128xf32>
      tpu.vector_store %arg8[%c0_91, %c0_92], %201 {strides = array<i32>} : memref<8x128xf32, #tpu.memory_space<vmem>>, vector<8x128xf32>,
      %c0_93 = arith.constant 0 : index
      %c0_94 = arith.constant 0 : index
      %281 = vector.load %arg9[%c0_93, %c0_94] : memref<8x128xf32, #tpu.memory_space<vmem>>, vector<8x128xf32>
      tpu.vector_store %arg9[%c0_93, %c0_94], %199 {strides = array<i32>} : memref<8x128xf32, #tpu.memory_space<vmem>>, vector<8x128xf32>,
    } else {
    }
    %c6_i32 = arith.constant 6 : i32
    %c8_i32_68 = arith.constant 8 : i32
    %212 = arith.muli %c6_i32, %c8_i32_68 : i32
    %213 = tpu.assume_multiple %212, 8 : i32
    %214 = arith.index_cast %213 : i32 to index
    %c0_69 = arith.constant 0 : index
    %215 = vector.load %arg12[%214, %c0_69] : memref<64x512xf32, #tpu.memory_space<vmem>>, vector<8x512xf32>
    %216 = arith.truncf %201 : vector<8x128xf32> to vector<8x128xbf16>
    %cst_70 = arith.constant dense<0.000000e+00> : vector<8x512xf32>
    %217 = tpu.matmul %216, %11, %cst_70 {dimension_numbers = #tpu.dot_dimension_numbers<[1], [0], [0], [1], [0, 0, 1, 1], [], []>} : vector<8x128xbf16>, vector<128x512xbf16>, vector<8x512xf32> -> vector<8x512xf32>
    %218 = arith.addf %215, %217 : vector<8x512xf32>
    %219 = vector.extract_strided_slice %218 {offsets = [0, 0], sizes = [8, 384], strides = [1, 1]} : vector<8x512xf32> to vector<8x384xf32>
    %220 = arith.negf %219 : vector<8x384xf32>
    %221 = math.exp %220 : vector<8x384xf32>
    %cst_71 = arith.constant 1.000000e+00 : f32
    %222 = vector.broadcast %cst_71 : f32 to vector<8x384xf32>
    %223 = arith.addf %222, %221 : vector<8x384xf32>
    %224 = arith.divf %222, %223 : vector<8x384xf32>
    %225 = vector.extract_strided_slice %224 {offsets = [0, 0], sizes = [8, 128], strides = [1, 1]} : vector<8x384xf32> to vector<8x128xf32>
    %226 = vector.extract_strided_slice %224 {offsets = [0, 128], sizes = [8, 128], strides = [1, 1]} : vector<8x384xf32> to vector<8x128xf32>
    %227 = vector.extract_strided_slice %224 {offsets = [0, 256], sizes = [8, 128], strides = [1, 1]} : vector<8x384xf32> to vector<8x128xf32>
    %228 = vector.extract_strided_slice %218 {offsets = [0, 384], sizes = [8, 128], strides = [1, 1]} : vector<8x512xf32> to vector<8x128xf32>
    %229 = math.tanh %228 : vector<8x128xf32>
    %230 = arith.mulf %226, %199 : vector<8x128xf32>
    %231 = arith.mulf %225, %229 : vector<8x128xf32>
    %232 = arith.addf %230, %231 : vector<8x128xf32>
    %233 = math.tanh %232 : vector<8x128xf32>
    %234 = arith.mulf %227, %233 : vector<8x128xf32>
    %235 = arith.truncf %234 : vector<8x128xf32> to vector<8x128xbf16>
    %236 = arith.index_cast %c6_i32 : i32 to index
    %c0_72 = arith.constant 0 : index
    %c0_73 = arith.constant 0 : index
    %237 = vector.load %arg7[%236, %c0_72, %c0_73] : memref<8x8x128xbf16, #tpu.memory_space<vmem>>, vector<1x8x128xbf16>
    %238 = vector.shape_cast %237 : vector<1x8x128xbf16> to vector<8x128xbf16>
    %239 = vector.shape_cast %235 : vector<8x128xbf16> to vector<1x8x128xbf16>
    tpu.vector_store %arg7[%236, %c0_72, %c0_73], %239 {strides = array<i32>} : memref<8x8x128xbf16, #tpu.memory_space<vmem>>, vector<1x8x128xbf16>,
    %c8_i32_74 = arith.constant 8 : i32
    %240 = arith.muli %arg0, %c8_i32_74 : i32
    %241 = arith.addi %240, %c6_i32 : i32
    %c19_i32_75 = arith.constant 19 : i32
    %242 = arith.cmpi eq, %241, %c19_i32_75 : i32
    %243 = arith.extui %242 : i1 to i32
    %c0_i32_76 = arith.constant 0 : i32
    %244 = arith.cmpi ne, %243, %c0_i32_76 : i32
    scf.if %244 {
      %c0_91 = arith.constant 0 : index
      %c0_92 = arith.constant 0 : index
      %280 = vector.load %arg8[%c0_91, %c0_92] : memref<8x128xf32, #tpu.memory_space<vmem>>, vector<8x128xf32>
      tpu.vector_store %arg8[%c0_91, %c0_92], %234 {strides = array<i32>} : memref<8x128xf32, #tpu.memory_space<vmem>>, vector<8x128xf32>,
      %c0_93 = arith.constant 0 : index
      %c0_94 = arith.constant 0 : index
      %281 = vector.load %arg9[%c0_93, %c0_94] : memref<8x128xf32, #tpu.memory_space<vmem>>, vector<8x128xf32>
      tpu.vector_store %arg9[%c0_93, %c0_94], %232 {strides = array<i32>} : memref<8x128xf32, #tpu.memory_space<vmem>>, vector<8x128xf32>,
    } else {
    }
    %c7_i32 = arith.constant 7 : i32
    %c8_i32_77 = arith.constant 8 : i32
    %245 = arith.muli %c7_i32, %c8_i32_77 : i32
    %246 = tpu.assume_multiple %245, 8 : i32
    %247 = arith.index_cast %246 : i32 to index
    %c0_78 = arith.constant 0 : index
    %248 = vector.load %arg12[%247, %c0_78] : memref<64x512xf32, #tpu.memory_space<vmem>>, vector<8x512xf32>
    %249 = arith.truncf %234 : vector<8x128xf32> to vector<8x128xbf16>
    %cst_79 = arith.constant dense<0.000000e+00> : vector<8x512xf32>
    %250 = tpu.matmul %249, %11, %cst_79 {dimension_numbers = #tpu.dot_dimension_numbers<[1], [0], [0], [1], [0, 0, 1, 1], [], []>} : vector<8x128xbf16>, vector<128x512xbf16>, vector<8x512xf32> -> vector<8x512xf32>
    %251 = arith.addf %248, %250 : vector<8x512xf32>
    %252 = vector.extract_strided_slice %251 {offsets = [0, 0], sizes = [8, 384], strides = [1, 1]} : vector<8x512xf32> to vector<8x384xf32>
    %253 = arith.negf %252 : vector<8x384xf32>
    %254 = math.exp %253 : vector<8x384xf32>
    %cst_80 = arith.constant 1.000000e+00 : f32
    %255 = vector.broadcast %cst_80 : f32 to vector<8x384xf32>
    %256 = arith.addf %255, %254 : vector<8x384xf32>
    %257 = arith.divf %255, %256 : vector<8x384xf32>
    %258 = vector.extract_strided_slice %257 {offsets = [0, 0], sizes = [8, 128], strides = [1, 1]} : vector<8x384xf32> to vector<8x128xf32>
    %259 = vector.extract_strided_slice %257 {offsets = [0, 128], sizes = [8, 128], strides = [1, 1]} : vector<8x384xf32> to vector<8x128xf32>
    %260 = vector.extract_strided_slice %257 {offsets = [0, 256], sizes = [8, 128], strides = [1, 1]} : vector<8x384xf32> to vector<8x128xf32>
    %261 = vector.extract_strided_slice %251 {offsets = [0, 384], sizes = [8, 128], strides = [1, 1]} : vector<8x512xf32> to vector<8x128xf32>
    %262 = math.tanh %261 : vector<8x128xf32>
    %263 = arith.mulf %259, %232 : vector<8x128xf32>
    %264 = arith.mulf %258, %262 : vector<8x128xf32>
    %265 = arith.addf %263, %264 : vector<8x128xf32>
    %266 = math.tanh %265 : vector<8x128xf32>
    %267 = arith.mulf %260, %266 : vector<8x128xf32>
    %268 = arith.truncf %267 : vector<8x128xf32> to vector<8x128xbf16>
    %269 = arith.index_cast %c7_i32 : i32 to index
    %c0_81 = arith.constant 0 : index
    %c0_82 = arith.constant 0 : index
    %270 = vector.load %arg7[%269, %c0_81, %c0_82] : memref<8x8x128xbf16, #tpu.memory_space<vmem>>, vector<1x8x128xbf16>
    %271 = vector.shape_cast %270 : vector<1x8x128xbf16> to vector<8x128xbf16>
    %272 = vector.shape_cast %268 : vector<8x128xbf16> to vector<1x8x128xbf16>
    tpu.vector_store %arg7[%269, %c0_81, %c0_82], %272 {strides = array<i32>} : memref<8x8x128xbf16, #tpu.memory_space<vmem>>, vector<1x8x128xbf16>,
    %c8_i32_83 = arith.constant 8 : i32
    %273 = arith.muli %arg0, %c8_i32_83 : i32
    %274 = arith.addi %273, %c7_i32 : i32
    %c19_i32_84 = arith.constant 19 : i32
    %275 = arith.cmpi eq, %274, %c19_i32_84 : i32
    %276 = arith.extui %275 : i1 to i32
    %c0_i32_85 = arith.constant 0 : i32
    %277 = arith.cmpi ne, %276, %c0_i32_85 : i32
    scf.if %277 {
      %c0_91 = arith.constant 0 : index
      %c0_92 = arith.constant 0 : index
      %280 = vector.load %arg8[%c0_91, %c0_92] : memref<8x128xf32, #tpu.memory_space<vmem>>, vector<8x128xf32>
      tpu.vector_store %arg8[%c0_91, %c0_92], %267 {strides = array<i32>} : memref<8x128xf32, #tpu.memory_space<vmem>>, vector<8x128xf32>,
      %c0_93 = arith.constant 0 : index
      %c0_94 = arith.constant 0 : index
      %281 = vector.load %arg9[%c0_93, %c0_94] : memref<8x128xf32, #tpu.memory_space<vmem>>, vector<8x128xf32>
      tpu.vector_store %arg9[%c0_93, %c0_94], %265 {strides = array<i32>} : memref<8x128xf32, #tpu.memory_space<vmem>>, vector<8x128xf32>,
    } else {
    }
    %c8_i32_86 = arith.constant 8 : i32
    %c0_87 = arith.constant 0 : index
    %c0_88 = arith.constant 0 : index
    %278 = vector.load %arg10[%c0_87, %c0_88] : memref<8x128xf32, #tpu.memory_space<vmem>>, vector<8x128xf32>
    tpu.vector_store %arg10[%c0_87, %c0_88], %267 {strides = array<i32>} : memref<8x128xf32, #tpu.memory_space<vmem>>, vector<8x128xf32>,
    %c0_89 = arith.constant 0 : index
    %c0_90 = arith.constant 0 : index
    %279 = vector.load %arg11[%c0_89, %c0_90] : memref<8x128xf32, #tpu.memory_space<vmem>>, vector<8x128xf32>
    tpu.vector_store %arg11[%c0_89, %c0_90], %265 {strides = array<i32>} : memref<8x128xf32, #tpu.memory_space<vmem>>, vector<8x128xf32>,
    return
  }
  func.func @transform_0(%arg0: i32) -> (i32, i32, i32) {
    %c0_i32 = arith.constant 0 : i32
    %c0_i32_0 = arith.constant 0 : i32
    %c0_i32_1 = arith.constant 0 : i32
    return %arg0, %c0_i32, %c0_i32_0 : i32, i32, i32
  }
  func.func @transform_1(%arg0: i32) -> (i32, i32) {
    %c0_i32 = arith.constant 0 : i32
    %c0_i32_0 = arith.constant 0 : i32
    %c0_i32_1 = arith.constant 0 : i32
    return %c0_i32, %c0_i32_0 : i32, i32
  }
  func.func @transform_2(%arg0: i32) -> (i32, i32) {
    %c0_i32 = arith.constant 0 : i32
    %c0_i32_0 = arith.constant 0 : i32
    %c0_i32_1 = arith.constant 0 : i32
    return %c0_i32, %c0_i32_0 : i32, i32
  }
  func.func @transform_3(%arg0: i32) -> (i32, i32) {
    %c0_i32 = arith.constant 0 : i32
    %c0_i32_0 = arith.constant 0 : i32
    %c0_i32_1 = arith.constant 0 : i32
    return %c0_i32, %c0_i32_0 : i32, i32
  }
  func.func @transform_4(%arg0: i32) -> (i32, i32) {
    %c0_i32 = arith.constant 0 : i32
    %c0_i32_0 = arith.constant 0 : i32
    %c0_i32_1 = arith.constant 0 : i32
    return %c0_i32, %c0_i32_0 : i32, i32
  }
  func.func @transform_5(%arg0: i32) -> (i32, i32) {
    %c0_i32 = arith.constant 0 : i32
    %c0_i32_0 = arith.constant 0 : i32
    %c0_i32_1 = arith.constant 0 : i32
    return %c0_i32, %c0_i32_0 : i32, i32
  }
  func.func @transform_6(%arg0: i32) -> (i32, i32, i32) {
    %c0_i32 = arith.constant 0 : i32
    %c0_i32_0 = arith.constant 0 : i32
    %c0_i32_1 = arith.constant 0 : i32
    return %arg0, %c0_i32, %c0_i32_0 : i32, i32, i32
  }
  func.func @transform_7(%arg0: i32) -> (i32, i32) {
    %c0_i32 = arith.constant 0 : i32
    %c0_i32_0 = arith.constant 0 : i32
    %c0_i32_1 = arith.constant 0 : i32
    return %c0_i32, %c0_i32_0 : i32, i32
  }
  func.func @transform_8(%arg0: i32) -> (i32, i32) {
    %c0_i32 = arith.constant 0 : i32
    %c0_i32_0 = arith.constant 0 : i32
    %c0_i32_1 = arith.constant 0 : i32
    return %c0_i32, %c0_i32_0 : i32, i32
  }
}

</mosaic_0001>

<bundles_post_ra>
// kernel: tpu_custom_call.1
= control target key start
LH: loop header
LB: loop body
LE: loop exit
PB: predicated region body
PF: predicated region fallthrough
CT: control target
= control target key end

     0   :  { %7 = vsyncpa [#allocation3], 0  ;;  %s633_s0 = inlined_call_operand.hbm [shape: f32[16,128], index: 0, kind: input, shape index: {}]   ;;  %s634_s1 = inlined_call_operand.hbm [shape: f32[8,128], index: 1, kind: input, shape index: {}]   ;;  %s635_s2 = inlined_call_operand.hbm [shape: f32[16,128], index: 2, kind: output, shape index: {}]  }
   0x1   :  { %9 = vsyncpa [#allocation3 + $0x1], 0 }
   0x2   :  { %10 = vsyncpa [#allocation6], 0 }
   0x3   :  { %11 = vsyncpa [#allocation4], 0 }
   0x4   :  { %13 = vsyncpa [#allocation4 + $0x1], 0  ;;  %s495_s9 = smov 0   ;;  %s497_s10 = smov 0  }
   0x5   :  { %s499_s11 = smov 0   ;;  %s501_s12 = smov 0  }
   0x6 LB: > { %s516_s13 = sadd.s32 4294967295, %s477_s12   ;;  %s276_s14 = sadd.s32 4294967294, %s477_s12   ;;  %s477_s12 = sphi %s501_s12, %s645_s12   ;;  %s473_s11 = sphi %s499_s11, %s644_s11   ;;  %s469_s10 = sphi %s497_s10, %s643_s10   ;;  %s465_s9 = sphi %s495_s9, %s642_s9  }
   0x7   : > { %p39_p0 = scmp.ne.s32.totalorder %s469_s10, %s465_s9  ;;  %p40_p1 = scmp.eq.s32.totalorder %s516_s13, 0 }
   0x8   : > { %p84_p2 = scmp.eq.s32.totalorder %s516_s13, 1  ;;  %p90_p3 = scmp.eq.s32.totalorder %s276_s14, 1 }
   0x9   : > { %p525_p4 = por %p40_p1, %p39_p0  ;;  %p277_p5 = scmp.ge.s32.totalorder %s477_s12, 1 }
   0xa   : > { %p530_p6 = por %p90_p3, %p39_p0  ;;  %p97_p7 = scmp.lt.s32.totalorder %s477_s12, 3 }
   0xb   : > { %s109_s19 = sshll.u32 %s634_s1, 4  ;;  %s479_s21 = smov [#allocation5]   ;;  %s110_s19 = int_to_ptr.hbm [resolvable:$true] %s109_s19 }
   0xc   : > { %p538_p8 = pnand %p277_p5, %p97_p7  ;;  %s111_s22 = sshll.u32 %s479_s21, 4  ;;  %s112_s22 = int_to_ptr.vmem [resolvable:$true] %s111_s22 }
   0xd   : > { %s548_s23 = sadd.s32 1, %s477_s12   ;;  %s26_s24 = sadd.s32 1, %s473_s11 }
   0xe   : > { %p298_p10 = pneg %p538_p8  ;;  %s23_s25 = ssub.s32 %s477_s12, %s548_s23 }
   0xf   : > { %p24_p12 = scmp.eq.s32.totalorder %s23_s25, 0  ;;  %p33_p13 = scmp.ne.s32.totalorder %s473_s11, %s469_s10 }
  0x10   : > { %p299_p11 = pnand %p298_p10, %p40_p1  ;;  %p34_p0 = scmp.eq.s32.totalorder %s477_s12, 0 }
  0x11   : > { %s557_s26 = scalar_select %p24_p12, %s473_s11, %s26_s24  }
  0x12   : > { %301 = dma.hbm_to_vmem [thread:$0]  (!%p299_p11), %s110_s19, 128, %s112_s22, [#allocation6]  }
  0x13   : > { %p561_p3 = por %p84_p2, %p33_p13  ;;  %p311_p5 = scmp.lt.s32.totalorder %s477_s12, 2 }
  0x14   : > { %s122_s28 = sand.u32 1, %s473_s11   ;;  %s281_s29 = sshll.u32 %s477_s12, 3 }
  0x15   : > { %p35_p7 = por %p34_p0, %p33_p13  ;;  %s280_s30 = sshll.u32 %s122_s28, 3 }
  0x16   : > { %s130_s5 = scalar_lea.hbm %s633_s0, %s281_s29  ;;  %s126_s7 = scalar_lea.vmem [#allocation2], %s280_s30 }
  0x17   : > { %s132_s6 = sshll.u32 %s130_s5, 4  ;;  %s134_s8 = sshll.u32 %s126_s7, 4  ;;  %s133_s6 = int_to_ptr.hbm [resolvable:$true] %s132_s6  ;;  %s135_s8 = int_to_ptr.vmem [resolvable:$true] %s134_s8 }
  0x18   : > { %p571_p10 = pnand %p311_p5, %p35_p7  ;;  %s123_s17 = scalar_lea.sflag [#allocation3], %s122_s28 }
  0x19   : > { %s377_s18 = sshra.s32 %s133_s6, 4  ;;  %s384_s24 = scalar_lea.hbm %s633_s0, 16  ;;  %s378_s18 = int_to_ptr.hbm [resolvable:$true] %s377_s18 }
  0x1a   : > { %s379_s19 = scalar_lea.hbm %s378_s18, 8  ;;  %p381_p11 = pneg %p571_p10 }
  0x1b   : > { %p380_p2 = scmp.ne.s32.totalorder %s378_s18, %s379_s19  ;;  %p385_p0 = scmp.lt.s32.totalorder %s378_s18, %s633_s0 }
  0x1c   : > { %p386_p5 = scmp.lt.s32.totalorder %s384_s24, %s379_s19 }
  0x1d   : > { %p382_p12 = pnand %p381_p11, %p380_p2 }
  0x1e   : > { %p387_p7 = por %p386_p5, %p385_p0 }
  0x1f   : > { %p383_p13 = pneg %p382_p12 }
  0x21   : > { %p388_p9 = pnand %p387_p7, %p383_p13 }
  0x23   : > { %391 = shalt.err (!%p388_p9)
}
  0x24   : > { %305 = dma.hbm_to_vmem [thread:$0]  (!%p571_p10), %s133_s6, 128, %s135_s8, %s123_s17  }
  0x25   : > { %143 = sbr.rel (%p538_p8) target bundleno = 60 (0x3c), region = 28  ;;  %s588_s28 = sand.u32 (!%p538_p8), 1, %s469_s10  }
  0x26   : > { %s283_s30 = sshll.u32 (!%p538_p8), %s588_s28, 3  ;;  %s146_s3 = scalar_lea.sflag (!%p538_p8), [#allocation3], %s588_s28 }
  0x27   : > { %s149_s4 = scalar_lea.vmem (!%p538_p8), [#allocation2], %s283_s30 }
  0x2a   : > { %452 = dma.done.wait (%p525_p4), %s146_s3, 128  }
  0x2b   : > { %454 = vsyncadd (%p525_p4), %s146_s3, 4294967168 }
  0x2c   : > { %456 = dma.done.wait (%p40_p1), [#allocation6], 128  }
  0x2d   : > { %458 = vsyncadd (%p40_p1), [#allocation6], 4294967168  ;;  %s287_s20 = sshll.u32 %s516_s13, 3  ;;  %s175_s8 = scalar_lea.vmem [#allocation7], %s283_s30  ;;  %v176_v0 = vld [vmem:[%s149_s4] sm:$0xff]  ;;  %v177_v1 = vld [vmem:[#allocation5] sm:$0xff] }
  0x2e   : > { %s191_s7 = scalar_lea.hbm %s635_s2, %s287_s20  ;;  %s193_s14 = sshll.u32 %s175_s8, 4  ;;  %v178_v2 = vadd.f32 %v177_v1, %v176_v0  ;;  %s194_s14 = int_to_ptr.vmem [resolvable:$true] %s193_s14 }
  0x2f   : > { %s195_s17 = sshll.u32 %s191_s7, 4  ;;  %s181_s15 = scalar_lea.sflag [#allocation4], %s588_s28  ;;  %s196_s17 = int_to_ptr.hbm [resolvable:$true] %s195_s17 }
  0x30   : > { %179 = vst [vmem:[%s175_s8] sm:$0xff] %v178_v2  ;;  %s421_s18 = sshra.s32 %s196_s17, 4  ;;  %s427_s22 = scalar_lea.hbm %s635_s2, 16  ;;  %s422_s18 = int_to_ptr.hbm [resolvable:$true] %s421_s18 }
  0x31   : > { %s423_s19 = scalar_lea.hbm %s422_s18, 8  ;;  %p428_p9 = scmp.lt.s32.totalorder %s422_s18, %s635_s2 }
  0x32   : > { %p424_p1 = scmp.ne.s32.totalorder %s422_s18, %s423_s19  ;;  %p429_p10 = scmp.lt.s32.totalorder %s427_s22, %s423_s19 }
  0x34   : > { %p425_p4 = pnand %p424_p1, %p561_p3  ;;  %p430_p2 = por %p429_p10, %p428_p9 }
  0x36   : > { %p426_p8 = pneg %p425_p4 }
  0x38   : > { %p431_p11 = pnand %p430_p2, %p426_p8 }
  0x3a   : > { %434 = shalt.err (!%p431_p11)
}
  0x3b   : > { %296 = dma.vmem_to_hbm [thread:$0]  (%p561_p3), %s194_s14, 128, %s196_s17, %s181_s15  }
  0x3c PF: > { %s207_s29 = sand.u32 1, %s465_s9   ;;  %p641_p12 = scmp.ge.s32.totalorder %s477_s12, 2 }
  0x3d   : > { %s208_s28 = scalar_lea.sflag [#allocation4], %s207_s29 }
  0x3e   : > { %p307_p13 = pnand %p641_p12, %p530_p6 }
  0x40   : > { %p308_p0 = pneg %p307_p13 }
  0x42   : > { %460 = dma.done.wait (%p308_p0), %s208_s28, 128  }
  0x43   : > { %462 = vsyncadd (%p308_p0), %s208_s28, 4294967168  ;;  %p16_p5 = scmp.ge.s32.totalorder %s548_s23, 4   ;;  %s642_s9 = smov %s469_s10 }
  0x44   : > { %s643_s10 = smov %s473_s11  ;;  %s644_s11 = smov %s557_s26 }
  0x45   : > { %s645_s12 = smov %s548_s23  ;;  %18 = sbr.rel (!%p16_p5) target bundleno = 6 (0x6), region = 77 }
  0x4a   :  { %214 = vsyncpa [#allocation3], 1 }
  0x4b   :  { %216 = vsyncpa [#allocation3 + $0x1], 1 }
  0x4c   :  { %217 = vsyncpa [#allocation6], 1 }
  0x4d   :  { %218 = vsyncpa [#allocation4], 1 }
  0x4e   :  { %220 = vsyncpa [#allocation4 + $0x1], 1 }

// kernel: tpu_custom_call.1
= control target key start
LH: loop header
LB: loop body
LE: loop exit
PB: predicated region body
PF: predicated region fallthrough
CT: control target
= control target key end

     0   :  { %s3942_s0 = inlined_call_operand.hbm [shape: bf16[24,8,128], index: 0, kind: input, shape index: {}]   ;;  %s3943_s1 = inlined_call_operand.hbm [shape: bf16[128,512], index: 1, kind: input, shape index: {}]   ;;  %s3944_s2 = inlined_call_operand.hbm [shape: bf16[128,512], index: 2, kind: input, shape index: {}]   ;;  %s3945_s3 = inlined_call_operand.hbm [shape: f32[1,512], index: 3, kind: input, shape index: {}]   ;;  %s3946_s4 = inlined_call_operand.hbm [shape: f32[8,128], index: 4, kind: input, shape index: {}]   ;;  %s3947_s5 = inlined_call_operand.hbm [shape: f32[8,128], index: 5, kind: input, shape index: {}]   ;;  %s3948_s6 = inlined_call_operand.hbm [shape: bf16[24,8,128], index: 6, kind: output, shape index: {0}]   ;;  %s3949_s7 = inlined_call_operand.hbm [shape: f32[8,128], index: 7, kind: output, shape index: {1}]   ;;  %s3950_s8 = inlined_call_operand.hbm [shape: f32[8,128], index: 8, kind: output, shape index: {2}]  }
   0x1   :  { %3952 = sst [smem:[#allocation26_spill]] %s3943_s1 }
   0x2   :  { %3953 = sst [smem:[#allocation27_spill]] %s3944_s2 }
   0x3   :  { %3954 = sst [smem:[#allocation28_spill]] %s3945_s3 }
   0x4   :  { %14 = vsyncpa [#allocation6], 0 }
   0x5   :  { %16 = vsyncpa [#allocation6 + $0x1], 0 }
   0x6   :  { %17 = vsyncpa [#allocation9], 0 }
   0x7   :  { %18 = vsyncpa [#allocation12], 0 }
   0x8   :  { %19 = vsyncpa [#allocation15], 0 }
   0x9   :  { %20 = vsyncpa [#allocation7], 0 }
   0xa   :  { %22 = vsyncpa [#allocation7 + $0x1], 0 }
   0xb   :  { %23 = vsyncpa [#allocation18], 0  ;;  %s3300_s27 = smov 0   ;;  %s3302_s28 = smov 0  }
   0xc   :  { %s3304_s29 = smov 0   ;;  %s3306_s30 = smov 0  }
   0xd LB: > { %s3955_s1 = sld [smem:[#allocation26_spill]]  ;;  %s3324_s12 = sadd.s32 4294967295, %s3240_s30   ;;  %s3240_s30 = sphi %s3306_s30, %s3973_s30   ;;  %s3236_s29 = sphi %s3304_s29, %s3972_s29   ;;  %s3232_s28 = sphi %s3302_s28, %s3971_s28   ;;  %s3228_s27 = sphi %s3300_s27, %s3970_s27  }
   0xe   : > { %p2267_p0 = scmp.ge.s32.totalorder %s3240_s30, 1  ;;  %p50_p1 = scmp.eq.s32.totalorder %s3324_s12, 0 }
   0xf   : > { %p233_p2 = scmp.lt.s32.totalorder %s3240_s30, 4  ;;  %s3242_s14 = smov [#allocation8]  }
  0x10   : > { %s246_s15 = sshll.u32 %s3242_s14, 4  ;;  %s3957_s3 = sld [smem:[#allocation28_spill]]  ;;  %s247_s15 = int_to_ptr.vmem [resolvable:$true] %s246_s15 }
  0x11   : > { %p3330_p4 = pnand %p2267_p0, %p233_p2  ;;  %s3959_s2 = sld [smem:[#allocation27_spill]] }
  0x12   : > { %s3243_s23 = smov [#allocation11]   ;;  %s3244_s25 = smov 256  }
  0x13   : > { %s244_s11 = sshll.u32 %s3955_s1, 4  ;;  %p2709_p5 = pneg %p3330_p4  ;;  %s245_s11 = int_to_ptr.hbm [resolvable:$true] %s244_s11 }
  0x14   : > { %s275_s24 = sshll.u32 %s3243_s23, 4  ;;  %s3245_s26 = smov 16   ;;  %s276_s24 = int_to_ptr.vmem [resolvable:$true] %s275_s24 }
  0x15   : > { %p3341_p6 = pnand %p2709_p5, %p50_p1  ;;  %s285_s14 = sshll.u32 %s3946_s4, 4  ;;  %s286_s14 = int_to_ptr.hbm [resolvable:$true] %s285_s14 }
  0x16   : > { %s273_s18 = sshll.u32 %s3957_s3, 4  ;;  %s3246_s16 = smov [#allocation10]   ;;  %s274_s18 = int_to_ptr.hbm [resolvable:$true] %s273_s18 }
  0x17   : > { %s258_s22 = sshll.u32 %s3959_s2, 4  ;;  %s260_s17 = sshll.u32 %s3246_s16, 4  ;;  %s259_s22 = int_to_ptr.hbm [resolvable:$true] %s258_s22  ;;  %s261_s17 = int_to_ptr.vmem [resolvable:$true] %s260_s17 }
  0x18   : > { %2712 = dma.hbm_to_vmem [thread:$0]  (!%p3341_p6), %s245_s11, 4096, %s247_s15, [#allocation9], %s3244_s25, %s3244_s25, %s3245_s26  }
  0x19   : > { %2718 = dma.hbm_to_vmem [thread:$0]  (!%p3341_p6), %s274_s18, 64, %s276_s24, [#allocation12]  }
  0x1a   : > { %2715 = dma.hbm_to_vmem [thread:$0]  (!%p3341_p6), %s259_s22, 4096, %s261_s17, [#allocation9], %s3244_s25, %s3244_s25, %s3245_s26  }
  0x1b   : > { %s3247_s11 = smov [#allocation13]   ;;  %s297_s21 = sshll.u32 %s3947_s5, 4  ;;  %s298_s21 = int_to_ptr.hbm [resolvable:$true] %s297_s21 }
  0x1c   : > { %s287_s15 = sshll.u32 %s3247_s11, 4  ;;  %s3248_s23 = smov [#allocation14]   ;;  %s288_s15 = int_to_ptr.vmem [resolvable:$true] %s287_s15 }
  0x1d   : > { %2721 = dma.hbm_to_vmem [thread:$0]  (!%p3341_p6), %s286_s14, 128, %s288_s15, [#allocation12]  }
  0x1e   : > { %s299_s24 = sshll.u32 %s3248_s23, 4  ;;  %s2266_s22 = sadd.s32 4294967294, %s3240_s30   ;;  %s300_s24 = int_to_ptr.vmem [resolvable:$true] %s299_s24 }
  0x1f   : > { %2724 = dma.hbm_to_vmem [thread:$0]  (!%p3341_p6), %s298_s21, 128, %s300_s24, [#allocation15]  }
  0x20   : > { %s3366_s25 = sadd.s32 1, %s3240_s30   ;;  %s36_s26 = sadd.s32 1, %s3236_s29 }
  0x21   : > { %s33_s9 = ssub.s32 %s3240_s30, %s3366_s25  ;;  %p43_p7 = scmp.ne.s32.totalorder %s3236_s29, %s3232_s28 }
  0x22   : > { %p34_p8 = scmp.eq.s32.totalorder %s33_s9, 0  ;;  %p44_p9 = scmp.eq.s32.totalorder %s3240_s30, 0 }
  0x23   : > { %p49_p10 = scmp.ne.s32.totalorder %s3232_s28, %s3228_s27  ;;  %p3951_p11 = scmp.eq.s32.totalorder %s3324_s12, 2 }
  0x24   : > { %s3378_s10 = scalar_select %p34_p8, %s3236_s29, %s36_s26  }
  0x25   : > { %p3380_p12 = por %p44_p9, %p43_p7  ;;  %p3386_p13 = por %p50_p1, %p49_p10 }
  0x26   : > { %p3392_p0 = por %p3951_p11, %p43_p7  ;;  %p184_p2 = scmp.eq.s32.totalorder %s2266_s22, 2 }
  0x27   : > { %p2738_p5 = scmp.lt.s32.totalorder %s3240_s30, 3  ;;  %s310_s17 = sand.u32 1, %s3236_s29  }
  0x28   : > { %p3398_p6 = por %p184_p2, %p49_p10  ;;  %s2274_s15 = sshll.u32 %s310_s17, 5 }
  0x29   : > { %s2607_s18 = sshll.u32 %s3240_s30, 5  ;;  %s314_s26 = scalar_lea.vmem [#allocation5], %s2274_s15 }
  0x2a   : > { %s319_s23 = scalar_lea.hbm %s3942_s0, %s2607_s18  ;;  %s322_s9 = sshll.u32 %s314_s26, 4  ;;  %s323_s9 = int_to_ptr.vmem [resolvable:$true] %s322_s9 }
  0x2b   : > { %s320_s24 = sshll.u32 %s319_s23, 4  ;;  %p3408_p7 = pnand %p2738_p5, %p3380_p12  ;;  %s321_s24 = int_to_ptr.hbm [resolvable:$true] %s320_s24 }
  0x2c   : > { %s311_s1 = scalar_lea.sflag [#allocation6], %s310_s17  ;;  %s3072_s2 = sshra.s32 %s321_s24, 4  ;;  %s3073_s2 = int_to_ptr.hbm [resolvable:$true] %s3072_s2 }
  0x2d   : > { %s3074_s3 = scalar_lea.hbm %s3073_s2, 32  ;;  %p3076_p9 = pneg %p3408_p7 }
  0x2e   : > { %p3075_p8 = scmp.ne.s32.totalorder %s3073_s2, %s3074_s3  ;;  %s3079_s20 = scalar_lea.hbm %s3942_s0, 96 }
  0x2f   : > { %p3080_p12 = scmp.lt.s32.totalorder %s3073_s2, %s3942_s0  ;;  %p3081_p5 = scmp.lt.s32.totalorder %s3079_s20, %s3074_s3 }
  0x30   : > { %p3077_p10 = pnand %p3076_p9, %p3075_p8 }
  0x31   : > { %p3082_p11 = por %p3081_p5, %p3080_p12 }
  0x32   : > { %p3078_p2 = pneg %p3077_p10 }
  0x34   : > { %p3083_p3 = pnand %p3082_p11, %p3078_p2 }
  0x36   : > { %3086 = shalt.err (!%p3083_p3)
}
  0x37   : > { %s3249_s17 = smov 64   ;;  %s3250_s23 = smov 4  }
  0x38   : > { %2728 = dma.hbm_to_vmem [thread:$0]  (!%p3408_p7), %s321_s24, 512, %s323_s9, %s311_s1, %s3249_s17, %s3249_s17, %s3250_s23  }
  0x39   : > { %334 = sbr.rel (%p3330_p4) target bundleno = 1820 (0x71c), region = 44  ;;  %s3425_s26 = sand.u32 (!%p3330_p4), 1, %s3232_s28  }
  0x3a   : > { %s2278_s18 = sshll.u32 (!%p3330_p4), %s3425_s26, 5  ;;  %s337_s2 = scalar_lea.sflag (!%p3330_p4), [#allocation6], %s3425_s26 }
  0x3b   : > { %s3429_s3 = scalar_lea.vmem (!%p3330_p4), [#allocation5], %s2278_s18 }
  0x3e   : > { %3203 = dma.done.wait (%p3386_p13), %s337_s2, 512  }
  0x3f   : > { %3205 = vsyncadd (%p3386_p13), %s337_s2, 4294966784 }
  0x40   : > { %3207 = dma.done.wait (%p50_p1), [#allocation9], 8192  }
  0x41   : > { %3209 = vsyncadd (%p50_p1), [#allocation9], 4294959104 }
  0x42   : > { %3211 = dma.done.wait (%p50_p1), [#allocation12], 192  }
  0x43   : > { %3213 = vsyncadd (%p50_p1), [#allocation12], 4294967104 }
  0x44   : > { %3215 = dma.done.wait (%p50_p1), [#allocation15], 128  }
  0x45   : > { %3217 = vsyncadd (%p50_p1), [#allocation15], 4294967168  ;;  %s3447_s1 = scalar_lea.vmem [#allocation16], %s2278_s18  ;;  %p3965_p3 = scmp.ne.s32.totalorder %s3324_s12, 0 }
  0x47   : > { %404 = sbr.rel (%p3965_p3) target bundleno = 79 (0x4f), region = 72 }
  0x4c   : > { %v405_v0 = vld [vmem:[#allocation13] sm:$0xff]  ;;  %v407_v1 = vld [vmem:[#allocation14] sm:$0xff] }
  0x4d   : > { %406 = vst [vmem:[#allocation2] sm:$0xff] %v405_v0 }
  0x4e   : > { %408 = vst [vmem:[#allocation3] sm:$0xff] %v407_v1 }
  0x4f PF: > { %v2416_v2 = vld [vmem:[#allocation8 + $0xe0] sm:$0xf]  ;;  %v2642_v3 = vld [vmem:[#allocation8 + $0xec] sm:$0xf0]  ;;  %v2640_v4 = vld [vmem:[#allocation8 + $0xe4] sm:$0xf] }
  0x50   : > { %v2417_v5 = vor.u32 %v2642_v3, %v2416_v2  ;;  %v2418_v6 = vld [vmem:[#allocation8 + $0xf0] sm:$0xf0]  ;;  %v2424_v7 = vld [vmem:[#allocation8 + $0xe8] sm:$0xf]  ;;  %v2643_v8 = vld [vmem:[#allocation8 + $0xf4] sm:$0xf0] }
  0x51   : > { %v2421_v9 = vor.u32 %v2640_v4, %v2418_v6  ;;  %v2425_v10 = vor.u32 %v2643_v8, %v2424_v7  ;;  %v2641_v11 = vld [vmem:[#allocation8 + $0xec] sm:$0xf]  ;;  %v2426_v12 = vld [vmem:[#allocation8 + $0xf8] sm:$0xf0]  ;;  %v2400_v13 = vld [vmem:[#allocation8 + $0xc0] sm:$0xf] }
  0x52   : > { %643 = vmatpush.bf16.msra.mxu0 %v2417_v5  ;;  %v2429_v14 = vor.u32 %v2641_v11, %v2426_v12  ;;  %v2638_v15 = vld [vmem:[#allocation8 + $0xcc] sm:$0xf0]  ;;  %v2636_v16 = vld [vmem:[#allocation8 + $0xc4] sm:$0xf]  ;;  %v2402_v17 = vld [vmem:[#allocation8 + $0xd0] sm:$0xf0] }
  0x53   : > { %672 = vmatpush.bf16.msra.mxu1 %v2421_v9  ;;  %701 = vmatpush.bf16.msra.mxu2 %v2425_v10  ;;  %v2401_v18 = vor.u32 %v2638_v15, %v2400_v13  ;;  %v2405_v19 = vor.u32 %v2636_v16, %v2402_v17  ;;  %v2408_v20 = vld [vmem:[#allocation8 + $0xc8] sm:$0xf]  ;;  %v2639_v21 = vld [vmem:[#allocation8 + $0xd4] sm:$0xf0]  ;;  %v2637_v22 = vld [vmem:[#allocation8 + $0xcc] sm:$0xf] }
  0x54   : > { %730 = vmatpush.bf16.msra.mxu3 %v2429_v14  ;;  %v2409_v23 = vor.u32 %v2639_v21, %v2408_v20  ;;  %v2410_v24 = vld [vmem:[#allocation8 + $0xd8] sm:$0xf0]  ;;  %v2384_v25 = vld [vmem:[#allocation8 + $0xa0] sm:$0xf]  ;;  %v2634_v26 = vld [vmem:[#allocation8 + $0xac] sm:$0xf0] }
  0x55   : > { %v2413_v27 = vor.u32 %v2637_v22, %v2410_v24  ;;  %v2632_v28 = vld [vmem:[#allocation8 + $0xa4] sm:$0xf]  ;;  %v2386_v29 = vld [vmem:[#allocation8 + $0xb0] sm:$0xf0]  ;;  %v2392_v30 = vld [vmem:[#allocation8 + $0xa8] sm:$0xf]  ;;  %v2385_v31 = vor.u32 %v2634_v26, %v2384_v25 }
  0x56   : > { %644 = vmatpush.bf16.msra.mxu0 %v2401_v18  ;;  %v2635_v32 = vld [vmem:[#allocation8 + $0xb4] sm:$0xf0]  ;;  %v2633_v33 = vld [vmem:[#allocation8 + $0xac] sm:$0xf]  ;;  %v2394_v34 = vld [vmem:[#allocation8 + $0xb8] sm:$0xf0]  ;;  %v2389_v35 = vor.u32 %v2632_v28, %v2386_v29 }
  0x57   : > { %673 = vmatpush.bf16.msra.mxu1 %v2405_v19  ;;  %702 = vmatpush.bf16.msra.mxu2 %v2409_v23  ;;  %v2393_v36 = vor.u32 %v2635_v32, %v2392_v30  ;;  %v2368_v37 = vld [vmem:[#allocation8 + $0x80] sm:$0xf]  ;;  %v2630_v38 = vld [vmem:[#allocation8 + $0x8c] sm:$0xf0]  ;;  %v2628_v39 = vld [vmem:[#allocation8 + $0x84] sm:$0xf]  ;;  %v2397_v40 = vor.u32 %v2633_v33, %v2394_v34 }
  0x58   : > { %731 = vmatpush.bf16.msra.mxu3 %v2413_v27  ;;  %v2370_v41 = vld [vmem:[#allocation8 + $0x90] sm:$0xf0]  ;;  %v2376_v42 = vld [vmem:[#allocation8 + $0x88] sm:$0xf]  ;;  %v2631_v43 = vld [vmem:[#allocation8 + $0x94] sm:$0xf0]  ;;  %v2369_v46 = vor.u32 %v2630_v38, %v2368_v37 }
  0x59   : > { %v2629_v44 = vld [vmem:[#allocation8 + $0x8c] sm:$0xf]  ;;  %v2378_v45 = vld [vmem:[#allocation8 + $0x98] sm:$0xf0]  ;;  %v2373_v47 = vor.u32 %v2628_v39, %v2370_v41  ;;  %v2377_v48 = vor.u32 %v2631_v43, %v2376_v42  ;;  %v2352_v49 = vld [vmem:[#allocation8 + $0x60] sm:$0xf] }
  0x5a   : > { %645 = vmatpush.bf16.msra.mxu0 %v2385_v31  ;;  %v2626_v50 = vld [vmem:[#allocation8 + $0x6c] sm:$0xf0]  ;;  %v2624_v51 = vld [vmem:[#allocation8 + $0x64] sm:$0xf]  ;;  %v2381_v52 = vor.u32 %v2629_v44, %v2378_v45  ;;  %v2354_v53 = vld [vmem:[#allocation8 + $0x70] sm:$0xf0] }
  0x5b   : > { %674 = vmatpush.bf16.msra.mxu1 %v2389_v35  ;;  %703 = vmatpush.bf16.msra.mxu2 %v2393_v36  ;;  %v2360_v54 = vld [vmem:[#allocation8 + $0x68] sm:$0xf]  ;;  %v2627_v55 = vld [vmem:[#allocation8 + $0x74] sm:$0xf0]  ;;  %v2625_v56 = vld [vmem:[#allocation8 + $0x6c] sm:$0xf]  ;;  %v2353_v58 = vor.u32 %v2626_v50, %v2352_v49  ;;  %v2357_v59 = vor.u32 %v2624_v51, %v2354_v53 }
  0x5c   : > { %732 = vmatpush.bf16.msra.mxu3 %v2397_v40  ;;  %v2362_v57 = vld [vmem:[#allocation8 + $0x78] sm:$0xf0]  ;;  %v2361_v60 = vor.u32 %v2627_v55, %v2360_v54  ;;  %v2336_v61 = vld [vmem:[#allocation8 + $0x40] sm:$0xf]  ;;  %v2622_v62 = vld [vmem:[#allocation8 + $0x4c] sm:$0xf0] }
  0x5d   : > { %v2620_v63 = vld [vmem:[#allocation8 + $0x44] sm:$0xf]  ;;  %v2365_v0 = vor.u32 %v2625_v56, %v2362_v57  ;;  %v2338_v1 = vld [vmem:[#allocation8 + $0x50] sm:$0xf0]  ;;  %v2344_v2 = vld [vmem:[#allocation8 + $0x48] sm:$0xf]  ;;  %v2337_v6 = vor.u32 %v2622_v62, %v2336_v61 }
  0x5e   : > { %646 = vmatpush.bf16.msra.mxu0 %v2369_v46  ;;  %v2623_v3 = vld [vmem:[#allocation8 + $0x54] sm:$0xf0]  ;;  %v2621_v4 = vld [vmem:[#allocation8 + $0x4c] sm:$0xf]  ;;  %v2346_v5 = vld [vmem:[#allocation8 + $0x58] sm:$0xf0]  ;;  %v2341_v7 = vor.u32 %v2620_v63, %v2338_v1 }
  0x5f   : > { %675 = vmatpush.bf16.msra.mxu1 %v2373_v47  ;;  %704 = vmatpush.bf16.msra.mxu2 %v2377_v48  ;;  %v2345_v8 = vor.u32 %v2623_v3, %v2344_v2  ;;  %v2320_v9 = vld [vmem:[#allocation8 + $0x20] sm:$0xf]  ;;  %v2618_v10 = vld [vmem:[#allocation8 + $0x2c] sm:$0xf0]  ;;  %v2616_v11 = vld [vmem:[#allocation8 + $0x24] sm:$0xf]  ;;  %v2349_v12 = vor.u32 %v2621_v4, %v2346_v5 }
  0x60   : > { %733 = vmatpush.bf16.msra.mxu3 %v2381_v52  ;;  %v2322_v13 = vld [vmem:[#allocation8 + $0x30] sm:$0xf0]  ;;  %v2328_v14 = vld [vmem:[#allocation8 + $0x28] sm:$0xf]  ;;  %v2619_v15 = vld [vmem:[#allocation8 + $0x34] sm:$0xf0]  ;;  %v2321_v18 = vor.u32 %v2618_v10, %v2320_v9 }
  0x61   : > { %v2617_v16 = vld [vmem:[#allocation8 + $0x2c] sm:$0xf]  ;;  %v2330_v17 = vld [vmem:[#allocation8 + $0x38] sm:$0xf0]  ;;  %v2304_v19 = vld [vmem:[#allocation8] sm:$0xf]  ;;  %v2325_v20 = vor.u32 %v2616_v11, %v2322_v13  ;;  %v2329_v21 = vor.u32 %v2619_v15, %v2328_v14 }
  0x62   : > { %647 = vmatpush.bf16.msra.mxu0 %v2353_v58  ;;  %v2614_v22 = vld [vmem:[#allocation8 + $0xc] sm:$0xf0]  ;;  %v2612_v23 = vld [vmem:[#allocation8 + $0x4] sm:$0xf]  ;;  %v2306_v24 = vld [vmem:[#allocation8 + $0x10] sm:$0xf0]  ;;  %v2333_v25 = vor.u32 %v2617_v16, %v2330_v17 }
  0x63   : > { %676 = vmatpush.bf16.msra.mxu1 %v2357_v59  ;;  %705 = vmatpush.bf16.msra.mxu2 %v2361_v60  ;;  %v2312_v26 = vld [vmem:[#allocation8 + $0x8] sm:$0xf]  ;;  %v2615_v27 = vld [vmem:[#allocation8 + $0x14] sm:$0xf0]  ;;  %v2613_v28 = vld [vmem:[#allocation8 + $0xc] sm:$0xf]  ;;  %v2305_v32 = vor.u32 %v2614_v22, %v2304_v19  ;;  %v2309_v35 = vor.u32 %v2612_v23, %v2306_v24 }
  0x64   : > { %734 = vmatpush.bf16.msra.mxu3 %v2365_v0  ;;  %v2314_v29 = vld [vmem:[#allocation8 + $0x18] sm:$0xf0]  ;;  %v2544_v30 = vld [vmem:[#allocation10 + $0xe0] sm:$0xf]  ;;  %v2674_v31 = vld [vmem:[#allocation10 + $0xec] sm:$0xf0]  ;;  %v2313_v36 = vor.u32 %v2615_v27, %v2312_v26 }
  0x65   : > { %v2672_v33 = vld [vmem:[#allocation10 + $0xe4] sm:$0xf]  ;;  %v2546_v34 = vld [vmem:[#allocation10 + $0xf0] sm:$0xf0]  ;;  %v2317_v38 = vor.u32 %v2613_v28, %v2314_v29  ;;  %v3452_v39 = vor.u32 %v2674_v31, %v2544_v30  ;;  %v2552_v40 = vld [vmem:[#allocation10 + $0xe8] sm:$0xf] }
  0x66   : > { %648 = vmatpush.bf16.msra.mxu0 %v2337_v6  ;;  %v2608_v37 = vld [vmem:[%s3429_s3] sm:$0xff]  ;;  %v2675_v41 = vld [vmem:[#allocation10 + $0xf4] sm:$0xf0]  ;;  %v3454_v43 = vor.u32 %v2672_v33, %v2546_v34  ;;  %v2670_v44 = vld [vmem:[#allocation10 + $0xcc] sm:$0xf0]  ;;  %s3552_s13 = sshll.u32 %s3324_s12, 3 }
  0x67   : > { %677 = vmatpush.bf16.msra.mxu1 %v2341_v7  ;;  %706 = vmatpush.bf16.msra.mxu2 %v2345_v8  ;;  %v2528_v42 = vld [vmem:[#allocation10 + $0xc0] sm:$0xf]  ;;  %v2673_v45 = vld [vmem:[#allocation10 + $0xec] sm:$0xf]  ;;  %v2554_v46 = vld [vmem:[#allocation10 + $0xf8] sm:$0xf0]  ;;  %v3456_v49 = vor.u32 %v2675_v41, %v2552_v40 }
  0x68   : > { %735 = vmatpush.bf16.msra.mxu3 %v2349_v12  ;;  %v2668_v47 = vld [vmem:[#allocation10 + $0xc4] sm:$0xf]  ;;  %v2530_v48 = vld [vmem:[#allocation10 + $0xd0] sm:$0xf0]  ;;  %v3459_v50 = vor.u32 %v2670_v44, %v2528_v42  ;;  %v2536_v51 = vld [vmem:[#allocation10 + $0xc8] sm:$0xf]  ;;  %v3461_v53 = vor.u32 %v2673_v45, %v2554_v46 }
  0x69   : > { %v2671_v52 = vld [vmem:[#allocation10 + $0xd4] sm:$0xf0]  ;;  %v2512_v54 = vld [vmem:[#allocation10 + $0xa0] sm:$0xf]  ;;  %v3464_v55 = vor.u32 %v2668_v47, %v2530_v48  ;;  %v2666_v56 = vld [vmem:[#allocation10 + $0xac] sm:$0xf0] }
  0x6a   : > { %649 = vmatpush.bf16.msra.mxu0 %v2321_v18  ;;  %v2669_v57 = vld [vmem:[#allocation10 + $0xcc] sm:$0xf]  ;;  %v2538_v58 = vld [vmem:[#allocation10 + $0xd8] sm:$0xf0]  ;;  %v2664_v59 = vld [vmem:[#allocation10 + $0xa4] sm:$0xf]  ;;  %v3467_v61 = vor.u32 %v2671_v52, %v2536_v51  ;;  %v3471_v62 = vor.u32 %v2666_v56, %v2512_v54 }
  0x6b   : > { %678 = vmatpush.bf16.msra.mxu1 %v2325_v20  ;;  %707 = vmatpush.bf16.msra.mxu2 %v2329_v21  ;;  %v2514_v60 = vld [vmem:[#allocation10 + $0xb0] sm:$0xf0]  ;;  %v2520_v63 = vld [vmem:[#allocation10 + $0xa8] sm:$0xf]  ;;  %v2667_v0 = vld [vmem:[#allocation10 + $0xb4] sm:$0xf0]  ;;  %v3473_v1 = vor.u32 %v2669_v57, %v2538_v58 }
  0x6c   : > { %736 = vmatpush.bf16.msra.mxu3 %v2333_v25  ;;  %v2496_v2 = vld [vmem:[#allocation10 + $0x80] sm:$0xf]  ;;  %v3476_v3 = vor.u32 %v2664_v59, %v2514_v60  ;;  %v2662_v4 = vld [vmem:[#allocation10 + $0x8c] sm:$0xf0]  ;;  %v2665_v5 = vld [vmem:[#allocation10 + $0xac] sm:$0xf]  ;;  %v3479_v9 = vor.u32 %v2667_v0, %v2520_v63 }
  0x6d   : > { %v2522_v6 = vld [vmem:[#allocation10 + $0xb8] sm:$0xf0]  ;;  %v2660_v7 = vld [vmem:[#allocation10 + $0x84] sm:$0xf]  ;;  %v2498_v8 = vld [vmem:[#allocation10 + $0x90] sm:$0xf0]  ;;  %v3483_v10 = vor.u32 %v2662_v4, %v2496_v2 }
  0x6e   : > { %650 = vmatpush.bf16.msra.mxu0 %v2305_v32  ;;  %v2504_v11 = vld [vmem:[#allocation10 + $0x88] sm:$0xf]  ;;  %v2663_v12 = vld [vmem:[#allocation10 + $0x94] sm:$0xf0]  ;;  %v3485_v13 = vor.u32 %v2665_v5, %v2522_v6  ;;  %v2480_v14 = vld [vmem:[#allocation10 + $0x60] sm:$0xf]  ;;  %v3488_v15 = vor.u32 %v2660_v7, %v2498_v8 }
  0x6f   : > { %679 = vmatpush.bf16.msra.mxu1 %v2309_v35  ;;  %708 = vmatpush.bf16.msra.mxu2 %v2313_v36  ;;  %v2658_v16 = vld [vmem:[#allocation10 + $0x6c] sm:$0xf0]  ;;  %v2661_v17 = vld [vmem:[#allocation10 + $0x8c] sm:$0xf]  ;;  %v2506_v18 = vld [vmem:[#allocation10 + $0x98] sm:$0xf0]  ;;  %v3492_v22 = vor.u32 %v2663_v12, %v2504_v11 }
  0x70   : > { %737 = vmatpush.bf16.msra.mxu3 %v2317_v38  ;;  %v2656_v19 = vld [vmem:[#allocation10 + $0x64] sm:$0xf]  ;;  %v2482_v20 = vld [vmem:[#allocation10 + $0x70] sm:$0xf0]  ;;  %v2609_v21 = vld [vmem:[%s3429_s3 + $0x8] sm:$0xff]  ;;  %v3496_v23 = vor.u32 %v2658_v16, %v2480_v14  ;;  %v3498_v26 = vor.u32 %v2661_v17, %v2506_v18  ;;  %p2562_p1 = scmp.ne.s32.totalorder %s3552_s13, 19 }
  0x71   : > { %651 = vmatmul.bf16.vlgmr.msra.gmra.mxu0 %v2608_v37  ;;  %v2488_v24 = vld [vmem:[#allocation10 + $0x68] sm:$0xf]  ;;  %v2659_v25 = vld [vmem:[#allocation10 + $0x74] sm:$0xf0]  ;;  %v2464_v27 = vld [vmem:[#allocation10 + $0x40] sm:$0xf]  ;;  %v3501_v28 = vor.u32 %v2656_v19, %v2482_v20 }
  0x72   : > { %993 = vmatpush.bf16.msrb.mxu0 %v3452_v39  ;;  %680 = vmatmul.bf16.vlgmr.msra.gmra.mxu1 %v2608_v37  ;;  %v2654_v29 = vld [vmem:[#allocation10 + $0x4c] sm:$0xf0]  ;;  %v2657_v30 = vld [vmem:[#allocation10 + $0x6c] sm:$0xf]  ;;  %v2490_v31 = vld [vmem:[#allocation10 + $0x78] sm:$0xf0]  ;;  %v3504_v34 = vor.u32 %v2659_v25, %v2488_v24 }
  0x73   : > { %1006 = vmatpush.bf16.msrb.mxu1 %v3454_v43  ;;  %709 = vmatmul.bf16.vlgmr.msra.gmra.mxu2 %v2608_v37  ;;  %v2652_v32 = vld [vmem:[#allocation10 + $0x44] sm:$0xf]  ;;  %v2466_v33 = vld [vmem:[#allocation10 + $0x50] sm:$0xf0]  ;;  %v3508_v35 = vor.u32 %v2654_v29, %v2464_v27  ;;  %v2472_v36 = vld [vmem:[#allocation10 + $0x48] sm:$0xf]  ;;  %v3510_v38 = vor.u32 %v2657_v30, %v2490_v31 }
  0x74   : > { %738 = vmatmul.bf16.vlgmr.msra.gmra.mxu3 %v2608_v37  ;;  %1019 = vmatpush.bf16.msrb.mxu2 %v3456_v49  ;;  %v2655_v37 = vld [vmem:[#allocation10 + $0x54] sm:$0xf0]  ;;  %v3513_v40 = vor.u32 %v2652_v32, %v2466_v33  ;;  %v2448_v42 = vld [vmem:[#allocation10 + $0x20] sm:$0xf]  ;;  %v2650_v44 = vld [vmem:[#allocation10 + $0x2c] sm:$0xf0] }
  0x75   : > { %1032 = vmatpush.bf16.msrb.mxu3 %v3461_v53  ;;  %v3516_v41 = vor.u32 %v2655_v37, %v2472_v36  ;;  %v2648_v45 = vld [vmem:[#allocation10 + $0x24] sm:$0xf]  ;;  %v3520_v46 = vor.u32 %v2650_v44, %v2448_v42  ;;  %v2450_v47 = vld [vmem:[#allocation10 + $0x30] sm:$0xf0]  ;;  %v2456_v48 = vld [vmem:[#allocation10 + $0x28] sm:$0xf] }
  0x76   : > { %994 = vmatpush.bf16.msrb.mxu0 %v3459_v50  ;;  %v2651_v51 = vld [vmem:[#allocation10 + $0x34] sm:$0xf0]  ;;  %v3523_v52 = vor.u32 %v2648_v45, %v2450_v47  ;;  %v2653_v54 = vld [vmem:[#allocation10 + $0x4c] sm:$0xf]  ;;  %v2474_v56 = vld [vmem:[#allocation10 + $0x58] sm:$0xf0] }
  0x77   : > { %1007 = vmatpush.bf16.msrb.mxu1 %v3464_v55  ;;  %v2432_v57 = vld [vmem:[#allocation10] sm:$0xf]  ;;  %v3525_v58 = vor.u32 %v2653_v54, %v2474_v56  ;;  %v2646_v59 = vld [vmem:[#allocation10 + $0xc] sm:$0xf0]  ;;  %v2644_v60 = vld [vmem:[#allocation10 + $0x4] sm:$0xf]  ;;  %v3528_v0 = vor.u32 %v2651_v51, %v2456_v48 }
  0x78   : > { %1020 = vmatpush.bf16.msrb.mxu2 %v3467_v61  ;;  %v2434_v63 = vld [vmem:[#allocation10 + $0x10] sm:$0xf0]  ;;  %v2649_v2 = vld [vmem:[#allocation10 + $0x2c] sm:$0xf]  ;;  %v2458_v4 = vld [vmem:[#allocation10 + $0x38] sm:$0xf0]  ;;  %v3532_v5 = vor.u32 %v2646_v59, %v2432_v57 }
  0x79   : > { %1033 = vmatpush.bf16.msrb.mxu3 %v3473_v1  ;;  %v3534_v6 = vor.u32 %v2649_v2, %v2458_v4  ;;  %v2440_v7 = vld [vmem:[#allocation10 + $0x8] sm:$0xf]  ;;  %v2647_v8 = vld [vmem:[#allocation10 + $0x14] sm:$0xf0]  ;;  %v3537_v11 = vor.u32 %v2644_v60, %v2434_v63  ;;  %v2645_v12 = vld [vmem:[#allocation10 + $0xc] sm:$0xf] }
  0x7a   : > { %995 = vmatpush.bf16.msrb.mxu0 %v3471_v62  ;;  %v2442_v14 = vld [vmem:[#allocation10 + $0x18] sm:$0xf0]  ;;  %v3540_v16 = vor.u32 %v2647_v8, %v2440_v7  ;;  %v2610_v18 = vld [vmem:[%s3429_s3 + $0x10] sm:$0xff]  ;;  %v449_v24 = vld [vmem:[#allocation11] sm:$0xf] }
  0x7b   : > { %1008 = vmatpush.bf16.msrb.mxu1 %v3476_v3  ;;  %v3544_v17 = vor.u32 %v2645_v12, %v2442_v14  ;;  %v2611_v19 = vld [vmem:[%s3429_s3 + $0x18] sm:$0xff]  ;;  %v823_v20 = vld [vmem:[#allocation2] sm:$0xff]  ;;  %v3554_v25 = vperm.slane %v449_v24, 0  ;;  %v3556_v27 = vperm.slane %v449_v24, 1  ;;  %v3564_v33 = vperm.slane %v449_v24, 2 }
  0x7c   : > { %1021 = vmatpush.bf16.msrb.mxu2 %v3479_v9  ;;  %v3566_v36 = vperm.slane %v449_v24, 3 }
  0x7d   : > { %1034 = vmatpush.bf16.msrb.mxu3 %v3485_v13 }
  0x7e   : > { %996 = vmatpush.bf16.msrb.mxu0 %v3483_v10 }
  0x7f   : > { %1009 = vmatpush.bf16.msrb.mxu1 %v3488_v15 }
  0x80   : > { %1022 = vmatpush.bf16.msrb.mxu2 %v3492_v22 }
  0x81   : > { %1035 = vmatpush.bf16.msrb.mxu3 %v3498_v26  ;;  %656 = vmatmul.bf16.gmra.mxu0 %v2609_v21 }
  0x82   : > { %997 = vmatpush.bf16.msrb.mxu0 %v3496_v23  ;;  %685 = vmatmul.bf16.gmra.mxu1 %v2609_v21 }
  0x83   : > { %1010 = vmatpush.bf16.msrb.mxu1 %v3501_v28  ;;  %714 = vmatmul.bf16.gmra.mxu2 %v2609_v21 }
  0x84   : > { %743 = vmatmul.bf16.gmra.mxu3 %v2609_v21  ;;  %1023 = vmatpush.bf16.msrb.mxu2 %v3504_v34  ;;  %v832_v21 = vpack.c.bf16 %v823_v20, %v823_v20 }
  0x85   : > { %1036 = vmatpush.bf16.msrb.mxu3 %v3510_v38 }
  0x86   : > { %998 = vmatpush.bf16.msrb.mxu0 %v3508_v35 }
  0x87   : > { %1011 = vmatpush.bf16.msrb.mxu1 %v3513_v40 }
  0x88   : > { %1024 = vmatpush.bf16.msrb.mxu2 %v3516_v41 }
  0x89   : > { %1037 = vmatpush.bf16.msrb.mxu3 %v3525_v58 }
  0x8a   : > { %999 = vmatpush.bf16.msrb.mxu0 %v3520_v46 }
  0x8b   : > { %1012 = vmatpush.bf16.msrb.mxu1 %v3523_v52 }
  0x8c   : > { %1025 = vmatpush.bf16.msrb.mxu2 %v3528_v0 }
  0x8d   : > { %1038 = vmatpush.bf16.msrb.mxu3 %v3534_v6 }
  0x8e   : > { %1000 = vmatpush.bf16.msrb.mxu0 %v3532_v5 }
  0x8f   : > { %1013 = vmatpush.bf16.msrb.mxu1 %v3537_v11 }
  0x90   : > { %1026 = vmatpush.bf16.msrb.mxu2 %v3540_v16 }
  0x91   : > { %1039 = vmatpush.bf16.msrb.mxu3 %v3544_v17  ;;  %661 = vmatmul.bf16.gmra.mxu0 %v2610_v18 }
  0x92   : > { %690 = vmatmul.bf16.gmra.mxu1 %v2610_v18 }
  0x93   : > { %719 = vmatmul.bf16.gmra.mxu2 %v2610_v18 }
  0x94   : > { %748 = vmatmul.bf16.gmra.mxu3 %v2610_v18 }
  0xa1   : > { %666 = vmatmul.bf16.gmra.mxu0 %v2611_v19 }
  0xa2   : > { %695 = vmatmul.bf16.gmra.mxu1 %v2611_v19 }
  0xa3   : > { %724 = vmatmul.bf16.gmra.mxu2 %v2611_v19 }
  0xa4   : > { %753 = vmatmul.bf16.gmra.mxu3 %v2611_v19 }
  0xb1   : > { %1001 = vmatmul.bf16.vlgmr.msrb.gmra.mxu0 %v832_v21 }
  0xb2   : > { %1014 = vmatmul.bf16.vlgmr.msrb.gmra.mxu1 %v832_v21 }
  0xb3   : > { %1027 = vmatmul.bf16.vlgmr.msrb.gmra.mxu2 %v832_v21 }
  0xb4   : > { %1040 = vmatmul.bf16.vlgmr.msrb.gmra.mxu3 %v832_v21 }
  0xee   : > { %v652_v29 = vpop.f32.mrf.mxu0 }
  0xef   : > { %v3559_v30 = vadd.f32 %v652_v29, %v3554_v25  ;;  %v681_v31 = vpop.f32.mrf.mxu1 }
  0xf0   : > { %v3562_v32 = vadd.f32 %v681_v31, %v3556_v27 }
  0xf6   : > { %v710_v37 = vpop.f32.mrf.mxu2  ;;  %v654_v45 = vpop.f32.mrf.mxu0 }
  0xf7   : > { %v3569_v42 = vadd.f32 %v710_v37, %v3564_v33  ;;  %v739_v44 = vpop.f32.mrf.mxu3  ;;  %v655_v48 = vadd.f32 %v654_v45, %v3554_v25  ;;  %v683_v51 = vpop.f32.mrf.mxu1 }
  0xf8   : > { %v3572_v47 = vadd.f32 %v739_v44, %v3566_v36  ;;  %v684_v54 = vadd.f32 %v683_v51, %v3556_v27 }
  0xf9   : > { %763 = vst [vmem:[#allocation4 + $0x50] sm:$0xff] %v655_v48 }
  0xfa   : > { %764 = vst [vmem:[#allocation4 + $0x68] sm:$0xff] %v684_v54 }
  0xfe   : > { %v712_v56 = vpop.f32.mrf.mxu2  ;;  %v657_v60 = vpop.f32.mrf.mxu0 }
  0xff   : > { %v713_v57 = vadd.f32 %v712_v56, %v3564_v33  ;;  %v741_v59 = vpop.f32.mrf.mxu3  ;;  %v658_v2 = vadd.f32 %v657_v60, %v3554_v25  ;;  %v686_v4 = vpop.f32.mrf.mxu1 }
 0x100   : > { %v742_v63 = vadd.f32 %v741_v59, %v3566_v36  ;;  %v687_v7 = vadd.f32 %v686_v4, %v3556_v27 }
 0x101   : > { %765 = vst [vmem:[#allocation4 + $0x30] sm:$0xff] %v713_v57 }
 0x102   : > { %766 = vst [vmem:[#allocation4 + $0x48] sm:$0xff] %v742_v63 }
 0x103   : > { %767 = vst [vmem:[#allocation4 + $0x80] sm:$0xff] %v658_v2 }
 0x104   : > { %768 = vst [vmem:[#allocation4 + $0x88] sm:$0xff] %v687_v7 }
 0x106   : > { %v715_v8 = vpop.f32.mrf.mxu2  ;;  %v659_v18 = vpop.f32.mrf.mxu0 }
 0x107   : > { %v716_v12 = vadd.f32 %v715_v8, %v3564_v33  ;;  %v744_v14 = vpop.f32.mrf.mxu3  ;;  %v660_v20 = vadd.f32 %v659_v18, %v3554_v25  ;;  %v688_v21 = vpop.f32.mrf.mxu1 }
 0x108   : > { %v745_v19 = vadd.f32 %v744_v14, %v3566_v36  ;;  %v689_v24 = vadd.f32 %v688_v21, %v3556_v27 }
 0x109   : > { %769 = vst [vmem:[#allocation4 + $0xe8] sm:$0xff] %v716_v12 }
 0x10a   : > { %770 = vst [vmem:[#allocation4 + $0xb8] sm:$0xff] %v745_v19 }
 0x10b   : > { %771 = vst [vmem:[#allocation4 + $0x60] sm:$0xff] %v660_v20 }
 0x10c   : > { %772 = vst [vmem:[#allocation4 + $0xf0] sm:$0xff] %v689_v24 }
 0x10e   : > { %v717_v29 = vpop.f32.mrf.mxu2  ;;  %v662_v44 = vpop.f32.mrf.mxu0 }
 0x10f   : > { %v718_v31 = vadd.f32 %v717_v29, %v3564_v33  ;;  %v746_v37 = vpop.f32.mrf.mxu3  ;;  %v663_v48 = vadd.f32 %v662_v44, %v3554_v25  ;;  %v691_v51 = vpop.f32.mrf.mxu1 }
 0x110   : > { %v747_v45 = vadd.f32 %v746_v37, %v3566_v36  ;;  %v692_v54 = vadd.f32 %v691_v51, %v3556_v27 }
 0x111   : > { %773 = vst [vmem:[#allocation4 + $0x8] sm:$0xff] %v718_v31 }
 0x112   : > { %774 = vst [vmem:[#allocation4 + $0x78] sm:$0xff] %v747_v45 }
 0x113   : > { %775 = vst [vmem:[#allocation4 + $0x38] sm:$0xff] %v663_v48 }
 0x114   : > { %776 = vst [vmem:[#allocation4 + $0x58] sm:$0xff] %v692_v54 }
 0x116   : > { %v720_v56 = vpop.f32.mrf.mxu2  ;;  %v664_v60 = vpop.f32.mrf.mxu0 }
 0x117   : > { %v721_v57 = vadd.f32 %v720_v56, %v3564_v33  ;;  %v749_v59 = vpop.f32.mrf.mxu3  ;;  %v665_v2 = vadd.f32 %v664_v60, %v3554_v25  ;;  %v693_v4 = vpop.f32.mrf.mxu1 }
 0x118   : > { %v750_v63 = vadd.f32 %v749_v59, %v3566_v36  ;;  %v694_v7 = vadd.f32 %v693_v4, %v3556_v27 }
 0x119   : > { %777 = vst [vmem:[#allocation4 + $0x40] sm:$0xff] %v721_v57 }
 0x11a   : > { %778 = vst [vmem:[#allocation4 + $0xc8] sm:$0xff] %v750_v63 }
 0x11b   : > { %779 = vst [vmem:[#allocation4 + $0xe0] sm:$0xff] %v665_v2 }
 0x11c   : > { %780 = vst [vmem:[#allocation4 + $0x90] sm:$0xff] %v694_v7 }
 0x11e   : > { %v722_v8 = vpop.f32.mrf.mxu2  ;;  %v667_v18 = vpop.f32.mrf.mxu0 }
 0x11f   : > { %v723_v12 = vadd.f32 %v722_v8, %v3564_v33  ;;  %v751_v14 = vpop.f32.mrf.mxu3  ;;  %v668_v20 = vadd.f32 %v667_v18, %v3554_v25  ;;  %v696_v21 = vpop.f32.mrf.mxu1 }
 0x120   : > { %v752_v19 = vadd.f32 %v751_v14, %v3566_v36  ;;  %v697_v24 = vadd.f32 %v696_v21, %v3556_v27 }
 0x121   : > { %781 = vst [vmem:[#allocation4 + $0x70] sm:$0xff] %v723_v12 }
 0x122   : > { %782 = vst [vmem:[#allocation4 + $0xc0] sm:$0xff] %v752_v19 }
 0x123   : > { %783 = vst [vmem:[#allocation4 + $0xa8] sm:$0xff] %v668_v20 }
 0x124   : > { %784 = vst [vmem:[#allocation4 + $0xd0] sm:$0xff] %v697_v24 }
 0x126   : > { %v725_v29 = vpop.f32.mrf.mxu2  ;;  %v669_v44 = vpop.f32.mrf.mxu0 }
 0x127   : > { %v726_v31 = vadd.f32 %v725_v29, %v3564_v33  ;;  %v754_v37 = vpop.f32.mrf.mxu3  ;;  %v670_v48 = vadd.f32 %v669_v44, %v3554_v25  ;;  %v698_v51 = vpop.f32.mrf.mxu1 }
 0x128   : > { %v755_v45 = vadd.f32 %v754_v37, %v3566_v36  ;;  %v699_v54 = vadd.f32 %v698_v51, %v3556_v27 }
 0x129   : > { %785 = vst [vmem:[#allocation4 + $0x10] sm:$0xff] %v726_v31 }
 0x12a   : > { %786 = vst [vmem:[#allocation4 + $0x28] sm:$0xff] %v755_v45 }
 0x12b   : > { %787 = vst [vmem:[#allocation4 + $0xa0] sm:$0xff] %v670_v48 }
 0x12c   : > { %788 = vst [vmem:[#allocation4 + $0xf8] sm:$0xff] %v699_v54 }
 0x12e   : > { %v727_v56 = vpop.f32.mrf.mxu2  ;;  %v1002_v60 = vpop.f32.mrf.mxu0 }
 0x12f   : > { %v728_v57 = vadd.f32 %v727_v56, %v3564_v33  ;;  %v756_v59 = vpop.f32.mrf.mxu3  ;;  %v1045_v2 = vadd.f32 %v1002_v60, %v3559_v30  ;;  %v1015_v4 = vpop.f32.mrf.mxu1 }
 0x130   : > { %v757_v63 = vadd.f32 %v756_v59, %v3566_v36  ;;  %v1046_v25 = vadd.f32 %v1015_v4, %v3562_v32 }
 0x131   : > { %789 = vst [vmem:[#allocation4 + $0x20] sm:$0xff] %v728_v57  ;;  %v2558_v7 = vmul.f32 -1.442695, %v1045_v2 }
 0x132   : > { %790 = vst [vmem:[#allocation4 + $0x98] sm:$0xff] %v757_v63  ;;  %v2559_v8 = vmul.f32 -1.442695, %v1046_v25 }
 0x133   : > { %2794 = vpow2.f32 %v2558_v7 }
 0x134   : > { %2796 = vpow2.f32 %v2559_v8 }
 0x136   : > { %v1028_v27 = vpop.f32.mrf.mxu2  ;;  %v1004_v33 = vpop.f32.mrf.mxu0 }
 0x137   : > { %v1047_v12 = vadd.f32 %v1028_v27, %v3569_v42  ;;  %v1041_v14 = vpop.f32.mrf.mxu3  ;;  %v1017_v18 = vpop.f32.mrf.mxu1 }
 0x138   : > { %v1048_v44 = vadd.f32 %v1041_v14, %v3572_v47 }
 0x139   : > { %v2560_v19 = vmul.f32 -1.442695, %v1047_v12  ;;  %v2795_v20 = vpop.eup %2794  ;;  %v824_v12 = vld [vmem:[#allocation3] sm:$0xff] }
 0x13a   : > { %v2797_v36 = vpop.eup %2796  ;;  %v1058_v21 = vadd.f32 1.0, %v2795_v20 }
 0x13b   : > { %2798 = vpow2.f32 %v2560_v19  ;;  %v1059_v30 = vadd.f32 1.0, %v2797_v36 }
 0x13c   : > { %2800 = vrcp.f32 %v1058_v21  ;;  %v1072_v56 = vand.u32 2147483648, %v1058_v21  ;;  %v1070_v60 = vand.u32 2147483647, %v1058_v21  ;;  %vm1066_vm2 = vweird.f32 %v1058_v21 }
 0x13d   : > { %2802 = vrcp.f32 %v1059_v30  ;;  %v1087_v57 = vand.u32 2147483648, %v1059_v30  ;;  %v1085_v2 = vand.u32 2147483647, %v1059_v30  ;;  %vm1081_vm3 = vweird.f32 %v1059_v30 }
 0x13e   : > { %v1030_v32 = vpop.f32.mrf.mxu2  ;;  %v1073_v7 = vor.u32 1.1754944e-38, %v1072_v56  ;;  %vm1071_vm6 = vcmp.eq.f32.partialorder %v1070_v60, 8.507059e+37 }
 0x13f   : > { %v1043_v24 = vpop.f32.mrf.mxu3  ;;  %v1088_v27 = vor.u32 1.1754944e-38, %v1087_v57  ;;  %vm1086_vm7 = vcmp.eq.f32.partialorder %v1085_v2, 8.507059e+37 }
 0x141   : > { %v2799_v29 = vpop.eup %2798 }
 0x142   : > { %v1060_v31 = vadd.f32 1.0, %v2799_v29  ;;  %v2801_v37 = vpop.eup %2800 }
 0x143   : > { %v2803_v45 = vpop.eup %2802  ;;  %v1062_v42 = vmul.f32 %v2801_v37, %v1058_v21  ;;  %vm1067_vm0 = vweird.f32 %v2801_v37 }
 0x144   : > { %2804 = vrcp.f32 %v1060_v31  ;;  %v1077_v48 = vmul.f32 %v2803_v45, %v1059_v30  ;;  %vm1082_vm1 = vweird.f32 %v2803_v45  ;;  %vm1068_vm4 = vmor %vm1066_vm2, %vm1067_vm0  ;;  %vm1096_vm9 = vweird.f32 %v1060_v31 }
 0x145   : > { %v1063_v51 = vsub.f32 1.0, %v1062_v42  ;;  %2806 = vtanh.f32 %v1048_v44  ;;  %vm1083_vm5 = vmor %vm1081_vm3, %vm1082_vm1  ;;  %v1102_v44 = vand.u32 2147483648, %v1060_v31 }
 0x146   : > { %v1078_v54 = vsub.f32 1.0, %v1077_v48 }
 0x147   : > { %v1064_v59 = vmul.f32 %v2801_v37, %v1063_v51  ;;  %v1103_v48 = vor.u32 1.1754944e-38, %v1102_v44 }
 0x148   : > { %v1079_v63 = vmul.f32 %v2803_v45, %v1078_v54 }
 0x149   : > { %v1065_v25 = vadd.f32 %v2801_v37, %v1064_v59 }
 0x14a   : > { %v2805_v4 = vpop.eup %2804  ;;  %v1080_v8 = vadd.f32 %v2803_v45, %v1079_v63 }
 0x14b   : > { %v1092_v47 = vmul.f32 %v2805_v4, %v1060_v31  ;;  %v1069_v14 = vsel %vm1068_vm4, %v2801_v37, %v1065_v25  ;;  %v2807_v33 = vpop.eup %2806  ;;  %vm1097_vm8 = vweird.f32 %v2805_v4  ;;  %v1100_v37 = vand.u32 2147483647, %v1060_v31 }
 0x14c   : > { %v1074_v19 = vsel %vm1071_vm6, %v1073_v7, %v1069_v14  ;;  %v1084_v20 = vsel %vm1083_vm5, %v2803_v45, %v1080_v8  ;;  %vm1098_vm10 = vmor %vm1096_vm9, %vm1097_vm8 }
 0x14d   : > { %v1093_v18 = vsub.f32 1.0, %v1092_v47  ;;  %v1089_v36 = vsel %vm1086_vm7, %v1088_v27, %v1084_v20  ;;  %v1108_v32 = vmul.f32 %v2807_v33, %v1074_v19  ;;  %vm1101_vm11 = vcmp.eq.f32.partialorder %v1100_v37, 8.507059e+37 }
 0x14e   : > { %v1107_v29 = vmul.f32 %v1089_v36, %v824_v12 }
 0x14f   : > { %v1094_v24 = vmul.f32 %v2805_v4, %v1093_v18 }
 0x150   : > { %v3606_v21 = vadd.f32 %v1108_v32, %v1107_v29 }
 0x151   : > { %v1095_v30 = vadd.f32 %v2805_v4, %v1094_v24 }
 0x152   : > { %2808 = vtanh.f32 %v3606_v21 }
 0x153   : > { %v1099_v42 = vsel %vm1098_vm10, %v2805_v4, %v1095_v30 }
 0x154   : > { %v1104_v51 = vsel %vm1101_vm11, %v1103_v48, %v1099_v42 }
 0x158   : > { %v2809_v45 = vpop.eup %2808 }
 0x159   : > { %v1111_v54 = vmul.f32 %v2809_v45, %v1104_v51  ;;  %1118 = sbr.rel (%p2562_p1) target bundleno = 352 (0x160), region = 76 }
 0x15b   : > { %v1112_v56 = vpack.c.bf16 %v1111_v54, %v1111_v54 }
 0x15d   : > { %1113 = vst [vmem:[%s3447_s1] sm:$0xf] %v1112_v56 }
 0x15e   : > { %1119 = vst [vmem:[#allocation17] sm:$0xff] %v1111_v54 }
 0x15f   : > { %1120 = vst [vmem:[#allocation19] sm:$0xff] %v3606_v21 }
 0x160 PF: > { %1128 = vmatpush.bf16.msra.mxu0 %v3452_v39  ;;  %1141 = vmatpush.bf16.msra.mxu1 %v3454_v43  ;;  %s1250_s19 = sadd.s32 1, %s3552_s13  ;;  %v1124_v31 = vld [vmem:[#allocation4 + $0x50] sm:$0xff]  ;;  %v1125_v57 = vld [vmem:[#allocation4 + $0x68] sm:$0xff] }
 0x161   : > { %1154 = vmatpush.bf16.msra.mxu2 %v3456_v49  ;;  %1167 = vmatpush.bf16.msra.mxu3 %v3461_v53  ;;  %v1126_v47 = vld [vmem:[#allocation4 + $0x30] sm:$0xff]  ;;  %v1127_v32 = vld [vmem:[#allocation4 + $0x48] sm:$0xff]  ;;  %p2567_p4 = scmp.ne.s32.totalorder %s1250_s19, 19 }
 0x164   : > { %1129 = vmatpush.bf16.msra.mxu0 %v3459_v50  ;;  %1142 = vmatpush.bf16.msra.mxu1 %v3464_v55 }
 0x165   : > { %1155 = vmatpush.bf16.msra.mxu2 %v3467_v61  ;;  %1168 = vmatpush.bf16.msra.mxu3 %v3473_v1 }
 0x168   : > { %1130 = vmatpush.bf16.msra.mxu0 %v3471_v62  ;;  %1143 = vmatpush.bf16.msra.mxu1 %v3476_v3 }
 0x169   : > { %1156 = vmatpush.bf16.msra.mxu2 %v3479_v9  ;;  %1169 = vmatpush.bf16.msra.mxu3 %v3485_v13 }
 0x16c   : > { %1131 = vmatpush.bf16.msra.mxu0 %v3483_v10  ;;  %1144 = vmatpush.bf16.msra.mxu1 %v3488_v15 }
 0x16d   : > { %1157 = vmatpush.bf16.msra.mxu2 %v3492_v22  ;;  %1170 = vmatpush.bf16.msra.mxu3 %v3498_v26 }
 0x170   : > { %1132 = vmatpush.bf16.msra.mxu0 %v3496_v23  ;;  %1145 = vmatpush.bf16.msra.mxu1 %v3501_v28 }
 0x171   : > { %1158 = vmatpush.bf16.msra.mxu2 %v3504_v34  ;;  %1171 = vmatpush.bf16.msra.mxu3 %v3510_v38 }
 0x174   : > { %1133 = vmatpush.bf16.msra.mxu0 %v3508_v35  ;;  %1146 = vmatpush.bf16.msra.mxu1 %v3513_v40 }
 0x175   : > { %1159 = vmatpush.bf16.msra.mxu2 %v3516_v41  ;;  %1172 = vmatpush.bf16.msra.mxu3 %v3525_v58 }
 0x178   : > { %1134 = vmatpush.bf16.msra.mxu0 %v3520_v46  ;;  %1147 = vmatpush.bf16.msra.mxu1 %v3523_v52 }
 0x179   : > { %1160 = vmatpush.bf16.msra.mxu2 %v3528_v0  ;;  %1173 = vmatpush.bf16.msra.mxu3 %v3534_v6 }
 0x17c   : > { %1135 = vmatpush.bf16.msra.mxu0 %v3532_v5  ;;  %1148 = vmatpush.bf16.msra.mxu1 %v3537_v11 }
 0x17d   : > { %1161 = vmatpush.bf16.msra.mxu2 %v3540_v16  ;;  %1174 = vmatpush.bf16.msra.mxu3 %v3544_v17 }
 0x17f   : > { %1136 = vmatmul.bf16.vlgmr.msra.gmra.mxu0 %v1112_v56  ;;  %1149 = vmatmul.bf16.vlgmr.msra.gmra.mxu1 %v1112_v56 }
 0x180   : > { %1162 = vmatmul.bf16.vlgmr.msra.gmra.mxu2 %v1112_v56  ;;  %1175 = vmatmul.bf16.vlgmr.msra.gmra.mxu3 %v1112_v56 }
 0x1fc   : > { %v1137_v59 = vpop.f32.mrf.mxu0  ;;  %v1150_v60 = vpop.f32.mrf.mxu1 }
 0x1fd   : > { %v1180_v63 = vadd.f32 %v1137_v59, %v1124_v31  ;;  %v1181_v2 = vadd.f32 %v1150_v60, %v1125_v57 }
 0x1ff   : > { %v2563_v4 = vmul.f32 -1.442695, %v1180_v63  ;;  %v2564_v25 = vmul.f32 -1.442695, %v1181_v2 }
 0x201   : > { %2810 = vpow2.f32 %v2563_v4 }
 0x202   : > { %2812 = vpow2.f32 %v2564_v25 }
 0x203   : > { %v1163_v7 = vpop.f32.mrf.mxu2  ;;  %v1176_v8 = vpop.f32.mrf.mxu3 }
 0x204   : > { %v1182_v27 = vadd.f32 %v1163_v7, %v1126_v47  ;;  %v1139_v12 = vpop.f32.mrf.mxu0  ;;  %v1152_v14 = vpop.f32.mrf.mxu1  ;;  %v1183_v44 = vadd.f32 %v1176_v8, %v1127_v32 }
 0x206   : > { %v2565_v33 = vmul.f32 -1.442695, %v1182_v27 }
 0x207   : > { %v2811_v18 = vpop.eup %2810 }
 0x208   : > { %v2813_v19 = vpop.eup %2812  ;;  %v1193_v20 = vadd.f32 1.0, %v2811_v18  ;;  %2814 = vpow2.f32 %v2565_v33 }
 0x209   : > { %v1194_v36 = vadd.f32 1.0, %v2813_v19 }
 0x20a   : > { %2816 = vrcp.f32 %v1193_v20  ;;  %v1207_v31 = vand.u32 2147483648, %v1193_v20  ;;  %v1205_v60 = vand.u32 2147483647, %v1193_v20  ;;  %vm1201_vm14 = vweird.f32 %v1193_v20 }
 0x20b   : > { %2818 = vrcp.f32 %v1194_v36  ;;  %v1165_v24 = vpop.f32.mrf.mxu2  ;;  %v1178_v29 = vpop.f32.mrf.mxu3  ;;  %v1222_v57 = vand.u32 2147483648, %v1194_v36  ;;  %v1220_v2 = vand.u32 2147483647, %v1194_v36  ;;  %vm1216_vm15 = vweird.f32 %v1194_v36 }
 0x20c   : > { %v1208_v8 = vor.u32 1.1754944e-38, %v1207_v31  ;;  %vm1206_vm1 = vcmp.eq.f32.partialorder %v1205_v60, 8.507059e+37 }
 0x20d   : > { %v1223_v12 = vor.u32 1.1754944e-38, %v1222_v57  ;;  %vm1221_vm3 = vcmp.eq.f32.partialorder %v1220_v2, 8.507059e+37 }
 0x20e   : > { %v2815_v30 = vpop.eup %2814 }
 0x20f   : > { %v1195_v37 = vadd.f32 1.0, %v2815_v30 }
 0x210   : > { %v2817_v42 = vpop.eup %2816 }
 0x211   : > { %v2819_v48 = vpop.eup %2818  ;;  %v1197_v45 = vmul.f32 %v2817_v42, %v1193_v20  ;;  %2820 = vrcp.f32 %v1195_v37  ;;  %vm1202_vm12 = vweird.f32 %v2817_v42  ;;  %vm1231_vm5 = vweird.f32 %v1195_v37 }
 0x212   : > { %v1212_v51 = vmul.f32 %v2819_v48, %v1194_v36  ;;  %2822 = vtanh.f32 %v1183_v44  ;;  %vm1217_vm13 = vweird.f32 %v2819_v48  ;;  %vm1203_vm0 = vmor %vm1201_vm14, %vm1202_vm12  ;;  %v1237_v44 = vand.u32 2147483648, %v1195_v37 }
 0x213   : > { %v1198_v54 = vsub.f32 1.0, %v1197_v45  ;;  %vm1218_vm2 = vmor %vm1216_vm15, %vm1217_vm13 }
 0x214   : > { %v1213_v56 = vsub.f32 1.0, %v1212_v51  ;;  %v1238_v51 = vor.u32 1.1754944e-38, %v1237_v44 }
 0x215   : > { %v1199_v59 = vmul.f32 %v2817_v42, %v1198_v54 }
 0x216   : > { %v1214_v63 = vmul.f32 %v2819_v48, %v1213_v56 }
 0x217   : > { %v2821_v4 = vpop.eup %2820  ;;  %v1200_v25 = vadd.f32 %v2817_v42, %v1199_v59 }
 0x218   : > { %v2823_v47 = vpop.eup %2822  ;;  %v1227_v7 = vmul.f32 %v2821_v4, %v1195_v37  ;;  %v1215_v27 = vadd.f32 %v2819_v48, %v1214_v63  ;;  %vm1232_vm4 = vweird.f32 %v2821_v4 }
 0x219   : > { %v1204_v14 = vsel %vm1203_vm0, %v2817_v42, %v1200_v25  ;;  %v1235_v42 = vand.u32 2147483647, %v1195_v37  ;;  %vm1233_vm6 = vmor %vm1231_vm5, %vm1232_vm4 }
 0x21a   : > { %v1228_v33 = vsub.f32 1.0, %v1227_v7  ;;  %v1209_v18 = vsel %vm1206_vm1, %v1208_v8, %v1204_v14  ;;  %v1219_v19 = vsel %vm1218_vm2, %v2819_v48, %v1215_v27 }
 0x21b   : > { %v1224_v32 = vsel %vm1221_vm3, %v1223_v12, %v1219_v19  ;;  %v1243_v24 = vmul.f32 %v2823_v47, %v1209_v18  ;;  %vm1236_vm7 = vcmp.eq.f32.partialorder %v1235_v42, 8.507059e+37 }
 0x21c   : > { %v1229_v29 = vmul.f32 %v2821_v4, %v1228_v33  ;;  %v1242_v30 = vmul.f32 %v1224_v32, %v3606_v21 }
 0x21e   : > { %v3646_v20 = vadd.f32 %v1243_v24, %v1242_v30  ;;  %v1230_v36 = vadd.f32 %v2821_v4, %v1229_v29 }
 0x220   : > { %2824 = vtanh.f32 %v3646_v20  ;;  %v1234_v45 = vsel %vm1233_vm6, %v2821_v4, %v1230_v36 }
 0x221   : > { %v1239_v54 = vsel %vm1236_vm7, %v1238_v51, %v1234_v45 }
 0x226   : > { %v2825_v48 = vpop.eup %2824 }
 0x227   : > { %v1246_v56 = vmul.f32 %v2825_v48, %v1239_v54  ;;  %1254 = sbr.rel (%p2567_p4) target bundleno = 558 (0x22e), region = 80 }
 0x229   : > { %v1247_v31 = vpack.c.bf16 %v1246_v56, %v1246_v56 }
 0x22b   : > { %2566 = vst [vmem:[%s3447_s1 + $0x4] sm:$0xf] %v1247_v31 }
 0x22c   : > { %1255 = vst [vmem:[#allocation17] sm:$0xff] %v1246_v56 }
 0x22d   : > { %1256 = vst [vmem:[#allocation19] sm:$0xff] %v3646_v20 }
 0x22e PF: > { %1264 = vmatpush.bf16.msrb.mxu0 %v3452_v39  ;;  %1277 = vmatpush.bf16.msrb.mxu1 %v3454_v43  ;;  %s1386_s24 = sadd.s32 2, %s3552_s13  ;;  %v1260_v21 = vld [vmem:[#allocation4 + $0x80] sm:$0xff]  ;;  %v1261_v37 = vld [vmem:[#allocation4 + $0x88] sm:$0xff]  ;;  %v1263_v24 = vld [vmem:[#allocation4 + $0xb8] sm:$0xff] }
 0x22f   : > { %1290 = vmatpush.bf16.msrb.mxu2 %v3456_v49  ;;  %1303 = vmatpush.bf16.msrb.mxu3 %v3461_v53  ;;  %v1262_v25 = vld [vmem:[#allocation4 + $0xe8] sm:$0xff]  ;;  %p2572_p11 = scmp.ne.s32.totalorder %s1386_s24, 19 }
 0x232   : > { %1265 = vmatpush.bf16.msrb.mxu0 %v3459_v50  ;;  %1278 = vmatpush.bf16.msrb.mxu1 %v3464_v55 }
 0x233   : > { %1291 = vmatpush.bf16.msrb.mxu2 %v3467_v61  ;;  %1304 = vmatpush.bf16.msrb.mxu3 %v3473_v1 }
 0x236   : > { %1266 = vmatpush.bf16.msrb.mxu0 %v3471_v62  ;;  %1279 = vmatpush.bf16.msrb.mxu1 %v3476_v3 }
 0x237   : > { %1292 = vmatpush.bf16.msrb.mxu2 %v3479_v9  ;;  %1305 = vmatpush.bf16.msrb.mxu3 %v3485_v13 }
 0x23a   : > { %1267 = vmatpush.bf16.msrb.mxu0 %v3483_v10  ;;  %1280 = vmatpush.bf16.msrb.mxu1 %v3488_v15 }
 0x23b   : > { %1293 = vmatpush.bf16.msrb.mxu2 %v3492_v22  ;;  %1306 = vmatpush.bf16.msrb.mxu3 %v3498_v26 }
 0x23e   : > { %1268 = vmatpush.bf16.msrb.mxu0 %v3496_v23  ;;  %1281 = vmatpush.bf16.msrb.mxu1 %v3501_v28 }
 0x23f   : > { %1294 = vmatpush.bf16.msrb.mxu2 %v3504_v34  ;;  %1307 = vmatpush.bf16.msrb.mxu3 %v3510_v38 }
 0x242   : > { %1269 = vmatpush.bf16.msrb.mxu0 %v3508_v35  ;;  %1282 = vmatpush.bf16.msrb.mxu1 %v3513_v40 }
 0x243   : > { %1295 = vmatpush.bf16.msrb.mxu2 %v3516_v41  ;;  %1308 = vmatpush.bf16.msrb.mxu3 %v3525_v58 }
 0x246   : > { %1270 = vmatpush.bf16.msrb.mxu0 %v3520_v46  ;;  %1283 = vmatpush.bf16.msrb.mxu1 %v3523_v52 }
 0x247   : > { %1296 = vmatpush.bf16.msrb.mxu2 %v3528_v0  ;;  %1309 = vmatpush.bf16.msrb.mxu3 %v3534_v6 }
 0x24a   : > { %1271 = vmatpush.bf16.msrb.mxu0 %v3532_v5  ;;  %1284 = vmatpush.bf16.msrb.mxu1 %v3537_v11 }
 0x24b   : > { %1297 = vmatpush.bf16.msrb.mxu2 %v3540_v16  ;;  %1310 = vmatpush.bf16.msrb.mxu3 %v3544_v17 }
 0x24d   : > { %1272 = vmatmul.bf16.vlgmr.msrb.gmra.mxu0 %v1247_v31  ;;  %1285 = vmatmul.bf16.vlgmr.msrb.gmra.mxu1 %v1247_v31 }
 0x24e   : > { %1298 = vmatmul.bf16.vlgmr.msrb.gmra.mxu2 %v1247_v31  ;;  %1311 = vmatmul.bf16.vlgmr.msrb.gmra.mxu3 %v1247_v31 }
 0x2ca   : > { %v1273_v57 = vpop.f32.mrf.mxu0  ;;  %v1286_v59 = vpop.f32.mrf.mxu1 }
 0x2cb   : > { %v1316_v60 = vadd.f32 %v1273_v57, %v1260_v21  ;;  %v1317_v63 = vadd.f32 %v1286_v59, %v1261_v37 }
 0x2cd   : > { %v2568_v2 = vmul.f32 -1.442695, %v1316_v60  ;;  %v2569_v4 = vmul.f32 -1.442695, %v1317_v63 }
 0x2cf   : > { %2826 = vpow2.f32 %v2568_v2 }
 0x2d0   : > { %2828 = vpow2.f32 %v2569_v4 }
 0x2d1   : > { %v1299_v47 = vpop.f32.mrf.mxu2  ;;  %v1312_v7 = vpop.f32.mrf.mxu3 }
 0x2d2   : > { %v1318_v8 = vadd.f32 %v1299_v47, %v1262_v25  ;;  %v1275_v27 = vpop.f32.mrf.mxu0  ;;  %v1288_v12 = vpop.f32.mrf.mxu1  ;;  %v1319_v44 = vadd.f32 %v1312_v7, %v1263_v24 }
 0x2d4   : > { %v2570_v14 = vmul.f32 -1.442695, %v1318_v8 }
 0x2d5   : > { %v2827_v33 = vpop.eup %2826 }
 0x2d6   : > { %v2829_v18 = vpop.eup %2828  ;;  %v1329_v19 = vadd.f32 1.0, %v2827_v33  ;;  %2830 = vpow2.f32 %v2570_v14 }
 0x2d7   : > { %v1330_v32 = vadd.f32 1.0, %v2829_v18 }
 0x2d8   : > { %2832 = vrcp.f32 %v1329_v19  ;;  %v1343_v21 = vand.u32 2147483648, %v1329_v19  ;;  %v1341_v59 = vand.u32 2147483647, %v1329_v19  ;;  %vm1337_vm10 = vweird.f32 %v1329_v19 }
 0x2d9   : > { %2834 = vrcp.f32 %v1330_v32  ;;  %v1301_v29 = vpop.f32.mrf.mxu2  ;;  %v1314_v30 = vpop.f32.mrf.mxu3  ;;  %v1358_v37 = vand.u32 2147483648, %v1330_v32  ;;  %v1356_v63 = vand.u32 2147483647, %v1330_v32  ;;  %vm1352_vm11 = vweird.f32 %v1330_v32 }
 0x2da   : > { %v1344_v7 = vor.u32 1.1754944e-38, %v1343_v21  ;;  %vm1342_vm13 = vcmp.eq.f32.partialorder %v1341_v59, 8.507059e+37 }
 0x2db   : > { %v1359_v27 = vor.u32 1.1754944e-38, %v1358_v37  ;;  %vm1357_vm15 = vcmp.eq.f32.partialorder %v1356_v63, 8.507059e+37 }
 0x2dc   : > { %v2831_v36 = vpop.eup %2830 }
 0x2dd   : > { %v1331_v42 = vadd.f32 1.0, %v2831_v36 }
 0x2de   : > { %v2833_v45 = vpop.eup %2832 }
 0x2df   : > { %v2835_v51 = vpop.eup %2834  ;;  %v1333_v48 = vmul.f32 %v2833_v45, %v1329_v19  ;;  %2836 = vrcp.f32 %v1331_v42  ;;  %vm1338_vm8 = vweird.f32 %v2833_v45  ;;  %vm1367_vm1 = vweird.f32 %v1331_v42 }
 0x2e0   : > { %v1348_v54 = vmul.f32 %v2835_v51, %v1330_v32  ;;  %2838 = vtanh.f32 %v1319_v44  ;;  %vm1353_vm9 = vweird.f32 %v2835_v51  ;;  %vm1339_vm12 = vmor %vm1337_vm10, %vm1338_vm8  ;;  %v1373_v44 = vand.u32 2147483648, %v1331_v42 }
 0x2e1   : > { %v1334_v56 = vsub.f32 1.0, %v1333_v48  ;;  %vm1354_vm14 = vmor %vm1352_vm11, %vm1353_vm9 }
 0x2e2   : > { %v1349_v31 = vsub.f32 1.0, %v1348_v54  ;;  %v1374_v54 = vor.u32 1.1754944e-38, %v1373_v44 }
 0x2e3   : > { %v1335_v57 = vmul.f32 %v2833_v45, %v1334_v56 }
 0x2e4   : > { %v1350_v60 = vmul.f32 %v2835_v51, %v1349_v31 }
 0x2e5   : > { %v2837_v2 = vpop.eup %2836  ;;  %v1336_v4 = vadd.f32 %v2833_v45, %v1335_v57 }
 0x2e6   : > { %v2839_v25 = vpop.eup %2838  ;;  %v1363_v47 = vmul.f32 %v2837_v2, %v1331_v42  ;;  %v1351_v8 = vadd.f32 %v2835_v51, %v1350_v60  ;;  %vm1368_vm0 = vweird.f32 %v2837_v2 }
 0x2e7   : > { %v1340_v12 = vsel %vm1339_vm12, %v2833_v45, %v1336_v4  ;;  %v1371_v45 = vand.u32 2147483647, %v1331_v42  ;;  %vm1369_vm2 = vmor %vm1367_vm1, %vm1368_vm0 }
 0x2e8   : > { %v1364_v14 = vsub.f32 1.0, %v1363_v47  ;;  %v1345_v33 = vsel %vm1342_vm13, %v1344_v7, %v1340_v12  ;;  %v1355_v18 = vsel %vm1354_vm14, %v2835_v51, %v1351_v8 }
 0x2e9   : > { %v1360_v24 = vsel %vm1357_vm15, %v1359_v27, %v1355_v18  ;;  %v1379_v29 = vmul.f32 %v2839_v25, %v1345_v33  ;;  %vm1372_vm3 = vcmp.eq.f32.partialorder %v1371_v45, 8.507059e+37 }
 0x2ea   : > { %v1365_v30 = vmul.f32 %v2837_v2, %v1364_v14  ;;  %v1378_v36 = vmul.f32 %v1360_v24, %v3646_v20 }
 0x2ec   : > { %v3687_v19 = vadd.f32 %v1379_v29, %v1378_v36  ;;  %v1366_v32 = vadd.f32 %v2837_v2, %v1365_v30 }
 0x2ee   : > { %2840 = vtanh.f32 %v3687_v19  ;;  %v1370_v48 = vsel %vm1369_vm2, %v2837_v2, %v1366_v32 }
 0x2ef   : > { %v1375_v56 = vsel %vm1372_vm3, %v1374_v54, %v1370_v48 }
 0x2f4   : > { %v2841_v51 = vpop.eup %2840 }
 0x2f5   : > { %v1382_v31 = vmul.f32 %v2841_v51, %v1375_v56  ;;  %1390 = sbr.rel (%p2572_p11) target bundleno = 764 (0x2fc), region = 84 }
 0x2f7   : > { %v1383_v21 = vpack.c.bf16 %v1382_v31, %v1382_v31 }
 0x2f9   : > { %2571 = vst [vmem:[%s3447_s1 + $0x8] sm:$0xf] %v1383_v21 }
 0x2fa   : > { %1391 = vst [vmem:[#allocation17] sm:$0xff] %v1382_v31 }
 0x2fb   : > { %1392 = vst [vmem:[#allocation19] sm:$0xff] %v3687_v19 }
 0x2fc PF: > { %1400 = vmatpush.bf16.msra.mxu0 %v3452_v39  ;;  %1413 = vmatpush.bf16.msra.mxu1 %v3454_v43  ;;  %s1522_s9 = sadd.s32 3, %s3552_s13  ;;  %v1396_v20 = vld [vmem:[#allocation4 + $0x60] sm:$0xff]  ;;  %v1397_v42 = vld [vmem:[#allocation4 + $0xf0] sm:$0xff]  ;;  %v1398_v4 = vld [vmem:[#allocation4 + $0x8] sm:$0xff] }
 0x2fd   : > { %1426 = vmatpush.bf16.msra.mxu2 %v3456_v49  ;;  %1439 = vmatpush.bf16.msra.mxu3 %v3461_v53  ;;  %v1399_v29 = vld [vmem:[#allocation4 + $0x78] sm:$0xff]  ;;  %p2577_p13 = scmp.ne.s32.totalorder %s1522_s9, 19 }
 0x300   : > { %1401 = vmatpush.bf16.msra.mxu0 %v3459_v50  ;;  %1414 = vmatpush.bf16.msra.mxu1 %v3464_v55 }
 0x301   : > { %1427 = vmatpush.bf16.msra.mxu2 %v3467_v61  ;;  %1440 = vmatpush.bf16.msra.mxu3 %v3473_v1 }
 0x304   : > { %1402 = vmatpush.bf16.msra.mxu0 %v3471_v62  ;;  %1415 = vmatpush.bf16.msra.mxu1 %v3476_v3 }
 0x305   : > { %1428 = vmatpush.bf16.msra.mxu2 %v3479_v9  ;;  %1441 = vmatpush.bf16.msra.mxu3 %v3485_v13 }
 0x308   : > { %1403 = vmatpush.bf16.msra.mxu0 %v3483_v10  ;;  %1416 = vmatpush.bf16.msra.mxu1 %v3488_v15 }
 0x309   : > { %1429 = vmatpush.bf16.msra.mxu2 %v3492_v22  ;;  %1442 = vmatpush.bf16.msra.mxu3 %v3498_v26 }
 0x30c   : > { %1404 = vmatpush.bf16.msra.mxu0 %v3496_v23  ;;  %1417 = vmatpush.bf16.msra.mxu1 %v3501_v28 }
 0x30d   : > { %1430 = vmatpush.bf16.msra.mxu2 %v3504_v34  ;;  %1443 = vmatpush.bf16.msra.mxu3 %v3510_v38 }
 0x310   : > { %1405 = vmatpush.bf16.msra.mxu0 %v3508_v35  ;;  %1418 = vmatpush.bf16.msra.mxu1 %v3513_v40 }
 0x311   : > { %1431 = vmatpush.bf16.msra.mxu2 %v3516_v41  ;;  %1444 = vmatpush.bf16.msra.mxu3 %v3525_v58 }
 0x314   : > { %1406 = vmatpush.bf16.msra.mxu0 %v3520_v46  ;;  %1419 = vmatpush.bf16.msra.mxu1 %v3523_v52 }
 0x315   : > { %1432 = vmatpush.bf16.msra.mxu2 %v3528_v0  ;;  %1445 = vmatpush.bf16.msra.mxu3 %v3534_v6 }
 0x318   : > { %1407 = vmatpush.bf16.msra.mxu0 %v3532_v5  ;;  %1420 = vmatpush.bf16.msra.mxu1 %v3537_v11 }
 0x319   : > { %1433 = vmatpush.bf16.msra.mxu2 %v3540_v16  ;;  %1446 = vmatpush.bf16.msra.mxu3 %v3544_v17 }
 0x31b   : > { %1408 = vmatmul.bf16.vlgmr.msra.gmra.mxu0 %v1383_v21  ;;  %1421 = vmatmul.bf16.vlgmr.msra.gmra.mxu1 %v1383_v21 }
 0x31c   : > { %1434 = vmatmul.bf16.vlgmr.msra.gmra.mxu2 %v1383_v21  ;;  %1447 = vmatmul.bf16.vlgmr.msra.gmra.mxu3 %v1383_v21 }
 0x398   : > { %v1409_v37 = vpop.f32.mrf.mxu0  ;;  %v1422_v57 = vpop.f32.mrf.mxu1 }
 0x399   : > { %v1452_v59 = vadd.f32 %v1409_v37, %v1396_v20  ;;  %v1453_v60 = vadd.f32 %v1422_v57, %v1397_v42 }
 0x39b   : > { %v2573_v63 = vmul.f32 -1.442695, %v1452_v59  ;;  %v2574_v2 = vmul.f32 -1.442695, %v1453_v60 }
 0x39d   : > { %2842 = vpow2.f32 %v2573_v63 }
 0x39e   : > { %2844 = vpow2.f32 %v2574_v2 }
 0x39f   : > { %v1435_v25 = vpop.f32.mrf.mxu2  ;;  %v1448_v47 = vpop.f32.mrf.mxu3 }
 0x3a0   : > { %v1454_v7 = vadd.f32 %v1435_v25, %v1398_v4  ;;  %v1411_v8 = vpop.f32.mrf.mxu0  ;;  %v1424_v27 = vpop.f32.mrf.mxu1  ;;  %v1455_v44 = vadd.f32 %v1448_v47, %v1399_v29 }
 0x3a2   : > { %v2575_v12 = vmul.f32 -1.442695, %v1454_v7 }
 0x3a3   : > { %v2843_v14 = vpop.eup %2842 }
 0x3a4   : > { %v2845_v33 = vpop.eup %2844  ;;  %v1465_v18 = vadd.f32 1.0, %v2843_v14  ;;  %2846 = vpow2.f32 %v2575_v12 }
 0x3a5   : > { %v1466_v24 = vadd.f32 1.0, %v2845_v33 }
 0x3a6   : > { %2848 = vrcp.f32 %v1465_v18  ;;  %v1479_v20 = vand.u32 2147483648, %v1465_v18  ;;  %v1477_v57 = vand.u32 2147483647, %v1465_v18  ;;  %vm1473_vm6 = vweird.f32 %v1465_v18 }
 0x3a7   : > { %2850 = vrcp.f32 %v1466_v24  ;;  %v1437_v30 = vpop.f32.mrf.mxu2  ;;  %v1450_v36 = vpop.f32.mrf.mxu3  ;;  %v1494_v42 = vand.u32 2147483648, %v1466_v24  ;;  %v1492_v60 = vand.u32 2147483647, %v1466_v24  ;;  %vm1488_vm7 = vweird.f32 %v1466_v24 }
 0x3a8   : > { %v1480_v47 = vor.u32 1.1754944e-38, %v1479_v20  ;;  %vm1478_vm9 = vcmp.eq.f32.partialorder %v1477_v57, 8.507059e+37 }
 0x3a9   : > { %v1495_v8 = vor.u32 1.1754944e-38, %v1494_v42  ;;  %vm1493_vm11 = vcmp.eq.f32.partialorder %v1492_v60, 8.507059e+37 }
 0x3aa   : > { %v2847_v32 = vpop.eup %2846 }
 0x3ab   : > { %v1467_v45 = vadd.f32 1.0, %v2847_v32 }
 0x3ac   : > { %v2849_v48 = vpop.eup %2848 }
 0x3ad   : > { %v2851_v54 = vpop.eup %2850  ;;  %v1469_v51 = vmul.f32 %v2849_v48, %v1465_v18  ;;  %2852 = vrcp.f32 %v1467_v45  ;;  %vm1474_vm4 = vweird.f32 %v2849_v48  ;;  %vm1503_vm13 = vweird.f32 %v1467_v45 }
 0x3ae   : > { %v1484_v56 = vmul.f32 %v2851_v54, %v1466_v24  ;;  %2854 = vtanh.f32 %v1455_v44  ;;  %vm1489_vm5 = vweird.f32 %v2851_v54  ;;  %vm1475_vm8 = vmor %vm1473_vm6, %vm1474_vm4  ;;  %v1509_v44 = vand.u32 2147483648, %v1467_v45 }
 0x3af   : > { %v1470_v31 = vsub.f32 1.0, %v1469_v51  ;;  %vm1490_vm10 = vmor %vm1488_vm7, %vm1489_vm5 }
 0x3b0   : > { %v1485_v21 = vsub.f32 1.0, %v1484_v56  ;;  %v1510_v56 = vor.u32 1.1754944e-38, %v1509_v44 }
 0x3b1   : > { %v1471_v37 = vmul.f32 %v2849_v48, %v1470_v31 }
 0x3b2   : > { %v1486_v59 = vmul.f32 %v2851_v54, %v1485_v21 }
 0x3b3   : > { %v2853_v63 = vpop.eup %2852  ;;  %v1472_v2 = vadd.f32 %v2849_v48, %v1471_v37 }
 0x3b4   : > { %v2855_v4 = vpop.eup %2854  ;;  %v1499_v25 = vmul.f32 %v2853_v63, %v1467_v45  ;;  %v1487_v7 = vadd.f32 %v2851_v54, %v1486_v59  ;;  %vm1504_vm12 = vweird.f32 %v2853_v63 }
 0x3b5   : > { %v1476_v27 = vsel %vm1475_vm8, %v2849_v48, %v1472_v2  ;;  %v1507_v48 = vand.u32 2147483647, %v1467_v45  ;;  %vm1505_vm14 = vmor %vm1503_vm13, %vm1504_vm12 }
 0x3b6   : > { %v1500_v12 = vsub.f32 1.0, %v1499_v25  ;;  %v1481_v14 = vsel %vm1478_vm9, %v1480_v47, %v1476_v27  ;;  %v1491_v33 = vsel %vm1490_vm10, %v2851_v54, %v1487_v7 }
 0x3b7   : > { %v1496_v29 = vsel %vm1493_vm11, %v1495_v8, %v1491_v33  ;;  %v1515_v30 = vmul.f32 %v2855_v4, %v1481_v14  ;;  %vm1508_vm15 = vcmp.eq.f32.partialorder %v1507_v48, 8.507059e+37 }
 0x3b8   : > { %v1501_v36 = vmul.f32 %v2853_v63, %v1500_v12  ;;  %v1514_v32 = vmul.f32 %v1496_v29, %v3687_v19 }
 0x3ba   : > { %v3728_v18 = vadd.f32 %v1515_v30, %v1514_v32  ;;  %v1502_v24 = vadd.f32 %v2853_v63, %v1501_v36 }
 0x3bc   : > { %2856 = vtanh.f32 %v3728_v18  ;;  %v1506_v51 = vsel %vm1505_vm14, %v2853_v63, %v1502_v24 }
 0x3bd   : > { %v1511_v31 = vsel %vm1508_vm15, %v1510_v56, %v1506_v51 }
 0x3c2   : > { %v2857_v54 = vpop.eup %2856 }
 0x3c3   : > { %v1518_v21 = vmul.f32 %v2857_v54, %v1511_v31  ;;  %1526 = sbr.rel (%p2577_p13) target bundleno = 970 (0x3ca), region = 88 }
 0x3c5   : > { %v1519_v20 = vpack.c.bf16 %v1518_v21, %v1518_v21 }
 0x3c7   : > { %2576 = vst [vmem:[%s3447_s1 + $0xc] sm:$0xf] %v1519_v20 }
 0x3c8   : > { %1527 = vst [vmem:[#allocation17] sm:$0xff] %v1518_v21 }
 0x3c9   : > { %1528 = vst [vmem:[#allocation19] sm:$0xff] %v3728_v18 }
 0x3ca PF: > { %1536 = vmatpush.bf16.msrb.mxu0 %v3452_v39  ;;  %1549 = vmatpush.bf16.msrb.mxu1 %v3454_v43  ;;  %s1658_s22 = sadd.s32 4, %s3552_s13  ;;  %v1532_v19 = vld [vmem:[#allocation4 + $0x38] sm:$0xff]  ;;  %v1534_v2 = vld [vmem:[#allocation4 + $0x40] sm:$0xff]  ;;  %v1535_v30 = vld [vmem:[#allocation4 + $0xc8] sm:$0xff] }
 0x3cb   : > { %1562 = vmatpush.bf16.msrb.mxu2 %v3456_v49  ;;  %1575 = vmatpush.bf16.msrb.mxu3 %v3461_v53  ;;  %v1533_v45 = vld [vmem:[#allocation4 + $0x58] sm:$0xff]  ;;  %p2582_p7 = scmp.ne.s32.totalorder %s1658_s22, 19 }
 0x3ce   : > { %1537 = vmatpush.bf16.msrb.mxu0 %v3459_v50  ;;  %1550 = vmatpush.bf16.msrb.mxu1 %v3464_v55 }
 0x3cf   : > { %1563 = vmatpush.bf16.msrb.mxu2 %v3467_v61  ;;  %1576 = vmatpush.bf16.msrb.mxu3 %v3473_v1 }
 0x3d2   : > { %1538 = vmatpush.bf16.msrb.mxu0 %v3471_v62  ;;  %1551 = vmatpush.bf16.msrb.mxu1 %v3476_v3 }
 0x3d3   : > { %1564 = vmatpush.bf16.msrb.mxu2 %v3479_v9  ;;  %1577 = vmatpush.bf16.msrb.mxu3 %v3485_v13 }
 0x3d6   : > { %1539 = vmatpush.bf16.msrb.mxu0 %v3483_v10  ;;  %1552 = vmatpush.bf16.msrb.mxu1 %v3488_v15 }
 0x3d7   : > { %1565 = vmatpush.bf16.msrb.mxu2 %v3492_v22  ;;  %1578 = vmatpush.bf16.msrb.mxu3 %v3498_v26 }
 0x3da   : > { %1540 = vmatpush.bf16.msrb.mxu0 %v3496_v23  ;;  %1553 = vmatpush.bf16.msrb.mxu1 %v3501_v28 }
 0x3db   : > { %1566 = vmatpush.bf16.msrb.mxu2 %v3504_v34  ;;  %1579 = vmatpush.bf16.msrb.mxu3 %v3510_v38 }
 0x3de   : > { %1541 = vmatpush.bf16.msrb.mxu0 %v3508_v35  ;;  %1554 = vmatpush.bf16.msrb.mxu1 %v3513_v40 }
 0x3df   : > { %1567 = vmatpush.bf16.msrb.mxu2 %v3516_v41  ;;  %1580 = vmatpush.bf16.msrb.mxu3 %v3525_v58 }
 0x3e2   : > { %1542 = vmatpush.bf16.msrb.mxu0 %v3520_v46  ;;  %1555 = vmatpush.bf16.msrb.mxu1 %v3523_v52 }
 0x3e3   : > { %1568 = vmatpush.bf16.msrb.mxu2 %v3528_v0  ;;  %1581 = vmatpush.bf16.msrb.mxu3 %v3534_v6 }
 0x3e6   : > { %1543 = vmatpush.bf16.msrb.mxu0 %v3532_v5  ;;  %1556 = vmatpush.bf16.msrb.mxu1 %v3537_v11 }
 0x3e7   : > { %1569 = vmatpush.bf16.msrb.mxu2 %v3540_v16  ;;  %1582 = vmatpush.bf16.msrb.mxu3 %v3544_v17 }
 0x3e9   : > { %1544 = vmatmul.bf16.vlgmr.msrb.gmra.mxu0 %v1519_v20  ;;  %1557 = vmatmul.bf16.vlgmr.msrb.gmra.mxu1 %v1519_v20 }
 0x3ea   : > { %1570 = vmatmul.bf16.vlgmr.msrb.gmra.mxu2 %v1519_v20  ;;  %1583 = vmatmul.bf16.vlgmr.msrb.gmra.mxu3 %v1519_v20 }
 0x466   : > { %v1545_v42 = vpop.f32.mrf.mxu0  ;;  %v1558_v37 = vpop.f32.mrf.mxu1 }
 0x467   : > { %v1588_v57 = vadd.f32 %v1545_v42, %v1532_v19  ;;  %v1589_v59 = vadd.f32 %v1558_v37, %v1533_v45 }
 0x469   : > { %v2578_v60 = vmul.f32 -1.442695, %v1588_v57  ;;  %v2579_v63 = vmul.f32 -1.442695, %v1589_v59 }
 0x46b   : > { %2858 = vpow2.f32 %v2578_v60 }
 0x46c   : > { %2860 = vpow2.f32 %v2579_v63 }
 0x46d   : > { %v1571_v4 = vpop.f32.mrf.mxu2  ;;  %v1584_v25 = vpop.f32.mrf.mxu3 }
 0x46e   : > { %v1590_v47 = vadd.f32 %v1571_v4, %v1534_v2  ;;  %v1547_v7 = vpop.f32.mrf.mxu0  ;;  %v1560_v8 = vpop.f32.mrf.mxu1  ;;  %v1591_v44 = vadd.f32 %v1584_v25, %v1535_v30 }
 0x470   : > { %v2580_v27 = vmul.f32 -1.442695, %v1590_v47 }
 0x471   : > { %v2859_v12 = vpop.eup %2858 }
 0x472   : > { %v2861_v14 = vpop.eup %2860  ;;  %v1601_v33 = vadd.f32 1.0, %v2859_v12  ;;  %2862 = vpow2.f32 %v2580_v27 }
 0x473   : > { %v1602_v29 = vadd.f32 1.0, %v2861_v14 }
 0x474   : > { %2864 = vrcp.f32 %v1601_v33  ;;  %v1615_v19 = vand.u32 2147483648, %v1601_v33  ;;  %v1613_v37 = vand.u32 2147483647, %v1601_v33  ;;  %vm1609_vm2 = vweird.f32 %v1601_v33 }
 0x475   : > { %2866 = vrcp.f32 %v1602_v29  ;;  %v1573_v36 = vpop.f32.mrf.mxu2  ;;  %v1586_v32 = vpop.f32.mrf.mxu3  ;;  %v1630_v45 = vand.u32 2147483648, %v1602_v29  ;;  %v1628_v59 = vand.u32 2147483647, %v1602_v29  ;;  %vm1624_vm3 = vweird.f32 %v1602_v29 }
 0x476   : > { %v1616_v25 = vor.u32 1.1754944e-38, %v1615_v19  ;;  %vm1614_vm5 = vcmp.eq.f32.partialorder %v1613_v37, 8.507059e+37 }
 0x477   : > { %v1631_v7 = vor.u32 1.1754944e-38, %v1630_v45  ;;  %vm1629_vm7 = vcmp.eq.f32.partialorder %v1628_v59, 8.507059e+37 }
 0x478   : > { %v2863_v24 = vpop.eup %2862 }
 0x479   : > { %v1603_v48 = vadd.f32 1.0, %v2863_v24 }
 0x47a   : > { %v2865_v51 = vpop.eup %2864 }
 0x47b   : > { %v2867_v56 = vpop.eup %2866  ;;  %v1605_v54 = vmul.f32 %v2865_v51, %v1601_v33  ;;  %2868 = vrcp.f32 %v1603_v48  ;;  %vm1610_vm0 = vweird.f32 %v2865_v51  ;;  %vm1639_vm9 = vweird.f32 %v1603_v48 }
 0x47c   : > { %v1620_v31 = vmul.f32 %v2867_v56, %v1602_v29  ;;  %2870 = vtanh.f32 %v1591_v44  ;;  %vm1625_vm1 = vweird.f32 %v2867_v56  ;;  %vm1611_vm4 = vmor %vm1609_vm2, %vm1610_vm0  ;;  %v1645_v44 = vand.u32 2147483648, %v1603_v48 }
 0x47d   : > { %v1606_v21 = vsub.f32 1.0, %v1605_v54  ;;  %vm1626_vm6 = vmor %vm1624_vm3, %vm1625_vm1 }
 0x47e   : > { %v1621_v20 = vsub.f32 1.0, %v1620_v31  ;;  %v1646_v31 = vor.u32 1.1754944e-38, %v1645_v44 }
 0x47f   : > { %v1607_v42 = vmul.f32 %v2865_v51, %v1606_v21 }
 0x480   : > { %v1622_v57 = vmul.f32 %v2867_v56, %v1621_v20 }
 0x481   : > { %v2869_v60 = vpop.eup %2868  ;;  %v1608_v63 = vadd.f32 %v2865_v51, %v1607_v42 }
 0x482   : > { %v2871_v2 = vpop.eup %2870  ;;  %v1635_v4 = vmul.f32 %v2869_v60, %v1603_v48  ;;  %v1623_v47 = vadd.f32 %v2867_v56, %v1622_v57  ;;  %vm1640_vm8 = vweird.f32 %v2869_v60 }
 0x483   : > { %v1612_v8 = vsel %vm1611_vm4, %v2865_v51, %v1608_v63  ;;  %v1643_v51 = vand.u32 2147483647, %v1603_v48  ;;  %vm1641_vm10 = vmor %vm1639_vm9, %vm1640_vm8 }
 0x484   : > { %v1636_v27 = vsub.f32 1.0, %v1635_v4  ;;  %v1617_v12 = vsel %vm1614_vm5, %v1616_v25, %v1612_v8  ;;  %v1627_v14 = vsel %vm1626_vm6, %v2867_v56, %v1623_v47 }
 0x485   : > { %v1632_v30 = vsel %vm1629_vm7, %v1631_v7, %v1627_v14  ;;  %v1651_v36 = vmul.f32 %v2871_v2, %v1617_v12  ;;  %vm1644_vm11 = vcmp.eq.f32.partialorder %v1643_v51, 8.507059e+37 }
 0x486   : > { %v1637_v32 = vmul.f32 %v2869_v60, %v1636_v27  ;;  %v1650_v24 = vmul.f32 %v1632_v30, %v3728_v18 }
 0x488   : > { %v3769_v33 = vadd.f32 %v1651_v36, %v1650_v24  ;;  %v1638_v29 = vadd.f32 %v2869_v60, %v1637_v32 }
 0x48a   : > { %2872 = vtanh.f32 %v3769_v33  ;;  %v1642_v54 = vsel %vm1641_vm10, %v2869_v60, %v1638_v29 }
 0x48b   : > { %v1647_v21 = vsel %vm1644_vm11, %v1646_v31, %v1642_v54 }
 0x490   : > { %v2873_v56 = vpop.eup %2872 }
 0x491   : > { %v1654_v20 = vmul.f32 %v2873_v56, %v1647_v21  ;;  %1662 = sbr.rel (%p2582_p7) target bundleno = 1176 (0x498), region = 92 }
 0x493   : > { %v1655_v19 = vpack.c.bf16 %v1654_v20, %v1654_v20 }
 0x495   : > { %2581 = vst [vmem:[%s3447_s1 + $0x10] sm:$0xf] %v1655_v19 }
 0x496   : > { %1663 = vst [vmem:[#allocation17] sm:$0xff] %v1654_v20 }
 0x497   : > { %1664 = vst [vmem:[#allocation19] sm:$0xff] %v3769_v33 }
 0x498 PF: > { %1672 = vmatpush.bf16.msra.mxu0 %v3452_v39  ;;  %1685 = vmatpush.bf16.msra.mxu1 %v3454_v43  ;;  %s1794_s15 = sadd.s32 5, %s3552_s13  ;;  %v1668_v18 = vld [vmem:[#allocation4 + $0xe0] sm:$0xff]  ;;  %v1669_v48 = vld [vmem:[#allocation4 + $0x90] sm:$0xff] }
 0x499   : > { %1698 = vmatpush.bf16.msra.mxu2 %v3456_v49  ;;  %1711 = vmatpush.bf16.msra.mxu3 %v3461_v53  ;;  %v1670_v63 = vld [vmem:[#allocation4 + $0x70] sm:$0xff]  ;;  %v1671_v36 = vld [vmem:[#allocation4 + $0xc0] sm:$0xff]  ;;  %p2587_p8 = scmp.ne.s32.totalorder %s1794_s15, 19 }
 0x49c   : > { %1673 = vmatpush.bf16.msra.mxu0 %v3459_v50  ;;  %1686 = vmatpush.bf16.msra.mxu1 %v3464_v55 }
 0x49d   : > { %1699 = vmatpush.bf16.msra.mxu2 %v3467_v61  ;;  %1712 = vmatpush.bf16.msra.mxu3 %v3473_v1 }
 0x4a0   : > { %1674 = vmatpush.bf16.msra.mxu0 %v3471_v62  ;;  %1687 = vmatpush.bf16.msra.mxu1 %v3476_v3 }
 0x4a1   : > { %1700 = vmatpush.bf16.msra.mxu2 %v3479_v9  ;;  %1713 = vmatpush.bf16.msra.mxu3 %v3485_v13 }
 0x4a4   : > { %1675 = vmatpush.bf16.msra.mxu0 %v3483_v10  ;;  %1688 = vmatpush.bf16.msra.mxu1 %v3488_v15 }
 0x4a5   : > { %1701 = vmatpush.bf16.msra.mxu2 %v3492_v22  ;;  %1714 = vmatpush.bf16.msra.mxu3 %v3498_v26 }
 0x4a8   : > { %1676 = vmatpush.bf16.msra.mxu0 %v3496_v23  ;;  %1689 = vmatpush.bf16.msra.mxu1 %v3501_v28 }
 0x4a9   : > { %1702 = vmatpush.bf16.msra.mxu2 %v3504_v34  ;;  %1715 = vmatpush.bf16.msra.mxu3 %v3510_v38 }
 0x4ac   : > { %1677 = vmatpush.bf16.msra.mxu0 %v3508_v35  ;;  %1690 = vmatpush.bf16.msra.mxu1 %v3513_v40 }
 0x4ad   : > { %1703 = vmatpush.bf16.msra.mxu2 %v3516_v41  ;;  %1716 = vmatpush.bf16.msra.mxu3 %v3525_v58 }
 0x4b0   : > { %1678 = vmatpush.bf16.msra.mxu0 %v3520_v46  ;;  %1691 = vmatpush.bf16.msra.mxu1 %v3523_v52 }
 0x4b1   : > { %1704 = vmatpush.bf16.msra.mxu2 %v3528_v0  ;;  %1717 = vmatpush.bf16.msra.mxu3 %v3534_v6 }
 0x4b4   : > { %1679 = vmatpush.bf16.msra.mxu0 %v3532_v5  ;;  %1692 = vmatpush.bf16.msra.mxu1 %v3537_v11 }
 0x4b5   : > { %1705 = vmatpush.bf16.msra.mxu2 %v3540_v16  ;;  %1718 = vmatpush.bf16.msra.mxu3 %v3544_v17 }
 0x4b7   : > { %1680 = vmatmul.bf16.vlgmr.msra.gmra.mxu0 %v1655_v19  ;;  %1693 = vmatmul.bf16.vlgmr.msra.gmra.mxu1 %v1655_v19 }
 0x4b8   : > { %1706 = vmatmul.bf16.vlgmr.msra.gmra.mxu2 %v1655_v19  ;;  %1719 = vmatmul.bf16.vlgmr.msra.gmra.mxu3 %v1655_v19 }
 0x534   : > { %v1681_v45 = vpop.f32.mrf.mxu0  ;;  %v1694_v42 = vpop.f32.mrf.mxu1 }
 0x535   : > { %v1724_v37 = vadd.f32 %v1681_v45, %v1668_v18  ;;  %v1725_v57 = vadd.f32 %v1694_v42, %v1669_v48 }
 0x537   : > { %v2583_v59 = vmul.f32 -1.442695, %v1724_v37  ;;  %v2584_v60 = vmul.f32 -1.442695, %v1725_v57 }
 0x539   : > { %2874 = vpow2.f32 %v2583_v59 }
 0x53a   : > { %2876 = vpow2.f32 %v2584_v60 }
 0x53b   : > { %v1707_v2 = vpop.f32.mrf.mxu2  ;;  %v1720_v4 = vpop.f32.mrf.mxu3 }
 0x53c   : > { %v1726_v25 = vadd.f32 %v1707_v2, %v1670_v63  ;;  %v1683_v47 = vpop.f32.mrf.mxu0  ;;  %v1696_v7 = vpop.f32.mrf.mxu1  ;;  %v1727_v44 = vadd.f32 %v1720_v4, %v1671_v36 }
 0x53e   : > { %v2585_v8 = vmul.f32 -1.442695, %v1726_v25 }
 0x53f   : > { %v2875_v27 = vpop.eup %2874 }
 0x540   : > { %v2877_v12 = vpop.eup %2876  ;;  %v1737_v14 = vadd.f32 1.0, %v2875_v27  ;;  %2878 = vpow2.f32 %v2585_v8 }
 0x541   : > { %v1738_v30 = vadd.f32 1.0, %v2877_v12 }
 0x542   : > { %2880 = vrcp.f32 %v1737_v14  ;;  %v1751_v18 = vand.u32 2147483648, %v1737_v14  ;;  %v1749_v42 = vand.u32 2147483647, %v1737_v14  ;;  %vm1745_vm14 = vweird.f32 %v1737_v14 }
 0x543   : > { %2882 = vrcp.f32 %v1738_v30  ;;  %v1709_v32 = vpop.f32.mrf.mxu2  ;;  %v1722_v24 = vpop.f32.mrf.mxu3  ;;  %v1766_v48 = vand.u32 2147483648, %v1738_v30  ;;  %v1764_v57 = vand.u32 2147483647, %v1738_v30  ;;  %vm1760_vm15 = vweird.f32 %v1738_v30 }
 0x544   : > { %v1752_v4 = vor.u32 1.1754944e-38, %v1751_v18  ;;  %vm1750_vm1 = vcmp.eq.f32.partialorder %v1749_v42, 8.507059e+37 }
 0x545   : > { %v1767_v47 = vor.u32 1.1754944e-38, %v1766_v48  ;;  %vm1765_vm3 = vcmp.eq.f32.partialorder %v1764_v57, 8.507059e+37 }
 0x546   : > { %v2879_v29 = vpop.eup %2878 }
 0x547   : > { %v1739_v51 = vadd.f32 1.0, %v2879_v29 }
 0x548   : > { %v2881_v54 = vpop.eup %2880 }
 0x549   : > { %v2883_v31 = vpop.eup %2882  ;;  %v1741_v56 = vmul.f32 %v2881_v54, %v1737_v14  ;;  %2884 = vrcp.f32 %v1739_v51  ;;  %vm1746_vm12 = vweird.f32 %v2881_v54  ;;  %vm1775_vm5 = vweird.f32 %v1739_v51 }
 0x54a   : > { %v1756_v21 = vmul.f32 %v2883_v31, %v1738_v30  ;;  %2886 = vtanh.f32 %v1727_v44  ;;  %vm1761_vm13 = vweird.f32 %v2883_v31  ;;  %vm1747_vm0 = vmor %vm1745_vm14, %vm1746_vm12  ;;  %v1781_v44 = vand.u32 2147483648, %v1739_v51 }
 0x54b   : > { %v1742_v20 = vsub.f32 1.0, %v1741_v56  ;;  %vm1762_vm2 = vmor %vm1760_vm15, %vm1761_vm13 }
 0x54c   : > { %v1757_v19 = vsub.f32 1.0, %v1756_v21  ;;  %v1782_v21 = vor.u32 1.1754944e-38, %v1781_v44 }
 0x54d   : > { %v1743_v45 = vmul.f32 %v2881_v54, %v1742_v20 }
 0x54e   : > { %v1758_v37 = vmul.f32 %v2883_v31, %v1757_v19 }
 0x54f   : > { %v2885_v59 = vpop.eup %2884  ;;  %v1744_v60 = vadd.f32 %v2881_v54, %v1743_v45 }
 0x550   : > { %v2887_v63 = vpop.eup %2886  ;;  %v1771_v2 = vmul.f32 %v2885_v59, %v1739_v51  ;;  %v1759_v25 = vadd.f32 %v2883_v31, %v1758_v37  ;;  %vm1776_vm4 = vweird.f32 %v2885_v59 }
 0x551   : > { %v1748_v7 = vsel %vm1747_vm0, %v2881_v54, %v1744_v60  ;;  %v1779_v54 = vand.u32 2147483647, %v1739_v51  ;;  %vm1777_vm6 = vmor %vm1775_vm5, %vm1776_vm4 }
 0x552   : > { %v1772_v8 = vsub.f32 1.0, %v1771_v2  ;;  %v1753_v27 = vsel %vm1750_vm1, %v1752_v4, %v1748_v7  ;;  %v1763_v12 = vsel %vm1762_vm2, %v2883_v31, %v1759_v25 }
 0x553   : > { %v1768_v36 = vsel %vm1765_vm3, %v1767_v47, %v1763_v12  ;;  %v1787_v32 = vmul.f32 %v2887_v63, %v1753_v27  ;;  %vm1780_vm7 = vcmp.eq.f32.partialorder %v1779_v54, 8.507059e+37 }
 0x554   : > { %v1773_v24 = vmul.f32 %v2885_v59, %v1772_v8  ;;  %v1786_v29 = vmul.f32 %v1768_v36, %v3769_v33 }
 0x556   : > { %v3810_v14 = vadd.f32 %v1787_v32, %v1786_v29  ;;  %v1774_v30 = vadd.f32 %v2885_v59, %v1773_v24 }
 0x558   : > { %2888 = vtanh.f32 %v3810_v14  ;;  %v1778_v56 = vsel %vm1777_vm6, %v2885_v59, %v1774_v30 }
 0x559   : > { %v1783_v20 = vsel %vm1780_vm7, %v1782_v21, %v1778_v56 }
 0x55e   : > { %v2889_v31 = vpop.eup %2888 }
 0x55f   : > { %v1790_v19 = vmul.f32 %v2889_v31, %v1783_v20  ;;  %1798 = sbr.rel (%p2587_p8) target bundleno = 1382 (0x566), region = 96 }
 0x561   : > { %v1791_v18 = vpack.c.bf16 %v1790_v19, %v1790_v19 }
 0x563   : > { %2586 = vst [vmem:[%s3447_s1 + $0x14] sm:$0xf] %v1791_v18 }
 0x564   : > { %1799 = vst [vmem:[#allocation17] sm:$0xff] %v1790_v19 }
 0x565   : > { %1800 = vst [vmem:[#allocation19] sm:$0xff] %v3810_v14 }
 0x566 PF: > { %1808 = vmatpush.bf16.msrb.mxu0 %v3452_v39  ;;  %1821 = vmatpush.bf16.msrb.mxu1 %v3454_v43  ;;  %s1930_s20 = sadd.s32 6, %s3552_s13  ;;  %v1804_v33 = vld [vmem:[#allocation4 + $0xa8] sm:$0xff]  ;;  %v1805_v51 = vld [vmem:[#allocation4 + $0xd0] sm:$0xff] }
 0x567   : > { %1834 = vmatpush.bf16.msrb.mxu2 %v3456_v49  ;;  %1847 = vmatpush.bf16.msrb.mxu3 %v3461_v53  ;;  %v1806_v60 = vld [vmem:[#allocation4 + $0x10] sm:$0xff]  ;;  %v1807_v32 = vld [vmem:[#allocation4 + $0x28] sm:$0xff]  ;;  %p2592_p9 = scmp.ne.s32.totalorder %s1930_s20, 19 }
 0x56a   : > { %1809 = vmatpush.bf16.msrb.mxu0 %v3459_v50  ;;  %1822 = vmatpush.bf16.msrb.mxu1 %v3464_v55 }
 0x56b   : > { %1835 = vmatpush.bf16.msrb.mxu2 %v3467_v61  ;;  %1848 = vmatpush.bf16.msrb.mxu3 %v3473_v1 }
 0x56e   : > { %1810 = vmatpush.bf16.msrb.mxu0 %v3471_v62  ;;  %1823 = vmatpush.bf16.msrb.mxu1 %v3476_v3 }
 0x56f   : > { %1836 = vmatpush.bf16.msrb.mxu2 %v3479_v9  ;;  %1849 = vmatpush.bf16.msrb.mxu3 %v3485_v13 }
 0x572   : > { %1811 = vmatpush.bf16.msrb.mxu0 %v3483_v10  ;;  %1824 = vmatpush.bf16.msrb.mxu1 %v3488_v15 }
 0x573   : > { %1837 = vmatpush.bf16.msrb.mxu2 %v3492_v22  ;;  %1850 = vmatpush.bf16.msrb.mxu3 %v3498_v26 }
 0x576   : > { %1812 = vmatpush.bf16.msrb.mxu0 %v3496_v23  ;;  %1825 = vmatpush.bf16.msrb.mxu1 %v3501_v28 }
 0x577   : > { %1838 = vmatpush.bf16.msrb.mxu2 %v3504_v34  ;;  %1851 = vmatpush.bf16.msrb.mxu3 %v3510_v38 }
 0x57a   : > { %1813 = vmatpush.bf16.msrb.mxu0 %v3508_v35  ;;  %1826 = vmatpush.bf16.msrb.mxu1 %v3513_v40 }
 0x57b   : > { %1839 = vmatpush.bf16.msrb.mxu2 %v3516_v41  ;;  %1852 = vmatpush.bf16.msrb.mxu3 %v3525_v58 }
 0x57e   : > { %1814 = vmatpush.bf16.msrb.mxu0 %v3520_v46  ;;  %1827 = vmatpush.bf16.msrb.mxu1 %v3523_v52 }
 0x57f   : > { %1840 = vmatpush.bf16.msrb.mxu2 %v3528_v0  ;;  %1853 = vmatpush.bf16.msrb.mxu3 %v3534_v6 }
 0x582   : > { %1815 = vmatpush.bf16.msrb.mxu0 %v3532_v5  ;;  %1828 = vmatpush.bf16.msrb.mxu1 %v3537_v11 }
 0x583   : > { %1841 = vmatpush.bf16.msrb.mxu2 %v3540_v16  ;;  %1854 = vmatpush.bf16.msrb.mxu3 %v3544_v17 }
 0x585   : > { %1816 = vmatmul.bf16.vlgmr.msrb.gmra.mxu0 %v1791_v18  ;;  %1829 = vmatmul.bf16.vlgmr.msrb.gmra.mxu1 %v1791_v18 }
 0x586   : > { %1842 = vmatmul.bf16.vlgmr.msrb.gmra.mxu2 %v1791_v18  ;;  %1855 = vmatmul.bf16.vlgmr.msrb.gmra.mxu3 %v1791_v18 }
 0x602   : > { %v1817_v48 = vpop.f32.mrf.mxu0  ;;  %v1830_v45 = vpop.f32.mrf.mxu1 }
 0x603   : > { %v1860_v42 = vadd.f32 %v1817_v48, %v1804_v33  ;;  %v1861_v37 = vadd.f32 %v1830_v45, %v1805_v51 }
 0x605   : > { %v2588_v57 = vmul.f32 -1.442695, %v1860_v42  ;;  %v2589_v59 = vmul.f32 -1.442695, %v1861_v37 }
 0x607   : > { %2890 = vpow2.f32 %v2588_v57 }
 0x608   : > { %2892 = vpow2.f32 %v2589_v59 }
 0x609   : > { %v1843_v63 = vpop.f32.mrf.mxu2  ;;  %v1856_v2 = vpop.f32.mrf.mxu3 }
 0x60a   : > { %v1862_v4 = vadd.f32 %v1843_v63, %v1806_v60  ;;  %v1819_v25 = vpop.f32.mrf.mxu0  ;;  %v1832_v47 = vpop.f32.mrf.mxu1  ;;  %v1863_v44 = vadd.f32 %v1856_v2, %v1807_v32 }
 0x60c   : > { %v2590_v7 = vmul.f32 -1.442695, %v1862_v4 }
 0x60d   : > { %v2891_v8 = vpop.eup %2890 }
 0x60e   : > { %v2893_v27 = vpop.eup %2892  ;;  %v1873_v12 = vadd.f32 1.0, %v2891_v8  ;;  %2894 = vpow2.f32 %v2590_v7 }
 0x60f   : > { %v1874_v36 = vadd.f32 1.0, %v2893_v27 }
 0x610   : > { %2896 = vrcp.f32 %v1873_v12  ;;  %v1887_v33 = vand.u32 2147483648, %v1873_v12  ;;  %v1885_v45 = vand.u32 2147483647, %v1873_v12  ;;  %vm1881_vm10 = vweird.f32 %v1873_v12 }
 0x611   : > { %2898 = vrcp.f32 %v1874_v36  ;;  %v1845_v24 = vpop.f32.mrf.mxu2  ;;  %v1858_v29 = vpop.f32.mrf.mxu3  ;;  %v1902_v51 = vand.u32 2147483648, %v1874_v36  ;;  %v1900_v37 = vand.u32 2147483647, %v1874_v36  ;;  %vm1896_vm11 = vweird.f32 %v1874_v36 }
 0x612   : > { %v1888_v2 = vor.u32 1.1754944e-38, %v1887_v33  ;;  %vm1886_vm13 = vcmp.eq.f32.partialorder %v1885_v45, 8.507059e+37 }
 0x613   : > { %v1903_v25 = vor.u32 1.1754944e-38, %v1902_v51  ;;  %vm1901_vm15 = vcmp.eq.f32.partialorder %v1900_v37, 8.507059e+37 }
 0x614   : > { %v2895_v30 = vpop.eup %2894 }
 0x615   : > { %v1875_v54 = vadd.f32 1.0, %v2895_v30 }
 0x616   : > { %v2897_v56 = vpop.eup %2896 }
 0x617   : > { %v2899_v21 = vpop.eup %2898  ;;  %v1877_v31 = vmul.f32 %v2897_v56, %v1873_v12  ;;  %2900 = vrcp.f32 %v1875_v54  ;;  %vm1882_vm8 = vweird.f32 %v2897_v56  ;;  %vm1911_vm1 = vweird.f32 %v1875_v54 }
 0x618   : > { %v1892_v20 = vmul.f32 %v2899_v21, %v1874_v36  ;;  %2902 = vtanh.f32 %v1863_v44  ;;  %vm1897_vm9 = vweird.f32 %v2899_v21  ;;  %vm1883_vm12 = vmor %vm1881_vm10, %vm1882_vm8  ;;  %v1917_v44 = vand.u32 2147483648, %v1875_v54 }
 0x619   : > { %v1878_v19 = vsub.f32 1.0, %v1877_v31  ;;  %vm1898_vm14 = vmor %vm1896_vm11, %vm1897_vm9 }
 0x61a   : > { %v1893_v18 = vsub.f32 1.0, %v1892_v20  ;;  %v1918_v20 = vor.u32 1.1754944e-38, %v1917_v44 }
 0x61b   : > { %v1879_v48 = vmul.f32 %v2897_v56, %v1878_v19 }
 0x61c   : > { %v1894_v42 = vmul.f32 %v2899_v21, %v1893_v18 }
 0x61d   : > { %v2901_v57 = vpop.eup %2900  ;;  %v1880_v59 = vadd.f32 %v2897_v56, %v1879_v48 }
 0x61e   : > { %v2903_v60 = vpop.eup %2902  ;;  %v1907_v63 = vmul.f32 %v2901_v57, %v1875_v54  ;;  %v1895_v4 = vadd.f32 %v2899_v21, %v1894_v42  ;;  %vm1912_vm0 = vweird.f32 %v2901_v57 }
 0x61f   : > { %v1884_v47 = vsel %vm1883_vm12, %v2897_v56, %v1880_v59  ;;  %v1915_v56 = vand.u32 2147483647, %v1875_v54  ;;  %vm1913_vm2 = vmor %vm1911_vm1, %vm1912_vm0 }
 0x620   : > { %v1908_v7 = vsub.f32 1.0, %v1907_v63  ;;  %v1889_v8 = vsel %vm1886_vm13, %v1888_v2, %v1884_v47  ;;  %v1899_v27 = vsel %vm1898_vm14, %v2899_v21, %v1895_v4 }
 0x621   : > { %v1904_v32 = vsel %vm1901_vm15, %v1903_v25, %v1899_v27  ;;  %v1923_v24 = vmul.f32 %v2903_v60, %v1889_v8  ;;  %vm1916_vm3 = vcmp.eq.f32.partialorder %v1915_v56, 8.507059e+37 }
 0x622   : > { %v1909_v29 = vmul.f32 %v2901_v57, %v1908_v7  ;;  %v1922_v30 = vmul.f32 %v1904_v32, %v3810_v14 }
 0x624   : > { %v3851_v12 = vadd.f32 %v1923_v24, %v1922_v30  ;;  %v1910_v36 = vadd.f32 %v2901_v57, %v1909_v29 }
 0x626   : > { %2904 = vtanh.f32 %v3851_v12  ;;  %v1914_v31 = vsel %vm1913_vm2, %v2901_v57, %v1910_v36 }
 0x627   : > { %v1919_v19 = vsel %vm1916_vm3, %v1918_v20, %v1914_v31 }
 0x62c   : > { %v2905_v21 = vpop.eup %2904 }
 0x62d   : > { %v1926_v18 = vmul.f32 %v2905_v21, %v1919_v19  ;;  %1934 = sbr.rel (%p2592_p9) target bundleno = 1588 (0x634), region = 100 }
 0x62f   : > { %v1927_v33 = vpack.c.bf16 %v1926_v18, %v1926_v18 }
 0x631   : > { %2591 = vst [vmem:[%s3447_s1 + $0x18] sm:$0xf] %v1927_v33 }
 0x632   : > { %1935 = vst [vmem:[#allocation17] sm:$0xff] %v1926_v18 }
 0x633   : > { %1936 = vst [vmem:[#allocation19] sm:$0xff] %v3851_v12 }
 0x634 PF: > { %1944 = vmatpush.bf16.msra.mxu0 %v3452_v39  ;;  %1957 = vmatpush.bf16.msra.mxu1 %v3454_v43  ;;  %s2066_s21 = sadd.s32 7, %s3552_s13  ;;  %v1940_v39 = vld [vmem:[#allocation4 + $0xa0] sm:$0xff]  ;;  %v1941_v43 = vld [vmem:[#allocation4 + $0xf8] sm:$0xff] }
 0x635   : > { %1970 = vmatpush.bf16.msra.mxu2 %v3456_v49  ;;  %1983 = vmatpush.bf16.msra.mxu3 %v3461_v53  ;;  %p2597_p10 = scmp.ne.s32.totalorder %s2066_s21, 19 }
 0x638   : > { %1945 = vmatpush.bf16.msra.mxu0 %v3459_v50  ;;  %1958 = vmatpush.bf16.msra.mxu1 %v3464_v55 }
 0x639   : > { %1971 = vmatpush.bf16.msra.mxu2 %v3467_v61  ;;  %1984 = vmatpush.bf16.msra.mxu3 %v3473_v1  ;;  %v1942_v1 = vld [vmem:[#allocation4 + $0x20] sm:$0xff] }
 0x63c   : > { %1946 = vmatpush.bf16.msra.mxu0 %v3471_v62  ;;  %1959 = vmatpush.bf16.msra.mxu1 %v3476_v3 }
 0x63d   : > { %1972 = vmatpush.bf16.msra.mxu2 %v3479_v9  ;;  %1985 = vmatpush.bf16.msra.mxu3 %v3485_v13 }
 0x640   : > { %1947 = vmatpush.bf16.msra.mxu0 %v3483_v10  ;;  %1960 = vmatpush.bf16.msra.mxu1 %v3488_v15 }
 0x641   : > { %1973 = vmatpush.bf16.msra.mxu2 %v3492_v22  ;;  %1986 = vmatpush.bf16.msra.mxu3 %v3498_v26 }
 0x644   : > { %1948 = vmatpush.bf16.msra.mxu0 %v3496_v23  ;;  %1961 = vmatpush.bf16.msra.mxu1 %v3501_v28 }
 0x645   : > { %1974 = vmatpush.bf16.msra.mxu2 %v3504_v34  ;;  %1987 = vmatpush.bf16.msra.mxu3 %v3510_v38 }
 0x648   : > { %1949 = vmatpush.bf16.msra.mxu0 %v3508_v35  ;;  %1962 = vmatpush.bf16.msra.mxu1 %v3513_v40  ;;  %v1943_v35 = vld [vmem:[#allocation4 + $0x98] sm:$0xff] }
 0x649   : > { %1975 = vmatpush.bf16.msra.mxu2 %v3516_v41  ;;  %1988 = vmatpush.bf16.msra.mxu3 %v3525_v58 }
 0x64c   : > { %1950 = vmatpush.bf16.msra.mxu0 %v3520_v46  ;;  %1963 = vmatpush.bf16.msra.mxu1 %v3523_v52 }
 0x64d   : > { %1976 = vmatpush.bf16.msra.mxu2 %v3528_v0  ;;  %1989 = vmatpush.bf16.msra.mxu3 %v3534_v6 }
 0x650   : > { %1951 = vmatpush.bf16.msra.mxu0 %v3532_v5  ;;  %1964 = vmatpush.bf16.msra.mxu1 %v3537_v11 }
 0x651   : > { %1977 = vmatpush.bf16.msra.mxu2 %v3540_v16  ;;  %1990 = vmatpush.bf16.msra.mxu3 %v3544_v17 }
 0x653   : > { %1952 = vmatmul.bf16.vlgmr.msra.gmra.mxu0 %v1927_v33  ;;  %1965 = vmatmul.bf16.vlgmr.msra.gmra.mxu1 %v1927_v33 }
 0x654   : > { %1978 = vmatmul.bf16.vlgmr.msra.gmra.mxu2 %v1927_v33  ;;  %1991 = vmatmul.bf16.vlgmr.msra.gmra.mxu3 %v1927_v33 }
 0x6d0   : > { %v1953_v49 = vpop.f32.mrf.mxu0  ;;  %v1966_v50 = vpop.f32.mrf.mxu1 }
 0x6d1   : > { %v1996_v53 = vadd.f32 %v1953_v49, %v1940_v39  ;;  %v1997_v55 = vadd.f32 %v1966_v50, %v1941_v43 }
 0x6d3   : > { %v2593_v61 = vmul.f32 -1.442695, %v1996_v53  ;;  %v2594_v62 = vmul.f32 -1.442695, %v1997_v55 }
 0x6d5   : > { %2906 = vpow2.f32 %v2593_v61 }
 0x6d6   : > { %2908 = vpow2.f32 %v2594_v62 }
 0x6d7   : > { %v1979_v3 = vpop.f32.mrf.mxu2  ;;  %v1992_v9 = vpop.f32.mrf.mxu3 }
 0x6d8   : > { %v1998_v10 = vadd.f32 %v1979_v3, %v1942_v1  ;;  %v1955_v13 = vpop.f32.mrf.mxu0  ;;  %v1968_v15 = vpop.f32.mrf.mxu1  ;;  %v1999_v46 = vadd.f32 %v1992_v9, %v1943_v35 }
 0x6da   : > { %v2595_v22 = vmul.f32 -1.442695, %v1998_v10 }
 0x6db   : > { %v2907_v23 = vpop.eup %2906 }
 0x6dc   : > { %v2909_v26 = vpop.eup %2908  ;;  %v2009_v28 = vadd.f32 1.0, %v2907_v23  ;;  %2910 = vpow2.f32 %v2595_v22 }
 0x6dd   : > { %v2010_v34 = vadd.f32 1.0, %v2909_v26 }
 0x6de   : > { %2912 = vrcp.f32 %v2009_v28  ;;  %v2023_v17 = vand.u32 2147483648, %v2009_v28  ;;  %v2021_v51 = vand.u32 2147483647, %v2009_v28  ;;  %vm2017_vm6 = vweird.f32 %v2009_v28 }
 0x6df   : > { %2914 = vrcp.f32 %v2010_v34  ;;  %v1981_v38 = vpop.f32.mrf.mxu2  ;;  %v1994_v40 = vpop.f32.mrf.mxu3  ;;  %v2038_v14 = vand.u32 2147483648, %v2010_v34  ;;  %v2036_v45 = vand.u32 2147483647, %v2010_v34  ;;  %vm2032_vm7 = vweird.f32 %v2010_v34 }
 0x6e0   : > { %v2024_v60 = vor.u32 1.1754944e-38, %v2023_v17  ;;  %vm2022_vm9 = vcmp.eq.f32.partialorder %v2021_v51, 8.507059e+37 }
 0x6e1   : > { %v2039_v2 = vor.u32 1.1754944e-38, %v2038_v14  ;;  %vm2037_vm11 = vcmp.eq.f32.partialorder %v2036_v45, 8.507059e+37 }
 0x6e2   : > { %v2911_v41 = vpop.eup %2910 }
 0x6e3   : > { %v2011_v52 = vadd.f32 1.0, %v2911_v41 }
 0x6e4   : > { %v2913_v58 = vpop.eup %2912 }
 0x6e5   : > { %v2915_v0 = vpop.eup %2914  ;;  %v2013_v5 = vmul.f32 %v2913_v58, %v2009_v28  ;;  %2916 = vrcp.f32 %v2011_v52  ;;  %vm2018_vm4 = vweird.f32 %v2913_v58  ;;  %v2053_v36 = vand.u32 2147483648, %v2011_v52 }
 0x6e6   : > { %v2028_v6 = vmul.f32 %v2915_v0, %v2010_v34  ;;  %2918 = vtanh.f32 %v1999_v46  ;;  %vm2033_vm5 = vweird.f32 %v2915_v0  ;;  %vm2019_vm8 = vmor %vm2017_vm6, %vm2018_vm4  ;;  %vm2047_vm13 = vweird.f32 %v2011_v52 }
 0x6e7   : > { %v2014_v11 = vsub.f32 1.0, %v2013_v5  ;;  %vm2034_vm10 = vmor %vm2032_vm7, %vm2033_vm5  ;;  %v2051_v44 = vand.u32 2147483647, %v2011_v52  ;;  %v2054_v31 = vor.u32 1.1754944e-38, %v2053_v36 }
 0x6e8   : > { %v2029_v16 = vsub.f32 1.0, %v2028_v6 }
 0x6e9   : > { %v2015_v54 = vmul.f32 %v2913_v58, %v2014_v11  ;;  %vm2052_vm15 = vcmp.eq.f32.partialorder %v2051_v44, 8.507059e+37 }
 0x6ea   : > { %v2030_v48 = vmul.f32 %v2915_v0, %v2029_v16 }
 0x6eb   : > { %v2917_v42 = vpop.eup %2916  ;;  %v2016_v37 = vadd.f32 %v2913_v58, %v2015_v54 }
 0x6ec   : > { %v2919_v57 = vpop.eup %2918  ;;  %v2043_v59 = vmul.f32 %v2917_v42, %v2011_v52  ;;  %v2031_v63 = vadd.f32 %v2915_v0, %v2030_v48  ;;  %vm2048_vm12 = vweird.f32 %v2917_v42 }
 0x6ed   : > { %v2020_v4 = vsel %vm2019_vm8, %v2913_v58, %v2016_v37  ;;  %vm2049_vm14 = vmor %vm2047_vm13, %vm2048_vm12 }
 0x6ee   : > { %v2044_v25 = vsub.f32 1.0, %v2043_v59  ;;  %v2025_v47 = vsel %vm2022_vm9, %v2024_v60, %v2020_v4  ;;  %v2035_v7 = vsel %vm2034_vm10, %v2915_v0, %v2031_v63 }
 0x6ef   : > { %v2040_v8 = vsel %vm2037_vm11, %v2039_v2, %v2035_v7  ;;  %v2059_v27 = vmul.f32 %v2919_v57, %v2025_v47 }
 0x6f0   : > { %v2045_v32 = vmul.f32 %v2917_v42, %v2044_v25  ;;  %v2058_v24 = vmul.f32 %v2040_v8, %v3851_v12 }
 0x6f2   : > { %v2060_v29 = vadd.f32 %v2059_v27, %v2058_v24  ;;  %v2046_v30 = vadd.f32 %v2917_v42, %v2045_v32 }
 0x6f4   : > { %2920 = vtanh.f32 %v2060_v29  ;;  %v2050_v56 = vsel %vm2049_vm14, %v2917_v42, %v2046_v30 }
 0x6f5   : > { %v2055_v21 = vsel %vm2052_vm15, %v2054_v31, %v2050_v56 }
 0x6fa   : > { %v2921_v20 = vpop.eup %2920 }
 0x6fb   : > { %v2062_v19 = vmul.f32 %v2921_v20, %v2055_v21  ;;  %2070 = sbr.rel (%p2597_p10) target bundleno = 1794 (0x702), region = 104 }
 0x6fd   : > { %v2063_v18 = vpack.c.bf16 %v2062_v19, %v2062_v19 }
 0x6ff   : > { %2596 = vst [vmem:[%s3447_s1 + $0x1c] sm:$0xf] %v2063_v18 }
 0x700   : > { %2071 = vst [vmem:[#allocation17] sm:$0xff] %v2062_v19 }
 0x701   : > { %2072 = vst [vmem:[#allocation19] sm:$0xff] %v2060_v29 }
 0x702 PF: > { %2073 = vst [vmem:[#allocation2] sm:$0xff] %v2062_v19  ;;  %s3251_s14 = smov [#allocation17]   ;;  %s2105_s2 = sshll.u32 %s3949_s7, 4  ;;  %s2106_s2 = int_to_ptr.hbm [resolvable:$true] %s2105_s2 }
 0x703   : > { %s2103_s17 = sshll.u32 %s3251_s14, 4  ;;  %2074 = vst [vmem:[#allocation3] sm:$0xff] %v2060_v29  ;;  %p3966_p2 = scmp.eq.s32.totalorder %s3324_s12, 2  ;;  %s2104_s17 = int_to_ptr.vmem [resolvable:$true] %s2103_s17 }
 0x704   : > { %s2676_s3 = sshll.u32 %s3324_s12, 5  ;;  %s2088_s9 = sshll.u32 %s3447_s1, 4  ;;  %s2089_s9 = int_to_ptr.vmem [resolvable:$true] %s2088_s9 }
 0x705   : > { %2701 = dma.vmem_to_hbm [thread:$0]  (%p3966_p2), %s2104_s17, 128, %s2106_s2, [#allocation18]  }
 0x706   : > { %s2087_s24 = scalar_lea.hbm %s3948_s6, %s2676_s3  ;;  %s2076_s15 = scalar_lea.sflag [#allocation7], %s3425_s26 }
 0x707   : > { %s2090_s22 = sshll.u32 %s2087_s24, 4  ;;  %s3150_s17 = scalar_lea.hbm %s3948_s6, 96  ;;  %s2091_s22 = int_to_ptr.hbm [resolvable:$true] %s2090_s22 }
 0x708   : > { %s3144_s20 = sshra.s32 %s2091_s22, 4  ;;  %s3145_s20 = int_to_ptr.hbm [resolvable:$true] %s3144_s20 }
 0x709   : > { %s3146_s21 = scalar_lea.hbm %s3145_s20, 32  ;;  %p3151_p1 = scmp.lt.s32.totalorder %s3145_s20, %s3948_s6 }
 0x70a   : > { %p3147_p12 = scmp.ne.s32.totalorder %s3145_s20, %s3146_s21  ;;  %p3152_p4 = scmp.lt.s32.totalorder %s3150_s17, %s3146_s21 }
 0x70c   : > { %p3148_p5 = pnand %p3147_p12, %p3392_p0  ;;  %p3153_p11 = por %p3152_p4, %p3151_p1 }
 0x70e   : > { %p3149_p3 = pneg %p3148_p5 }
 0x710   : > { %p3154_p13 = pnand %p3153_p11, %p3149_p3 }
 0x712   : > { %3157 = shalt.err (!%p3154_p13)
}
 0x713   : > { %s3252_s26 = smov 64   ;;  %s3253_s1 = smov 4  }
 0x714   : > { %2699 = dma.vmem_to_hbm [thread:$0]  (%p3392_p0), %s2089_s9, 512, %s2091_s22, %s2076_s15, %s3252_s26, %s3252_s26, %s3253_s1  }
 0x715   : > { %s3254_s3 = smov [#allocation19]   ;;  %s2117_s14 = sshll.u32 %s3950_s8, 4  ;;  %s2118_s14 = int_to_ptr.hbm [resolvable:$true] %s2117_s14 }
 0x716   : > { %s2115_s13 = sshll.u32 %s3254_s3, 4  ;;  %p3967_p7 = pmov %p3966_p2  ;;  %s2116_s13 = int_to_ptr.vmem [resolvable:$true] %s2115_s13 }
 0x717   : > { %p3968_p8 = pmov %p3966_p2 }
 0x718   : > { %2703 = dma.vmem_to_hbm [thread:$0]  (%p3967_p7), %s2116_s13, 128, %s2118_s14, [#allocation18]  }
 0x719   : > { %3219 = dma.done.wait (%p3968_p8), [#allocation18], 256   ;;  %p3969_p9 = pmov %p3966_p2 }
 0x71b   : > { %3221 = vsyncadd (%p3969_p9), [#allocation18], 4294967040 }
 0x71c PF: > { %p2748_p0 = scmp.ge.s32.totalorder %s3240_s30, 2  ;;  %s2139_s16 = sand.u32 1, %s3228_s27  }
 0x71d   : > { %s2140_s9 = scalar_lea.sflag [#allocation7], %s2139_s16 }
 0x71e   : > { %p2730_p10 = pnand %p2748_p0, %p3398_p6 }
 0x720   : > { %p2731_p2 = pneg %p2730_p10 }
 0x722   : > { %3223 = dma.done.wait (%p2731_p2), %s2140_s9, 512  }
 0x723   : > { %3225 = vsyncadd (%p2731_p2), %s2140_s9, 4294966784  ;;  %p26_p12 = scmp.ge.s32.totalorder %s3366_s25, 5   ;;  %s3970_s27 = smov %s3232_s28 }
 0x724   : > { %s3971_s28 = smov %s3236_s29  ;;  %s3972_s29 = smov %s3378_s10 }
 0x725   : > { %s3973_s30 = smov %s3366_s25  ;;  %28 = sbr.rel (!%p26_p12) target bundleno = 13 (0xd), region = 176 }
 0x72a   :  { %2146 = vsyncpa [#allocation6], 1 }
 0x72b   :  { %2148 = vsyncpa [#allocation6 + $0x1], 1 }
 0x72c   :  { %2149 = vsyncpa [#allocation9], 1 }
 0x72d   :  { %2150 = vsyncpa [#allocation12], 1 }
 0x72e   :  { %2151 = vsyncpa [#allocation15], 1 }
 0x72f   :  { %2152 = vsyncpa [#allocation7], 1 }
 0x730   :  { %2154 = vsyncpa [#allocation7 + $0x1], 1 }
 0x731   :  { %2155 = vsyncpa [#allocation18], 1 }

</bundles_post_ra>
